<compile_context>
chip_gen: v6e
topology: v6e:2x2x1
jax: 0.10.0
libtpu: 0.0.40
codegen_flags: <defaults>
</compile_context>

<pallas_src>
import functools

import jax
import jax.numpy as jnp
import numpy as np
from jax import lax
from jax.experimental import pallas as pl
from jax.experimental.pallas import tpu as pltpu

ALPHA = 0.1
K_PROP = 5


def _round_up(n, m):
    return (n + m - 1) // m * m


# --------------------- fused kernel: lin1 + K*APPNP + log_softmax --------------------- #
def gapp_fused_kernel(seed_ref, x_ref, w_ref, b_ref, a_ref, o_ref, z_ref, h0_ref,
                      *, training, n_valid, h_valid, k_prop, alpha):
    # ---- dropout + lin1 + relu (bf16 MXU inputs, f32 accumulate / epilogue) ----
    x = x_ref[...]                                            # [Np, Cp] f32
    if training:
        pltpu.prng_seed(seed_ref[0])
        bits = pltpu.prng_random_bits(x.shape)
        keep = pltpu.bitcast(bits, jnp.int32) < 0             # sign bit -> p(keep) = 0.5
        x = jnp.where(keep, x * 2.0, 0.0)                     # scale by 1/keep_prob
    h = jnp.dot(x.astype(jnp.bfloat16), w_ref[...],
                preferred_element_type=jnp.float32)           # [Np, Hp] f32
    h = jnp.maximum(h + b_ref[...], 0.0)
    # Zero padded rows (zero-padded x rows would otherwise carry relu(b1)).
    row = lax.broadcasted_iota(jnp.int32, h.shape, 0)
    h = jnp.where(row < n_valid, h, 0.0)
    h0_ref[...] = h                                           # teleport term, f32, VMEM-resident
    z_ref[...] = h.astype(jnp.bfloat16)                       # propagated state, bf16, resident

    # ---- K APPNP power iterations, everything resident in VMEM ----
    #   z <- (1 - alpha) * Ahat @ z + alpha * h0
    # (short static loop; refs bound the live ranges between steps)
    for _ in range(k_prop - 1):
        zf = (1.0 - alpha) * jnp.dot(a_ref[...], z_ref[...],
                                     preferred_element_type=jnp.float32) \
             + alpha * h0_ref[...]
        z_ref[...] = zf.astype(jnp.bfloat16)
    # Last step kept un-cast (f32) so the softmax math stays in f32.
    zf = (1.0 - alpha) * jnp.dot(a_ref[...], z_ref[...],
                                 preferred_element_type=jnp.float32) \
         + alpha * h0_ref[...]

    # ---- masked log_softmax over the first h_valid (unpadded) lanes, f32 ----
    lane = lax.broadcasted_iota(jnp.int32, zf.shape, 1)
    valid = lane < h_valid
    zm = jnp.where(valid, zf, -1e30)
    m = jnp.max(zm, axis=-1, keepdims=True)
    e = jnp.where(valid, jnp.exp(zm - m), 0.0)
    s = jnp.sum(e, axis=-1, keepdims=True)
    logp = (zm - m) - jnp.log(s)
    o_ref[...] = jnp.where(valid, logp, 0.0).astype(o_ref.dtype)


# ------------------------------- glue (JAX) -------------------------------- #
def build_gcn_adj(edge_index, edge_weight, num_nodes):
    """Dense Ahat = D^-1/2 (A + I) D^-1/2, matching PyG gcn_norm (add self loops)."""
    src = edge_index[0]
    dst = edge_index[1]
    if edge_weight is None:
        w = jnp.ones(src.shape, jnp.float32)
    else:
        w = edge_weight.astype(jnp.float32)
    loop = jnp.arange(num_nodes, dtype=src.dtype)
    src = jnp.concatenate([src, loop])
    dst = jnp.concatenate([dst, loop])
    w = jnp.concatenate([w, jnp.ones((num_nodes,), jnp.float32)])
    deg = jnp.zeros((num_nodes,), jnp.float32).at[dst].add(w)
    dinv = jnp.where(deg > 0, 1.0 / jnp.sqrt(deg), 0.0)
    vals = dinv[dst] * w * dinv[src]
    return jnp.zeros((num_nodes, num_nodes), jnp.float32).at[dst, src].add(vals)


def init_params(key, in_channels, hidden_channels):
    """Mimics torch Linear init (uniform +-1/sqrt(fan_in))."""
    k1, k2 = jax.random.split(key)
    bound = 1.0 / np.sqrt(in_channels)
    w1 = jax.random.uniform(k1, (in_channels, hidden_channels), jnp.float32, -bound, bound)
    b1 = jax.random.uniform(k2, (1, hidden_channels), jnp.float32, -bound, bound)
    # TODO(synk): lin2 / convs / prop2 exist in the PyTorch module but are never used in forward().
    return {"w1": w1, "b1": b1}


def gapp_forward(x, edge_index, edge_weight, params, *, training=False, seed=0):
    N, cin = x.shape
    H = params["w1"].shape[1]
    Hp = _round_up(H, 128)                 # lane-dense hidden (32 -> 128)
    Cp = _round_up(cin, 128)               # lane-dense input width (zeros contribute nothing)
    Np = _round_up(N, 128)                 # rows AND reduction lanes of Ahat need 128-alignment

    if 2 * Np * Np > 24 * 1024 * 1024:
        # TODO(synk): stream Ahat row-bands (emit_pipeline) instead of keeping it resident.
        raise NotImplementedError("fused VMEM-resident path only supports small graphs")

    # ---- prep (glue): build + pad adjacency (bf16), pad x / W1 / b1 ----
    A = build_gcn_adj(edge_index, edge_weight, N)
    A = jnp.pad(A, ((0, Np - N), (0, Np - N))).astype(jnp.bfloat16)
    xp = jnp.pad(x, ((0, Np - N), (0, Cp - cin)))
    w1 = jnp.pad(params["w1"], ((0, Cp - cin), (0, Hp - H))).astype(jnp.bfloat16)
    b1 = jnp.pad(params["b1"], ((0, 0), (0, Hp - H)))
    seed_arr = jnp.asarray([seed], dtype=jnp.int32)

    out = pl.pallas_call(
        functools.partial(gapp_fused_kernel, training=training, n_valid=N,
                          h_valid=H, k_prop=K_PROP, alpha=ALPHA),
        out_shape=jax.ShapeDtypeStruct((Np, Hp), jnp.float32),
        grid=(1,),
        in_specs=[
            pl.BlockSpec(memory_space=pltpu.MemorySpace.SMEM),   # seed scalar
            pl.BlockSpec((Np, Cp), lambda i: (0, 0)),            # x (padded, resident)
            pl.BlockSpec((Cp, Hp), lambda i: (0, 0)),            # W1 (bf16, resident)
            pl.BlockSpec((1, Hp), lambda i: (0, 0)),             # b1 (resident)
            pl.BlockSpec((Np, Np), lambda i: (0, 0)),            # Ahat (bf16, resident)
        ],
        out_specs=pl.BlockSpec((Np, Hp), lambda i: (0, 0)),
        scratch_shapes=[
            pltpu.VMEM((Np, Hp), jnp.bfloat16),                  # z   (carried between steps)
            pltpu.VMEM((Np, Hp), jnp.float32),                   # h0  (teleport term)
        ],
        compiler_params=pltpu.CompilerParams(dimension_semantics=("arbitrary",)),
    )(seed_arr, xp, w1, b1, A)

    return out[:N, :H]


def gapp_reference(x, edge_index, edge_weight, params):
    """Pure-JAX reference with the same bf16-MXU / f32-accumulate numerics."""
    A = build_gcn_adj(edge_index, edge_weight, x.shape[0]).astype(jnp.bfloat16)
    w1 = params["w1"].astype(jnp.bfloat16)
    h = jnp.dot(x.astype(jnp.bfloat16), w1, preferred_element_type=jnp.float32) + params["b1"]
    h = jnp.maximum(h, 0.0)
    h0 = h
    z = h
    for _ in range(K_PROP):
        z = (1.0 - ALPHA) * jnp.dot(A, z.astype(jnp.bfloat16),
                                    preferred_element_type=jnp.float32) + ALPHA * h0
    return jax.nn.log_softmax(z, axis=1)


# --------------------------------- main ------------------------------------ #
if __name__ == "__main__":
    key = jax.random.PRNGKey(0)
    k_x, k_e1, k_e2, k_p = jax.random.split(key, 4)

    N, in_channels, hidden_channels = 200, 16, 32
    out_channels, layer_num = 8, 3          # lin2 / convs / prop2 unused in forward
    num_edges = 800

    x = jax.random.normal(k_x, (N, in_channels), jnp.float32)
    src = jax.random.randint(k_e1, (num_edges,), 0, N, dtype=jnp.int32)
    off = jax.random.randint(k_e2, (num_edges,), 1, N, dtype=jnp.int32)
    dst = (src + off) % N                   # no pre-existing self loops (gcn_norm adds them)
    edge_index = jnp.stack([src, dst])
    edge_weight = None                      # matches the forward() default

    params = init_params(k_p, in_channels, hidden_channels)

    # Inference mode (dropout identity); training=True uses the in-kernel PRNG path.
    out = gapp_forward(x, edge_index, edge_weight, params, training=False)
    out = jax.block_until_ready(out)
    assert out.shape == (N, hidden_channels)

    ref = gapp_reference(x, edge_index, edge_weight, params)
    # Tolerance accounts for bf16 MXU inputs + accumulation-order differences across the
    # 5 chained propagation steps (both paths use bf16 matmuls, f32 everywhere else).
    np.testing.assert_allclose(np.asarray(out), np.asarray(ref), rtol=2e-3, atol=2e-3)

    print("KERNEL_OK")
</pallas_src>

<mosaic_0001>
module attributes {stable_mosaic.version = 11 : i64} {
  func.func @gapp_fused_kernel(%arg0: i32, %arg1: memref<1xi32, #tpu.memory_space<smem>>, %arg2: memref<256x128xf32, #tpu.memory_space<vmem>>, %arg3: memref<128x128xbf16, #tpu.memory_space<vmem>>, %arg4: memref<1x128xf32, #tpu.memory_space<vmem>>, %arg5: memref<256x256xbf16, #tpu.memory_space<vmem>>, %arg6: memref<256x128xf32, #tpu.memory_space<vmem>>, %arg7: memref<256x128xbf16, #tpu.memory_space<vmem>>, %arg8: memref<256x128xf32, #tpu.memory_space<vmem>>) attributes {dimension_semantics = [#tpu.dimension_semantics<arbitrary>], iteration_bounds = array<i64: 1>, scalar_prefetch = 0 : i64, scratch_operands = 2 : i64, tpu.core_type = #tpu.core_type<tc>, window_params = [{transform_indices = @transform_0, window_bounds = array<i64: 1>}, {pipeline_mode = #tpu.pipeline_mode<synchronous>, transform_indices = @transform_1, window_bounds = array<i64: 256, 128>}, {pipeline_mode = #tpu.pipeline_mode<synchronous>, transform_indices = @transform_2, window_bounds = array<i64: 128, 128>}, {pipeline_mode = #tpu.pipeline_mode<synchronous>, transform_indices = @transform_3, window_bounds = array<i64: 1, 128>}, {pipeline_mode = #tpu.pipeline_mode<synchronous>, transform_indices = @transform_4, window_bounds = array<i64: 256, 256>}, {pipeline_mode = #tpu.pipeline_mode<synchronous>, transform_indices = @transform_5, window_bounds = array<i64: 256, 128>}]} {
    %c0 = arith.constant 0 : index
    %c0_0 = arith.constant 0 : index
    %0 = vector.load %arg2[%c0, %c0_0] : memref<256x128xf32, #tpu.memory_space<vmem>>, vector<256x128xf32>
    %1 = arith.truncf %0 : vector<256x128xf32> to vector<256x128xbf16>
    %c0_1 = arith.constant 0 : index
    %c0_2 = arith.constant 0 : index
    %2 = vector.load %arg3[%c0_1, %c0_2] : memref<128x128xbf16, #tpu.memory_space<vmem>>, vector<128x128xbf16>
    %cst = arith.constant dense<0.000000e+00> : vector<256x128xf32>
    %3 = tpu.matmul %1, %2, %cst {dimension_numbers = #tpu.dot_dimension_numbers<[1], [0], [0], [1], [0, 0, 1, 1], [], []>} : vector<256x128xbf16>, vector<128x128xbf16>, vector<256x128xf32> -> vector<256x128xf32>
    %c0_3 = arith.constant 0 : index
    %c0_4 = arith.constant 0 : index
    %4 = vector.load %arg4[%c0_3, %c0_4] : memref<1x128xf32, #tpu.memory_space<vmem>>, vector<1x128xf32>
    %5 = vector.broadcast %4 : vector<1x128xf32> to vector<256x128xf32>
    %6 = arith.addf %3, %5 : vector<256x128xf32>
    %cst_5 = arith.constant 0.000000e+00 : f32
    %7 = vector.broadcast %cst_5 : f32 to vector<256x128xf32>
    %8 = arith.maximumf %6, %7 : vector<256x128xf32>
    %9 = tpu.iota {dimensions = array<i32: 0>} : vector<256x128xi32>
    %c200_i32 = arith.constant 200 : i32
    %10 = vector.broadcast %c200_i32 : i32 to vector<256x128xi32>
    %11 = arith.cmpi slt, %9, %10 : vector<256x128xi32>
    %cst_6 = arith.constant 0.000000e+00 : f32
    %12 = vector.broadcast %cst_6 : f32 to vector<256x128xf32>
    %13 = arith.select %11, %8, %12 : vector<256x128xi1>, vector<256x128xf32>
    %c0_7 = arith.constant 0 : index
    %c0_8 = arith.constant 0 : index
    %14 = vector.load %arg8[%c0_7, %c0_8] : memref<256x128xf32, #tpu.memory_space<vmem>>, vector<256x128xf32>
    tpu.vector_store %arg8[%c0_7, %c0_8], %13 {strides = array<i32>} : memref<256x128xf32, #tpu.memory_space<vmem>>, vector<256x128xf32>,
    %15 = arith.truncf %13 : vector<256x128xf32> to vector<256x128xbf16>
    %c0_9 = arith.constant 0 : index
    %c0_10 = arith.constant 0 : index
    %16 = vector.load %arg7[%c0_9, %c0_10] : memref<256x128xbf16, #tpu.memory_space<vmem>>, vector<256x128xbf16>
    tpu.vector_store %arg7[%c0_9, %c0_10], %15 {strides = array<i32>} : memref<256x128xbf16, #tpu.memory_space<vmem>>, vector<256x128xbf16>,
    %c0_11 = arith.constant 0 : index
    %c0_12 = arith.constant 0 : index
    %17 = vector.load %arg5[%c0_11, %c0_12] : memref<256x256xbf16, #tpu.memory_space<vmem>>, vector<256x256xbf16>
    %c0_13 = arith.constant 0 : index
    %c0_14 = arith.constant 0 : index
    %18 = vector.load %arg7[%c0_13, %c0_14] : memref<256x128xbf16, #tpu.memory_space<vmem>>, vector<256x128xbf16>
    %cst_15 = arith.constant dense<0.000000e+00> : vector<256x128xf32>
    %19 = tpu.matmul %17, %18, %cst_15 {dimension_numbers = #tpu.dot_dimension_numbers<[1], [0], [0], [1], [0, 0, 1, 1], [], []>} : vector<256x256xbf16>, vector<256x128xbf16>, vector<256x128xf32> -> vector<256x128xf32>
    %cst_16 = arith.constant 0.899999976 : f32
    %20 = vector.broadcast %cst_16 : f32 to vector<256x128xf32>
    %21 = arith.mulf %20, %19 : vector<256x128xf32>
    %c0_17 = arith.constant 0 : index
    %c0_18 = arith.constant 0 : index
    %22 = vector.load %arg8[%c0_17, %c0_18] : memref<256x128xf32, #tpu.memory_space<vmem>>, vector<256x128xf32>
    %cst_19 = arith.constant 1.000000e-01 : f32
    %23 = vector.broadcast %cst_19 : f32 to vector<256x128xf32>
    %24 = arith.mulf %23, %22 : vector<256x128xf32>
    %25 = arith.addf %21, %24 : vector<256x128xf32>
    %26 = arith.truncf %25 : vector<256x128xf32> to vector<256x128xbf16>
    %c0_20 = arith.constant 0 : index
    %c0_21 = arith.constant 0 : index
    %27 = vector.load %arg7[%c0_20, %c0_21] : memref<256x128xbf16, #tpu.memory_space<vmem>>, vector<256x128xbf16>
    tpu.vector_store %arg7[%c0_20, %c0_21], %26 {strides = array<i32>} : memref<256x128xbf16, #tpu.memory_space<vmem>>, vector<256x128xbf16>,
    %c0_22 = arith.constant 0 : index
    %c0_23 = arith.constant 0 : index
    %28 = vector.load %arg5[%c0_22, %c0_23] : memref<256x256xbf16, #tpu.memory_space<vmem>>, vector<256x256xbf16>
    %c0_24 = arith.constant 0 : index
    %c0_25 = arith.constant 0 : index
    %29 = vector.load %arg7[%c0_24, %c0_25] : memref<256x128xbf16, #tpu.memory_space<vmem>>, vector<256x128xbf16>
    %cst_26 = arith.constant dense<0.000000e+00> : vector<256x128xf32>
    %30 = tpu.matmul %28, %29, %cst_26 {dimension_numbers = #tpu.dot_dimension_numbers<[1], [0], [0], [1], [0, 0, 1, 1], [], []>} : vector<256x256xbf16>, vector<256x128xbf16>, vector<256x128xf32> -> vector<256x128xf32>
    %cst_27 = arith.constant 0.899999976 : f32
    %31 = vector.broadcast %cst_27 : f32 to vector<256x128xf32>
    %32 = arith.mulf %31, %30 : vector<256x128xf32>
    %c0_28 = arith.constant 0 : index
    %c0_29 = arith.constant 0 : index
    %33 = vector.load %arg8[%c0_28, %c0_29] : memref<256x128xf32, #tpu.memory_space<vmem>>, vector<256x128xf32>
    %cst_30 = arith.constant 1.000000e-01 : f32
    %34 = vector.broadcast %cst_30 : f32 to vector<256x128xf32>
    %35 = arith.mulf %34, %33 : vector<256x128xf32>
    %36 = arith.addf %32, %35 : vector<256x128xf32>
    %37 = arith.truncf %36 : vector<256x128xf32> to vector<256x128xbf16>
    %c0_31 = arith.constant 0 : index
    %c0_32 = arith.constant 0 : index
    %38 = vector.load %arg7[%c0_31, %c0_32] : memref<256x128xbf16, #tpu.memory_space<vmem>>, vector<256x128xbf16>
    tpu.vector_store %arg7[%c0_31, %c0_32], %37 {strides = array<i32>} : memref<256x128xbf16, #tpu.memory_space<vmem>>, vector<256x128xbf16>,
    %c0_33 = arith.constant 0 : index
    %c0_34 = arith.constant 0 : index
    %39 = vector.load %arg5[%c0_33, %c0_34] : memref<256x256xbf16, #tpu.memory_space<vmem>>, vector<256x256xbf16>
    %c0_35 = arith.constant 0 : index
    %c0_36 = arith.constant 0 : index
    %40 = vector.load %arg7[%c0_35, %c0_36] : memref<256x128xbf16, #tpu.memory_space<vmem>>, vector<256x128xbf16>
    %cst_37 = arith.constant dense<0.000000e+00> : vector<256x128xf32>
    %41 = tpu.matmul %39, %40, %cst_37 {dimension_numbers = #tpu.dot_dimension_numbers<[1], [0], [0], [1], [0, 0, 1, 1], [], []>} : vector<256x256xbf16>, vector<256x128xbf16>, vector<256x128xf32> -> vector<256x128xf32>
    %cst_38 = arith.constant 0.899999976 : f32
    %42 = vector.broadcast %cst_38 : f32 to vector<256x128xf32>
    %43 = arith.mulf %42, %41 : vector<256x128xf32>
    %c0_39 = arith.constant 0 : index
    %c0_40 = arith.constant 0 : index
    %44 = vector.load %arg8[%c0_39, %c0_40] : memref<256x128xf32, #tpu.memory_space<vmem>>, vector<256x128xf32>
    %cst_41 = arith.constant 1.000000e-01 : f32
    %45 = vector.broadcast %cst_41 : f32 to vector<256x128xf32>
    %46 = arith.mulf %45, %44 : vector<256x128xf32>
    %47 = arith.addf %43, %46 : vector<256x128xf32>
    %48 = arith.truncf %47 : vector<256x128xf32> to vector<256x128xbf16>
    %c0_42 = arith.constant 0 : index
    %c0_43 = arith.constant 0 : index
    %49 = vector.load %arg7[%c0_42, %c0_43] : memref<256x128xbf16, #tpu.memory_space<vmem>>, vector<256x128xbf16>
    tpu.vector_store %arg7[%c0_42, %c0_43], %48 {strides = array<i32>} : memref<256x128xbf16, #tpu.memory_space<vmem>>, vector<256x128xbf16>,
    %c0_44 = arith.constant 0 : index
    %c0_45 = arith.constant 0 : index
    %50 = vector.load %arg5[%c0_44, %c0_45] : memref<256x256xbf16, #tpu.memory_space<vmem>>, vector<256x256xbf16>
    %c0_46 = arith.constant 0 : index
    %c0_47 = arith.constant 0 : index
    %51 = vector.load %arg7[%c0_46, %c0_47] : memref<256x128xbf16, #tpu.memory_space<vmem>>, vector<256x128xbf16>
    %cst_48 = arith.constant dense<0.000000e+00> : vector<256x128xf32>
    %52 = tpu.matmul %50, %51, %cst_48 {dimension_numbers = #tpu.dot_dimension_numbers<[1], [0], [0], [1], [0, 0, 1, 1], [], []>} : vector<256x256xbf16>, vector<256x128xbf16>, vector<256x128xf32> -> vector<256x128xf32>
    %cst_49 = arith.constant 0.899999976 : f32
    %53 = vector.broadcast %cst_49 : f32 to vector<256x128xf32>
    %54 = arith.mulf %53, %52 : vector<256x128xf32>
    %c0_50 = arith.constant 0 : index
    %c0_51 = arith.constant 0 : index
    %55 = vector.load %arg8[%c0_50, %c0_51] : memref<256x128xf32, #tpu.memory_space<vmem>>, vector<256x128xf32>
    %cst_52 = arith.constant 1.000000e-01 : f32
    %56 = vector.broadcast %cst_52 : f32 to vector<256x128xf32>
    %57 = arith.mulf %56, %55 : vector<256x128xf32>
    %58 = arith.addf %54, %57 : vector<256x128xf32>
    %59 = arith.truncf %58 : vector<256x128xf32> to vector<256x128xbf16>
    %c0_53 = arith.constant 0 : index
    %c0_54 = arith.constant 0 : index
    %60 = vector.load %arg7[%c0_53, %c0_54] : memref<256x128xbf16, #tpu.memory_space<vmem>>, vector<256x128xbf16>
    tpu.vector_store %arg7[%c0_53, %c0_54], %59 {strides = array<i32>} : memref<256x128xbf16, #tpu.memory_space<vmem>>, vector<256x128xbf16>,
    %c0_55 = arith.constant 0 : index
    %c0_56 = arith.constant 0 : index
    %61 = vector.load %arg5[%c0_55, %c0_56] : memref<256x256xbf16, #tpu.memory_space<vmem>>, vector<256x256xbf16>
    %c0_57 = arith.constant 0 : index
    %c0_58 = arith.constant 0 : index
    %62 = vector.load %arg7[%c0_57, %c0_58] : memref<256x128xbf16, #tpu.memory_space<vmem>>, vector<256x128xbf16>
    %cst_59 = arith.constant dense<0.000000e+00> : vector<256x128xf32>
    %63 = tpu.matmul %61, %62, %cst_59 {dimension_numbers = #tpu.dot_dimension_numbers<[1], [0], [0], [1], [0, 0, 1, 1], [], []>} : vector<256x256xbf16>, vector<256x128xbf16>, vector<256x128xf32> -> vector<256x128xf32>
    %cst_60 = arith.constant 0.899999976 : f32
    %64 = vector.broadcast %cst_60 : f32 to vector<256x128xf32>
    %65 = arith.mulf %64, %63 : vector<256x128xf32>
    %c0_61 = arith.constant 0 : index
    %c0_62 = arith.constant 0 : index
    %66 = vector.load %arg8[%c0_61, %c0_62] : memref<256x128xf32, #tpu.memory_space<vmem>>, vector<256x128xf32>
    %cst_63 = arith.constant 1.000000e-01 : f32
    %67 = vector.broadcast %cst_63 : f32 to vector<256x128xf32>
    %68 = arith.mulf %67, %66 : vector<256x128xf32>
    %69 = arith.addf %65, %68 : vector<256x128xf32>
    %70 = tpu.iota {dimensions = array<i32: 1>} : vector<256x128xi32>
    %c32_i32 = arith.constant 32 : i32
    %71 = vector.broadcast %c32_i32 : i32 to vector<256x128xi32>
    %72 = arith.cmpi slt, %70, %71 : vector<256x128xi32>
    %cst_64 = arith.constant -1.000000e+30 : f32
    %73 = vector.broadcast %cst_64 : f32 to vector<256x128xf32>
    %74 = arith.select %72, %69, %73 : vector<256x128xi1>, vector<256x128xf32>
    %cst_65 = arith.constant dense<0xFF800000> : vector<256xf32>
    %75 = vector.multi_reduction <maximumf>, %74, %cst_65 [1] : vector<256x128xf32> to vector<256xf32>
    %76 = vector.shape_cast %75 : vector<256xf32> to vector<256x1xf32>
    %77 = vector.broadcast %76 : vector<256x1xf32> to vector<256x128xf32>
    %78 = arith.subf %74, %77 : vector<256x128xf32>
    %79 = math.exp %78 : vector<256x128xf32>
    %cst_66 = arith.constant 0.000000e+00 : f32
    %80 = vector.broadcast %cst_66 : f32 to vector<256x128xf32>
    %81 = arith.select %72, %79, %80 : vector<256x128xi1>, vector<256x128xf32>
    %cst_67 = arith.constant dense<0.000000e+00> : vector<256xf32>
    %82 = vector.multi_reduction <add>, %81, %cst_67 [1] : vector<256x128xf32> to vector<256xf32>
    %83 = vector.shape_cast %82 : vector<256xf32> to vector<256x1xf32>
    %84 = vector.broadcast %76 : vector<256x1xf32> to vector<256x128xf32>
    %85 = arith.subf %74, %84 : vector<256x128xf32>
    %86 = math.log %83 : vector<256x1xf32>
    %87 = vector.broadcast %86 : vector<256x1xf32> to vector<256x128xf32>
    %88 = arith.subf %85, %87 : vector<256x128xf32>
    %cst_68 = arith.constant 0.000000e+00 : f32
    %89 = vector.broadcast %cst_68 : f32 to vector<256x128xf32>
    %90 = arith.select %72, %88, %89 : vector<256x128xi1>, vector<256x128xf32>
    %c0_69 = arith.constant 0 : index
    %c0_70 = arith.constant 0 : index
    %91 = vector.load %arg6[%c0_69, %c0_70] : memref<256x128xf32, #tpu.memory_space<vmem>>, vector<256x128xf32>
    tpu.vector_store %arg6[%c0_69, %c0_70], %90 {strides = array<i32>} : memref<256x128xf32, #tpu.memory_space<vmem>>, vector<256x128xf32>,
    return
  }
  func.func @transform_0(%arg0: i32) -> i32 {
    %c0_i32 = arith.constant 0 : i32
    %c0_i32_0 = arith.constant 0 : i32
    return %c0_i32 : i32
  }
  func.func @transform_1(%arg0: i32) -> (i32, i32) {
    %c0_i32 = arith.constant 0 : i32
    %c0_i32_0 = arith.constant 0 : i32
    %c0_i32_1 = arith.constant 0 : i32
    return %c0_i32, %c0_i32_0 : i32, i32
  }
  func.func @transform_2(%arg0: i32) -> (i32, i32) {
    %c0_i32 = arith.constant 0 : i32
    %c0_i32_0 = arith.constant 0 : i32
    %c0_i32_1 = arith.constant 0 : i32
    return %c0_i32, %c0_i32_0 : i32, i32
  }
  func.func @transform_3(%arg0: i32) -> (i32, i32) {
    %c0_i32 = arith.constant 0 : i32
    %c0_i32_0 = arith.constant 0 : i32
    %c0_i32_1 = arith.constant 0 : i32
    return %c0_i32, %c0_i32_0 : i32, i32
  }
  func.func @transform_4(%arg0: i32) -> (i32, i32) {
    %c0_i32 = arith.constant 0 : i32
    %c0_i32_0 = arith.constant 0 : i32
    %c0_i32_1 = arith.constant 0 : i32
    return %c0_i32, %c0_i32_0 : i32, i32
  }
  func.func @transform_5(%arg0: i32) -> (i32, i32) {
    %c0_i32 = arith.constant 0 : i32
    %c0_i32_0 = arith.constant 0 : i32
    %c0_i32_1 = arith.constant 0 : i32
    return %c0_i32, %c0_i32_0 : i32, i32
  }
}

</mosaic_0001>

<bundles_post_ra>
// kernel: tpu_custom_call.1
= control target key start
LH: loop header
LB: loop body
LE: loop exit
PB: predicated region body
PF: predicated region fallthrough
CT: control target
= control target key end

     0   :  { %11 = vsyncpa [#allocation6], 0  ;;  %s8083_s0 = inlined_call_operand.<no memory space> [shape: s32[1], index: 0, kind: input, shape index: {}]   ;;  %s8084_s1 = inlined_call_operand.hbm [shape: f32[256,128], index: 1, kind: input, shape index: {}]   ;;  %s8085_s2 = inlined_call_operand.hbm [shape: bf16[128,128], index: 2, kind: input, shape index: {}]   ;;  %s8086_s3 = inlined_call_operand.vmem [shape: f32[1,128], index: 3, kind: input, shape index: {}]   ;;  %s8087_s4 = inlined_call_operand.hbm [shape: bf16[256,256], index: 4, kind: input, shape index: {}]   ;;  %s8088_s5 = inlined_call_operand.hbm [shape: f32[256,128], index: 5, kind: output, shape index: {}]  }
   0x1   :  { %12 = vsyncpa [#allocation9], 0 }
   0x2   :  { %13 = vsyncpa [#allocation7], 0  ;;  %s6943_s18 = smov [#allocation8]  }
   0x3   :  { %s33_s0 = sshll.u32 %s6943_s18, 4  ;;  %s34_s0 = int_to_ptr.vmem [resolvable:$true] %s33_s0 }
   0x4   :  { %s6865_s19 = scalar_lea.vmem %s34_s0, 1024  ;;  %p6870_p1 = scmp.lt.s32.totalorder %s34_s0, %s34_s0 }
   0x5   :  { %p6866_p0 = scmp.ne.s32.totalorder %s34_s0, %s6865_s19  ;;  %p6871_p2 = scmp.lt.s32.totalorder %s6865_s19, %s6865_s19 }
   0x7   :  { %p6872_p3 = por %p6871_p2, %p6870_p1 }
   0x9   :  { %p6873_p4 = pnand %p6872_p3, %p6866_p0 }
   0xb   :  { %6876 = shalt.err (!%p6873_p4)
}
   0xc   :  { %s6944_s20 = smov 64   ;;  %s6945_s21 = smov 4  }
   0xd   :  { %39 = dma.hbm_to_vmem [thread:$0]  %s8085_s2, 1024, %s34_s0, [#allocation9], %s6944_s20, %s6944_s20, %s6945_s21  }
   0xe   :  { %s6946_s24 = smov [#allocation5]  }
   0xf   :  { %s21_s25 = sshll.u32 %s6946_s24, 4  ;;  %s22_s25 = int_to_ptr.vmem [resolvable:$true] %s21_s25 }
  0x10   :  { %s6885_s26 = scalar_lea.vmem %s22_s25, 4096  ;;  %p6890_p6 = scmp.lt.s32.totalorder %s22_s25, %s22_s25 }
  0x11   :  { %p6886_p5 = scmp.ne.s32.totalorder %s22_s25, %s6885_s26  ;;  %p6891_p7 = scmp.lt.s32.totalorder %s6885_s26, %s6885_s26 }
  0x13   :  { %p6892_p8 = por %p6891_p7, %p6890_p6 }
  0x15   :  { %p6893_p9 = pnand %p6892_p8, %p6886_p5 }
  0x17   :  { %6896 = shalt.err (!%p6893_p9)
}
  0x18   :  { %s6947_s27 = smov 128   ;;  %s6948_s28 = smov 8  }
  0x19   :  { %27 = dma.hbm_to_vmem [thread:$0]  %s8084_s1, 4096, %s22_s25, [#allocation6], %s6947_s27, %s6947_s27, %s6948_s28  }
  0x1a   :  { %s6949_s2 = smov [#allocation10]  }
  0x1b   :  { %s47_s6 = sshll.u32 %s6949_s2, 4  ;;  %s48_s6 = int_to_ptr.vmem [resolvable:$true] %s47_s6 }
  0x1c   :  { %s6905_s7 = scalar_lea.vmem %s48_s6, 4096  ;;  %p6910_p11 = scmp.lt.s32.totalorder %s48_s6, %s48_s6 }
  0x1d   :  { %p6906_p10 = scmp.ne.s32.totalorder %s48_s6, %s6905_s7  ;;  %p6911_p12 = scmp.lt.s32.totalorder %s6905_s7, %s6905_s7 }
  0x1f   :  { %p6912_p13 = por %p6911_p12, %p6910_p11 }
  0x21   :  { %p6913_p0 = pnand %p6912_p13, %p6906_p10 }
  0x23   :  { %6916 = shalt.err (!%p6913_p0)
}
  0x24   :  { %53 = dma.hbm_to_vmem [thread:$0]  %s8087_s4, 4096, %s48_s6, [#allocation9], %s6947_s27, %s6947_s27, %s6948_s28  }
  0x25   :  { %6937 = dma.done.wait [#allocation6], 4096  }
  0x26   :  { %6938 = vsyncadd [#allocation6], 4294963200 }
  0x27   :  { %6939 = dma.done.wait [#allocation9], 5120  }
  0x28   :  { %6940 = vsyncadd [#allocation9], 4294962176  ;;  %v6496_v0 = vld [vmem:[#allocation8 + $0x38] sm:$0xff]   ;;  %v6497_v1 = vld [vmem:[#allocation8 + $0x30] sm:$0xff]   ;;  %v6950_v50 = vmov 0.0|0.0  }
  0x29   :  { %6422 = vmatprep.subr.bf16.mxu0 %v6496_v0  ;;  %v6498_v2 = vld [vmem:[#allocation8 + $0x28] sm:$0xff]   ;;  %v6499_v3 = vld [vmem:[#allocation8 + $0x20] sm:$0xff]   ;;  %v6500_v7 = vld [vmem:[#allocation8 + $0x18] sm:$0xff]   ;;  %v4854_v51 = vcombine.low %v6950_v50, %v6950_v50  ;;  %v4855_v52 = vcombine.high %v6950_v50, %v6950_v50 }
  0x2a   :  { %6423 = vmatpush3.bf16.msra.mxu0 %v6496_v0  ;;  %v64_v4 = vld [vmem:[#allocation5] sm:$0xff]  ;;  %v65_v5 = vld [vmem:[#allocation5 + $0x8] sm:$0xff]  ;;  %v6501_v8 = vld [vmem:[#allocation8 + $0x10] sm:$0xff]  }
  0x2b   :  { %6424 = vmatprep.subr.bf16.mxu0 %v6497_v1  ;;  %v96_v6 = vpack.c.bf16 %v65_v5, %v64_v4  ;;  %v6502_v9 = vld [vmem:[#allocation8 + $0x8] sm:$0xff]   ;;  %v6503_v10 = vld [vmem:[#allocation8] sm:$0xff]   ;;  %v66_v11 = vld [vmem:[#allocation5 + $0x10] sm:$0xff]  ;;  %663 = vst [vmem:[#allocation2 + $0x78] sm:$0xf] %v4854_v51 }
  0x2c   :  { %v67_v12 = vld [vmem:[#allocation5 + $0x18] sm:$0xff]  ;;  %v68_v13 = vld [vmem:[#allocation5 + $0x20] sm:$0xff]  ;;  %v69_v14 = vld [vmem:[#allocation5 + $0x28] sm:$0xff]  ;;  %664 = vst [vmem:[#allocation2 + $0x7c] sm:$0xf] %v4855_v52 }
  0x2d   :  { %6438 = vmatprep.mubr.bf16.mxu0 %v96_v6  ;;  %v97_v15 = vpack.c.bf16 %v67_v12, %v66_v11  ;;  %v98_v16 = vpack.c.bf16 %v69_v14, %v68_v13  ;;  %v70_v17 = vld [vmem:[#allocation5 + $0x30] sm:$0xff]  ;;  %v71_v18 = vld [vmem:[#allocation5 + $0x38] sm:$0xff]  ;;  %v72_v19 = vld [vmem:[#allocation5 + $0x40] sm:$0xff]  ;;  %659 = vst [vmem:[#allocation2 + $0x68] sm:$0xf] %v4854_v51 }
  0x2e   :  { %6425 = vmatpush3.bf16.msra.mxu0 %v6497_v1  ;;  %v73_v20 = vld [vmem:[#allocation5 + $0x48] sm:$0xff]  ;;  %v99_v21 = vpack.c.bf16 %v71_v18, %v70_v17  ;;  %v74_v23 = vld [vmem:[#allocation5 + $0x50] sm:$0xff]  ;;  %v75_v24 = vld [vmem:[#allocation5 + $0x58] sm:$0xff]  ;;  %660 = vst [vmem:[#allocation2 + $0x6c] sm:$0xf] %v4855_v52 }
  0x2f   :  { %6426 = vmatprep.subr.bf16.mxu0 %v6498_v2  ;;  %v100_v22 = vpack.c.bf16 %v73_v20, %v72_v19  ;;  %v76_v25 = vld [vmem:[#allocation5 + $0x60] sm:$0xff]  ;;  %v77_v26 = vld [vmem:[#allocation5 + $0x68] sm:$0xff]  ;;  %v101_v27 = vpack.c.bf16 %v75_v24, %v74_v23  ;;  %v78_v29 = vld [vmem:[#allocation5 + $0x70] sm:$0xff]  ;;  %661 = vst [vmem:[#allocation2 + $0x70] sm:$0xf] %v4854_v51 }
  0x30   :  { %v102_v28 = vpack.c.bf16 %v77_v26, %v76_v25  ;;  %v79_v30 = vld [vmem:[#allocation5 + $0x78] sm:$0xff]  ;;  %v80_v31 = vld [vmem:[#allocation5 + $0x80] sm:$0xff]  ;;  %v81_v32 = vld [vmem:[#allocation5 + $0x88] sm:$0xff]  ;;  %662 = vst [vmem:[#allocation2 + $0x74] sm:$0xf] %v4855_v52 }
  0x31   :  { %v103_v33 = vpack.c.bf16 %v79_v30, %v78_v29  ;;  %v104_v34 = vpack.c.bf16 %v81_v32, %v80_v31  ;;  %v82_v35 = vld [vmem:[#allocation5 + $0x90] sm:$0xff]  ;;  %v83_v36 = vld [vmem:[#allocation5 + $0x98] sm:$0xff]  ;;  %v84_v37 = vld [vmem:[#allocation5 + $0xa0] sm:$0xff] }
  0x32   :  { %6427 = vmatpush3.bf16.msra.mxu0 %v6498_v2  ;;  %v85_v38 = vld [vmem:[#allocation5 + $0xa8] sm:$0xff]  ;;  %v105_v39 = vpack.c.bf16 %v83_v36, %v82_v35  ;;  %v86_v41 = vld [vmem:[#allocation5 + $0xb0] sm:$0xff]  ;;  %v87_v42 = vld [vmem:[#allocation5 + $0xb8] sm:$0xff] }
  0x33   :  { %6428 = vmatprep.subr.bf16.mxu0 %v6499_v3  ;;  %v106_v40 = vpack.c.bf16 %v85_v38, %v84_v37  ;;  %v88_v43 = vld [vmem:[#allocation5 + $0xc0] sm:$0xff]  ;;  %v89_v44 = vld [vmem:[#allocation5 + $0xc8] sm:$0xff]  ;;  %v107_v45 = vpack.c.bf16 %v87_v42, %v86_v41  ;;  %v90_v47 = vld [vmem:[#allocation5 + $0xd0] sm:$0xff] }
  0x34   :  { %v108_v46 = vpack.c.bf16 %v89_v44, %v88_v43  ;;  %v91_v48 = vld [vmem:[#allocation5 + $0xd8] sm:$0xff]  ;;  %v92_v54 = vld [vmem:[#allocation5 + $0xe0] sm:$0xff]  ;;  %v93_v55 = vld [vmem:[#allocation5 + $0xe8] sm:$0xff] }
  0x35   :  { %v109_v49 = vpack.c.bf16 %v91_v48, %v90_v47  ;;  %v6504_v53 = vld [vmem:[#allocation2 + $0x78] sm:$0xff]   ;;  %v110_v56 = vpack.c.bf16 %v93_v55, %v92_v54  ;;  %v94_v57 = vld [vmem:[#allocation5 + $0xf0] sm:$0xff]  ;;  %v6998_v60 = vld [vmem:[#allocation10 + $0x4] ss:$8 sps:$4 sm:$0xff]  }
  0x36   :  { %6429 = vmatpush3.bf16.msra.mxu0 %v6499_v3  ;;  %6470 = vmatprep.subr.bf16.mxu1 %v6504_v53  ;;  %v95_v58 = vld [vmem:[#allocation5 + $0xf8] sm:$0xff]  ;;  %v6525_v61 = vld [vmem:[#allocation10 + $0x44] ss:$8 sps:$4 sm:$0xff]   ;;  %v7004_v63 = vld [vmem:[%s8086_s3] ss:$0 sm:$0xff]  ;;  %s6952_s3 = smov [#allocation11]  }
  0x37   :  { %6430 = vmatprep.subr.bf16.mxu0 %v6500_v7  ;;  %v111_v59 = vpack.c.bf16 %v95_v58, %v94_v57  ;;  %1049 = vmatprep.mubr.bf16.mxu1 %v6525_v61  ;;  %s4806_s10 = sshll.u32 %s6952_s3, 4  ;;  %s4807_s10 = int_to_ptr.vmem [resolvable:$true] %s4806_s10 }
  0x38   :  { %s6917_s11 = scalar_lea.vmem %s4807_s10, 4096  ;;  %p6922_p2 = scmp.lt.s32.totalorder %s4807_s10, %s4807_s10 }
  0x39   :  { %p6918_p1 = scmp.ne.s32.totalorder %s4807_s10, %s6917_s11  ;;  %p6923_p3 = scmp.lt.s32.totalorder %s6917_s11, %s6917_s11 }
  0x3a   :  { %6431 = vmatpush3.bf16.msra.mxu0 %v6500_v7 }
  0x3b   :  { %6432 = vmatprep.subr.bf16.mxu0 %v6501_v8  ;;  %p6924_p4 = por %p6923_p3, %p6922_p2 }
  0x3d   :  { %p6925_p5 = pnand %p6924_p4, %p6918_p1 }
  0x3e   :  { %6433 = vmatpush3.bf16.msra.mxu0 %v6501_v8 }
  0x3f   :  { %6434 = vmatprep.subr.bf16.mxu0 %v6502_v9 }
  0x42   :  { %6435 = vmatpush3.bf16.msra.mxu0 %v6502_v9 }
  0x43   :  { %6436 = vmatprep.subr.bf16.mxu0 %v6503_v10 }
  0x46   :  { %6437 = vmatpush3.bf16.msra.mxu0 %v6503_v10 }
  0x47   :  { %5862 = vmatprep.subr.bf16.mxu0 %v6504_v53 }
  0x49   :  { %6439 = vmatmul.mubr.bf16.vlgmr.msra.gmra.mxu0 %v97_v15 }
  0x4a   :  { %6442 = vmatprep.mubr.bf16.mxu0 %v98_v16 }
  0x51   :  { %6443 = vmatmul.mubr.bf16.gmra.mxu0 %v99_v21 }
  0x52   :  { %6446 = vmatprep.mubr.bf16.mxu0 %v100_v22 }
  0x59   :  { %6447 = vmatmul.mubr.bf16.gmra.mxu0 %v101_v27 }
  0x5a   :  { %6450 = vmatprep.mubr.bf16.mxu0 %v102_v28 }
  0x61   :  { %6451 = vmatmul.mubr.bf16.gmra.mxu0 %v103_v33 }
  0x62   :  { %6454 = vmatprep.mubr.bf16.mxu0 %v104_v34 }
  0x69   :  { %6455 = vmatmul.mubr.bf16.gmra.mxu0 %v105_v39 }
  0x6a   :  { %6458 = vmatprep.mubr.bf16.mxu0 %v106_v40 }
  0x71   :  { %6459 = vmatmul.mubr.bf16.gmra.mxu0 %v107_v45 }
  0x72   :  { %6462 = vmatprep.mubr.bf16.mxu0 %v108_v46 }
  0x79   :  { %6463 = vmatmul.mubr.bf16.gmra.mxu0 %v109_v49 }
  0x7a   :  { %6466 = vmatprep.mubr.bf16.mxu0 %v110_v56 }
  0x81   :  { %6467 = vmatmul.mubr.bf16.gmra.mxu0 %v111_v59 }
  0x82   :  { %1017 = vmatprep.mubr.bf16.mxu0 %v6998_v60 }
 0x109   :  { %v6440_v62 = vpop.f32.mrf.mxu0 }
 0x10a   :  { %v7007_v1 = vadd.f32 %v6440_v62, %v7004_v63 }
 0x10b   :  { %v217_v0 = vpop.f32.mrf.mxu0 }
 0x10c   :  { %v7010_v3 = vadd.f32 %v7004_v63, %v217_v0  ;;  %v8109_v6 = vmax.f32 %v7007_v1, 0.0 }
 0x10d   :  { %v6441_v2 = vpop.f32.mrf.mxu0 }
 0x10e   :  { %v7013_v4 = vadd.f32 %v6441_v2, %v7004_v63  ;;  %v8113_v10 = vmax.f32 %v7010_v3, 0.0 }
 0x10f   :  { %v220_v5 = vpop.f32.mrf.mxu0 }
 0x110   :  { %v8108_v7 = vmax.f32 %v7013_v4, 0.0  ;;  %v7018_v8 = vadd.f32 %v7004_v63, %v220_v5 }
 0x111   :  { %v6444_v9 = vpop.f32.mrf.mxu0 }
 0x112   :  { %v5390_v11 = vpack.c.bf16 %v8108_v7, %v8109_v6  ;;  %v8112_v12 = vmax.f32 %v7018_v8, 0.0  ;;  %v7031_v15 = vadd.f32 %v6444_v9, %v7004_v63 }
 0x113   :  { %v233_v13 = vpop.f32.mrf.mxu0 }
 0x114   :  { %5766 = vst [vmem:[#allocation2 + $0x8] sm:$0xff] %v5390_v11   ;;  %v5385_v14 = vpack.c.bf16 %v8112_v12, %v8113_v10  ;;  %v7034_v17 = vadd.f32 %v7004_v63, %v233_v13  ;;  %v8101_v20 = vmax.f32 %v7031_v15, 0.0 }
 0x115   :  { %v6445_v16 = vpop.f32.mrf.mxu0 }
 0x116   :  { %5386 = vst [vmem:[#allocation2] sm:$0xff] %v5385_v14   ;;  %v7037_v18 = vadd.f32 %v6445_v16, %v7004_v63  ;;  %v8105_v24 = vmax.f32 %v7034_v17, 0.0  ;;  %v6506_v16 = vld [vmem:[#allocation2 + $0x70] sm:$0xff]  }
 0x117   :  { %v236_v19 = vpop.f32.mrf.mxu0 }
 0x118   :  { %v8100_v21 = vmax.f32 %v7037_v18, 0.0  ;;  %v7042_v22 = vadd.f32 %v7004_v63, %v236_v19 }
 0x119   :  { %v6448_v23 = vpop.f32.mrf.mxu0 }
 0x11a   :  { %v5400_v25 = vpack.c.bf16 %v8100_v21, %v8101_v20  ;;  %v8104_v26 = vmax.f32 %v7042_v22, 0.0  ;;  %v7055_v29 = vadd.f32 %v6448_v23, %v7004_v63  ;;  %v7226_v21 = vld [vmem:[#allocation10 + $0xc0] ss:$8 sps:$4 sm:$0xff]  }
 0x11b   :  { %v249_v27 = vpop.f32.mrf.mxu0  ;;  %8153 = vst [vmem:[#allocation21_spill] sm:$0xff] %v7226_v21 }
 0x11c   :  { %5768 = vst [vmem:[#allocation2 + $0x18] sm:$0xff] %v5400_v25   ;;  %v5395_v28 = vpack.c.bf16 %v8104_v26, %v8105_v24  ;;  %v7058_v31 = vadd.f32 %v7004_v63, %v249_v27  ;;  %v8107_v34 = vmax.f32 %v7055_v29, 0.0  ;;  %v7232_v26 = vld [vmem:[#allocation10 + $0xd0] ss:$8 sps:$4 sm:$0xff]   ;;  %v7234_v24 = vld [vmem:[#allocation10 + $0xe4] ss:$8 sps:$4 sm:$0xff]  }
 0x11d   :  { %v6449_v30 = vpop.f32.mrf.mxu0  ;;  %8155 = vst [vmem:[#allocation23_spill] sm:$0xff] %v7232_v26  ;;  %8156 = vst [vmem:[#allocation24_spill] sm:$0xff] %v7234_v24 }
 0x11e   :  { %5767 = vst [vmem:[#allocation2 + $0x10] sm:$0xff] %v5395_v28   ;;  %v7061_v32 = vadd.f32 %v6449_v30, %v7004_v63  ;;  %v8111_v38 = vmax.f32 %v7058_v31, 0.0 }
 0x11f   :  { %v252_v33 = vpop.f32.mrf.mxu0 }
 0x120   :  { %v8106_v35 = vmax.f32 %v7061_v32, 0.0  ;;  %v7066_v36 = vadd.f32 %v7004_v63, %v252_v33 }
 0x121   :  { %v6452_v37 = vpop.f32.mrf.mxu0 }
 0x122   :  { %v5410_v39 = vpack.c.bf16 %v8106_v35, %v8107_v34  ;;  %v8110_v40 = vmax.f32 %v7066_v36, 0.0  ;;  %v7079_v43 = vadd.f32 %v6452_v37, %v7004_v63  ;;  %v6508_v37 = vld [vmem:[#allocation2 + $0x68] sm:$0xff]  }
 0x123   :  { %v265_v41 = vpop.f32.mrf.mxu0 }
 0x124   :  { %5770 = vst [vmem:[#allocation2 + $0x28] sm:$0xff] %v5410_v39   ;;  %v5405_v42 = vpack.c.bf16 %v8110_v40, %v8111_v38  ;;  %v7082_v45 = vadd.f32 %v7004_v63, %v265_v41  ;;  %v8099_v48 = vmax.f32 %v7079_v43, 0.0 }
 0x125   :  { %v6453_v44 = vpop.f32.mrf.mxu0 }
 0x126   :  { %5769 = vst [vmem:[#allocation2 + $0x20] sm:$0xff] %v5405_v42   ;;  %v7085_v46 = vadd.f32 %v6453_v44, %v7004_v63  ;;  %v8103_v52 = vmax.f32 %v7082_v45, 0.0 }
 0x127   :  { %v268_v47 = vpop.f32.mrf.mxu0 }
 0x128   :  { %v8098_v49 = vmax.f32 %v7085_v46, 0.0  ;;  %v7090_v50 = vadd.f32 %v7004_v63, %v268_v47 }
 0x129   :  { %v6456_v51 = vpop.f32.mrf.mxu0 }
 0x12a   :  { %v5420_v53 = vpack.c.bf16 %v8098_v49, %v8099_v48  ;;  %v8102_v54 = vmax.f32 %v7090_v50, 0.0  ;;  %v7103_v57 = vadd.f32 %v6456_v51, %v7004_v63 }
 0x12b   :  { %v281_v55 = vpop.f32.mrf.mxu0 }
 0x12c   :  { %5772 = vst [vmem:[#allocation2 + $0x38] sm:$0xff] %v5420_v53   ;;  %v5415_v56 = vpack.c.bf16 %v8102_v54, %v8103_v52  ;;  %v7106_v59 = vadd.f32 %v7004_v63, %v281_v55  ;;  %v8095_v0 = vmax.f32 %v7103_v57, 0.0  ;;  %v7228_v54 = vld [vmem:[#allocation10 + $0xd4] ss:$8 sps:$4 sm:$0xff]  }
 0x12d   :  { %v6457_v58 = vpop.f32.mrf.mxu0  ;;  %8154 = vst [vmem:[#allocation22_spill] sm:$0xff] %v7228_v54 }
 0x12e   :  { %5771 = vst [vmem:[#allocation2 + $0x30] sm:$0xff] %v5415_v56   ;;  %v7109_v61 = vadd.f32 %v6457_v58, %v7004_v63  ;;  %v8097_v11 = vmax.f32 %v7106_v59, 0.0 }
 0x12f   :  { %v284_v62 = vpop.f32.mrf.mxu0 }
 0x130   :  { %v8094_v2 = vmax.f32 %v7109_v61, 0.0  ;;  %v7114_v5 = vadd.f32 %v7004_v63, %v284_v62  ;;  %v6509_v62 = vld [vmem:[#allocation2 + $0x28] sm:$0xff]  }
 0x131   :  { %v6460_v9 = vpop.f32.mrf.mxu0 }
 0x132   :  { %v5430_v13 = vpack.c.bf16 %v8094_v2, %v8095_v0  ;;  %v8096_v14 = vmax.f32 %v7114_v5, 0.0  ;;  %v7127_v27 = vadd.f32 %v6460_v9, %v7004_v63  ;;  %v7210_v2 = vld [vmem:[#allocation10 + $0xa4] ss:$8 sps:$4 sm:$0xff]   ;;  %v7214_v0 = vld [vmem:[#allocation10 + $0xa0] ss:$8 sps:$4 sm:$0xff]  }
 0x133   :  { %v297_v19 = vpop.f32.mrf.mxu0  ;;  %v6505_v23 = vld [vmem:[#allocation2 + $0x38] sm:$0xff]   ;;  %8148 = vst [vmem:[#allocation16_spill] sm:$0xff] %v7210_v2  ;;  %8149 = vst [vmem:[#allocation17_spill] sm:$0xff] %v7214_v0 }
 0x134   :  { %5774 = vst [vmem:[#allocation2 + $0x48] sm:$0xff] %v5430_v13   ;;  %v5425_v25 = vpack.c.bf16 %v8096_v14, %v8097_v11  ;;  %5863 = vmatpush3.bf16.msra.mxu0 %v6505_v23  ;;  %6478 = vmatpush3.bf16.msra.mxu1 %v6505_v23  ;;  %v7130_v30 = vadd.f32 %v7004_v63, %v297_v19  ;;  %v8091_v42 = vmax.f32 %v7127_v27, 0.0  ;;  %v7216_v14 = vld [vmem:[#allocation10 + $0xb4] ss:$8 sps:$4 sm:$0xff]   ;;  %v7222_v11 = vld [vmem:[#allocation10 + $0xc4] ss:$8 sps:$4 sm:$0xff]  }
 0x135   :  { %v6461_v28 = vpop.f32.mrf.mxu0  ;;  %5864 = vmatprep.subr.bf16.mxu0 %v6506_v16  ;;  %6471 = vmatprep.subr.bf16.mxu1 %v6506_v16  ;;  %v6507_v41 = vld [vmem:[#allocation2 + $0x30] sm:$0xff]   ;;  %8150 = vst [vmem:[#allocation18_spill] sm:$0xff] %v7216_v14  ;;  %8152 = vst [vmem:[#allocation20_spill] sm:$0xff] %v7222_v11 }
 0x136   :  { %5773 = vst [vmem:[#allocation2 + $0x40] sm:$0xff] %v5425_v25   ;;  %v7133_v33 = vadd.f32 %v6461_v28, %v7004_v63  ;;  %v8093_v53 = vmax.f32 %v7130_v30, 0.0  ;;  %v6951_v25 = vmov 0.0  }
 0x137   :  { %v300_v39 = vpop.f32.mrf.mxu0 }
 0x138   :  { %v8090_v44 = vmax.f32 %v7133_v33, 0.0  ;;  %v7138_v47 = vadd.f32 %v7004_v63, %v300_v39  ;;  %5865 = vmatpush3.bf16.msra.mxu0 %v6507_v41  ;;  %6479 = vmatpush3.bf16.msra.mxu1 %v6507_v41  ;;  %v6511_v39 = vld [vmem:[#allocation2 + $0x20] sm:$0xff]  }
 0x139   :  { %v6464_v51 = vpop.f32.mrf.mxu0  ;;  %5866 = vmatprep.subr.bf16.mxu0 %v6508_v37  ;;  %6472 = vmatprep.subr.bf16.mxu1 %v6508_v37 }
 0x13a   :  { %v5440_v55 = vpack.c.bf16 %v8090_v44, %v8091_v42  ;;  %v8092_v56 = vmax.f32 %v7138_v47, 0.0  ;;  %v7196_v44 = vld [vmem:[#allocation10 + $0x84] ss:$8 sps:$4 sm:$0xff]   ;;  %v7202_v42 = vld [vmem:[#allocation10 + $0x80] ss:$8 sps:$4 sm:$0xff]  }
 0x13b   :  { %v313_v58 = vpop.f32.mrf.mxu0 }
 0x13c   :  { %5776 = vst [vmem:[#allocation2 + $0x58] sm:$0xff] %v5440_v55   ;;  %v5435_v9 = vpack.c.bf16 %v8092_v56, %v8093_v53  ;;  %v7151_v13 = vadd.f32 %v7004_v63, %v313_v58  ;;  %5867 = vmatpush3.bf16.msra.mxu0 %v6509_v62  ;;  %6480 = vmatpush3.bf16.msra.mxu1 %v6509_v62  ;;  %v6513_v63 = vld [vmem:[#allocation2 + $0x18] sm:$0xff]   ;;  %v6515_v55 = vld [vmem:[#allocation2 + $0x10] sm:$0xff]   ;;  %v6516_v58 = vld [vmem:[#allocation2 + $0x48] sm:$0xff]  }
 0x13d   :  { %v6465_v16 = vpop.f32.mrf.mxu0  ;;  %v6517_v62 = vld [vmem:[#allocation2 + $0x8] sm:$0xff]   ;;  %v7204_v56 = vld [vmem:[#allocation10 + $0x94] ss:$8 sps:$4 sm:$0xff]   ;;  %v7208_v53 = vld [vmem:[#allocation10 + $0x90] ss:$8 sps:$4 sm:$0xff]  }
 0x13e   :  { %5775 = vst [vmem:[#allocation2 + $0x50] sm:$0xff] %v5435_v9   ;;  %v8089_v19 = vmax.f32 %v7151_v13, 0.0  ;;  %v6518_v9 = vld [vmem:[#allocation2 + $0x40] sm:$0xff]   ;;  %8147 = vst [vmem:[#allocation15_spill] sm:$0xff] %v7208_v53 }
 0x13f   :  { %v316_v23 = vpop.f32.mrf.mxu0  ;;  %v6519_v16 = vld [vmem:[#allocation2] sm:$0xff]  }
 0x140   :  { %v5444_v28 = vpack.c.bf16 %v6951_v25, %v8089_v19  ;;  %v7156_v23 = vld [vmem:[#allocation10] ss:$8 sps:$4 sm:$0xff]   ;;  %v7194_v19 = vld [vmem:[#allocation10 + $0x70] ss:$8 sps:$4 sm:$0xff]  }
 0x141   :  { %v7158_v25 = vld [vmem:[#allocation10 + $0x40] ss:$8 sps:$4 sm:$0xff]   ;;  %v6468_v49 = vpop.f32.mrf.mxu0 }
 0x142   :  { %5777 = vst [vmem:[#allocation2 + $0x60] sm:$0xff] %v5444_v28   ;;  %v7160_v28 = vld [vmem:[#allocation10 + $0x14] ss:$8 sps:$4 sm:$0xff]   ;;  %v7238_v49 = vld [vmem:[#allocation10 + $0xe0] ss:$8 sps:$4 sm:$0xff]  }
 0x143   :  { %v6512_v41 = vld [vmem:[#allocation2 + $0x58] sm:$0xff]   ;;  %v329_v48 = vpop.f32.mrf.mxu0  ;;  %8157 = vst [vmem:[#allocation25_spill] sm:$0xff] %v7238_v49 }
 0x144   :  { %v7240_v48 = vld [vmem:[#allocation10 + $0xf4] ss:$8 sps:$4 sm:$0xff]  }
 0x145   :  { %v6514_v51 = vld [vmem:[#allocation2 + $0x50] sm:$0xff]   ;;  %v6469_v20 = vpop.f32.mrf.mxu0  ;;  %8158 = vst [vmem:[#allocation26_spill] sm:$0xff] %v7240_v48 }
 0x146   :  { %v7244_v20 = vld [vmem:[#allocation10 + $0xf0] ss:$8 sps:$4 sm:$0xff]  }
 0x147   :  { %v332_v52 = vpop.f32.mrf.mxu0  ;;  %8159 = vst [vmem:[#allocation27_spill] sm:$0xff] %v7244_v20 }
 0x149   :  { %v6510_v37 = vld [vmem:[#allocation2 + $0x60] sm:$0xff]  }
 0x14a   :  { %5868 = vmatprep.subr.bf16.mxu0 %v6510_v37  ;;  %6473 = vmatprep.subr.bf16.mxu1 %v6510_v37  ;;  %v7162_v37 = vld [vmem:[#allocation10 + $0x54] ss:$8 sps:$4 sm:$0xff]  }
 0x14b   :  { %5869 = vmatpush3.bf16.msra.mxu0 %v6511_v39  ;;  %6481 = vmatpush3.bf16.msra.mxu1 %v6511_v39  ;;  %v7168_v39 = vld [vmem:[#allocation10 + $0x10] ss:$8 sps:$4 sm:$0xff]  }
 0x14c   :  { %5870 = vmatprep.subr.bf16.mxu0 %v6512_v41  ;;  %6474 = vmatprep.subr.bf16.mxu1 %v6512_v41  ;;  %v7170_v41 = vld [vmem:[#allocation10 + $0x50] ss:$8 sps:$4 sm:$0xff]  }
 0x14f   :  { %5871 = vmatpush3.bf16.msra.mxu0 %v6513_v63  ;;  %6482 = vmatpush3.bf16.msra.mxu1 %v6513_v63  ;;  %v7172_v63 = vld [vmem:[#allocation10 + $0x24] ss:$8 sps:$4 sm:$0xff]  }
 0x150   :  { %5872 = vmatprep.subr.bf16.mxu0 %v6514_v51  ;;  %6475 = vmatprep.subr.bf16.mxu1 %v6514_v51  ;;  %v7174_v51 = vld [vmem:[#allocation10 + $0x64] ss:$8 sps:$4 sm:$0xff]  }
 0x153   :  { %5873 = vmatpush3.bf16.msra.mxu0 %v6515_v55  ;;  %6483 = vmatpush3.bf16.msra.mxu1 %v6515_v55  ;;  %v7180_v55 = vld [vmem:[#allocation10 + $0x20] ss:$8 sps:$4 sm:$0xff]  }
 0x154   :  { %5874 = vmatprep.subr.bf16.mxu0 %v6516_v58  ;;  %6476 = vmatprep.subr.bf16.mxu1 %v6516_v58  ;;  %v7182_v58 = vld [vmem:[#allocation10 + $0x60] ss:$8 sps:$4 sm:$0xff]  }
 0x157   :  { %5875 = vmatpush3.bf16.msra.mxu0 %v6517_v62  ;;  %6484 = vmatpush3.bf16.msra.mxu1 %v6517_v62  ;;  %v7184_v62 = vld [vmem:[#allocation10 + $0x34] ss:$8 sps:$4 sm:$0xff]  }
 0x158   :  { %5876 = vmatprep.subr.bf16.mxu0 %v6518_v9  ;;  %6477 = vmatprep.subr.bf16.mxu1 %v6518_v9  ;;  %v7186_v9 = vld [vmem:[#allocation10 + $0x74] ss:$8 sps:$4 sm:$0xff]  }
 0x15b   :  { %5877 = vmatpush3.bf16.msra.mxu0 %v6519_v16  ;;  %6485 = vmatpush3.bf16.msra.mxu1 %v6519_v16  ;;  %v7192_v16 = vld [vmem:[#allocation10 + $0x30] ss:$8 sps:$4 sm:$0xff]  }
 0x15e   :  { %1018 = vmatmul.mubr.bf16.vlgmr.msra.gmra.mxu0 %v7156_v23  ;;  %1050 = vmatmul.mubr.bf16.vlgmr.msra.gmra.mxu1 %v7158_v25 }
 0x15f   :  { %1025 = vmatprep.mubr.bf16.mxu0 %v7160_v28  ;;  %1057 = vmatprep.mubr.bf16.mxu1 %v7162_v37 }
 0x166   :  { %1026 = vmatmul.mubr.bf16.gmra.mxu0 %v7168_v39  ;;  %1058 = vmatmul.mubr.bf16.gmra.mxu1 %v7170_v41 }
 0x167   :  { %1033 = vmatprep.mubr.bf16.mxu0 %v7172_v63  ;;  %1065 = vmatprep.mubr.bf16.mxu1 %v7174_v51 }
 0x16e   :  { %1034 = vmatmul.mubr.bf16.gmra.mxu0 %v7180_v55  ;;  %1066 = vmatmul.mubr.bf16.gmra.mxu1 %v7182_v58 }
 0x16f   :  { %1041 = vmatprep.mubr.bf16.mxu0 %v7184_v62  ;;  %1073 = vmatprep.mubr.bf16.mxu1 %v7186_v9 }
 0x176   :  { %1042 = vmatmul.mubr.bf16.gmra.mxu0 %v7192_v16  ;;  %1074 = vmatmul.mubr.bf16.gmra.mxu1 %v7194_v19 }
 0x177   :  { %1081 = vmatprep.mubr.bf16.mxu1 %v7196_v44  ;;  %1786 = vmatprep.mubr.bf16.mxu0 %v6998_v60  ;;  %v7220_v60 = vld [vmem:[#allocation10 + $0xb0] ss:$8 sps:$4 sm:$0xff]  }
 0x178   :  { %8151 = vst [vmem:[#allocation19_spill] sm:$0xff] %v7220_v60 }
 0x17e   :  { %1082 = vmatmul.mubr.bf16.gmra.mxu1 %v7202_v42 }
 0x17f   :  { %1089 = vmatprep.mubr.bf16.mxu1 %v7204_v56 }
 0x186   :  { %1090 = vmatmul.mubr.bf16.gmra.mxu1 %v7208_v53 }
 0x187   :  { %1097 = vmatprep.mubr.bf16.mxu1 %v7210_v2 }
 0x18e   :  { %1098 = vmatmul.mubr.bf16.gmra.mxu1 %v7214_v0 }
 0x18f   :  { %1105 = vmatprep.mubr.bf16.mxu1 %v7216_v14  ;;  %v8163_v14 = vmax.f32 %v7058_v31, 0.0 }
 0x196   :  { %1106 = vmatmul.mubr.bf16.gmra.mxu1 %v7220_v60 }
 0x197   :  { %1113 = vmatprep.mubr.bf16.mxu1 %v7222_v11 }
 0x19e   :  { %1114 = vmatmul.mubr.bf16.gmra.mxu1 %v7226_v21 }
 0x19f   :  { %1121 = vmatprep.mubr.bf16.mxu1 %v7228_v54 }
 0x1a6   :  { %1122 = vmatmul.mubr.bf16.gmra.mxu1 %v7232_v26 }
 0x1a7   :  { %1129 = vmatprep.mubr.bf16.mxu1 %v7234_v24 }
 0x1ae   :  { %1130 = vmatmul.mubr.bf16.gmra.mxu1 %v7238_v49 }
 0x1af   :  { %1137 = vmatprep.mubr.bf16.mxu1 %v7240_v48  ;;  %v8160_v48 = vmax.f32 %v7010_v3, 0.0 }
 0x1b1   :  { %v7249_v11 = vmul.f32 0.1, %v8160_v48 }
 0x1b3   :  { %8161 = vst [vmem:[#allocation28_spill] sm:$0xff] %v7249_v11 }
 0x1b6   :  { %1138 = vmatmul.mubr.bf16.gmra.mxu1 %v7244_v20  ;;  %v8162_v20 = vmax.f32 %v7018_v8, 0.0 }
 0x1b8   :  { %v7253_v60 = vmul.f32 0.1, %v8162_v20 }
 0x21e   :  { %v5878_v52 = vpop.f32.mrf.mxu0  ;;  %v5902_v35 = vpop.f32.mrf.mxu1 }
 0x220   :  { %v5879_v34 = vpop.f32.mrf.mxu0  ;;  %v5903_v7 = vpop.f32.mrf.mxu1 }
 0x221   :  { %v5880_v6 = vadd.f32 %v5879_v34, %v5878_v52  ;;  %v5904_v40 = vadd.f32 %v5903_v7, %v5902_v35  ;;  %v7257_v34 = vmul.f32 0.1, %v8163_v14 }
 0x222   :  { %v5881_v38 = vpop.f32.mrf.mxu0  ;;  %v5905_v12 = vpop.f32.mrf.mxu1 }
 0x223   :  { %v1146_v10 = vmul.f32 0.9, %v5880_v6  ;;  %v1154_v24 = vmul.f32 0.9, %v5904_v40  ;;  %8164 = vst [vmem:[#allocation29_spill] sm:$0xff] %v7257_v34  ;;  %v8165_v6 = vmax.f32 %v7066_v36, 0.0 }
 0x224   :  { %v5882_v26 = vpop.f32.mrf.mxu0  ;;  %v5906_v54 = vpop.f32.mrf.mxu1 }
 0x225   :  { %v5883_v21 = vadd.f32 %v5882_v26, %v5881_v38  ;;  %v5907_v49 = vadd.f32 %v5906_v54, %v5905_v12  ;;  %v7261_v40 = vmul.f32 0.1, %v8165_v6  ;;  %v1242_v3 = vadd.f32 %v7249_v11, %v1146_v10 }
 0x226   :  { %v5884_v7 = vpop.f32.mrf.mxu0  ;;  %v5908_v35 = vpop.f32.mrf.mxu1  ;;  %v1250_v38 = vadd.f32 %v7257_v34, %v1154_v24  ;;  %v8166_v34 = vmax.f32 %v7007_v1, 0.0 }
 0x227   :  { %v1147_v26 = vmul.f32 0.9, %v5883_v21  ;;  %v1155_v12 = vmul.f32 0.9, %v5907_v49 }
 0x228   :  { %v5885_v54 = vpop.f32.mrf.mxu0  ;;  %v5909_v8 = vpop.f32.mrf.mxu1  ;;  %v7269_v11 = vmul.f32 0.1, %v8166_v34 }
 0x229   :  { %v1243_v48 = vadd.f32 %v7253_v60, %v1147_v26  ;;  %v1251_v31 = vadd.f32 %v7261_v40, %v1155_v12  ;;  %v5886_v14 = vadd.f32 %v5885_v54, %v5884_v7  ;;  %v5910_v20 = vadd.f32 %v5909_v8, %v5908_v35 }
 0x22a   :  { %v5887_v52 = vpop.f32.mrf.mxu0  ;;  %v5911_v0 = vpop.f32.mrf.mxu1  ;;  %v8167_v26 = vmax.f32 %v7013_v4, 0.0  ;;  %v8168_v35 = vmax.f32 %v7055_v29, 0.0  ;;  %v8169_v54 = vmax.f32 %v7061_v32, 0.0 }
 0x22b   :  { %v5449_v2 = vpack.c.bf16 %v1243_v48, %v1242_v3  ;;  %v5469_v36 = vpack.c.bf16 %v1251_v31, %v1250_v38  ;;  %v1148_v6 = vmul.f32 0.9, %v5886_v14  ;;  %v1156_v53 = vmul.f32 0.9, %v5910_v20 }
 0x22c   :  { %v5888_v21 = vpop.f32.mrf.mxu0  ;;  %v5912_v49 = vpop.f32.mrf.mxu1  ;;  %v7273_v7 = vmul.f32 0.1, %v8167_v26  ;;  %v7277_v12 = vmul.f32 0.1, %v8168_v35  ;;  %v8170_v35 = vmax.f32 %v7034_v17, 0.0 }
 0x22d   :  { %5450 = vst [vmem:[#allocation2] sm:$0xff] %v5449_v2   ;;  %5781 = vst [vmem:[#allocation2 + $0x20] sm:$0xff] %v5469_v36   ;;  %v5889_v10 = vadd.f32 %v5888_v21, %v5887_v52  ;;  %v5913_v24 = vadd.f32 %v5912_v49, %v5911_v0  ;;  %v7281_v2 = vmul.f32 0.1, %v8169_v54  ;;  %v1244_v1 = vadd.f32 %v7269_v11, %v1148_v6 }
 0x22e   :  { %v5890_v3 = vpop.f32.mrf.mxu0  ;;  %v5914_v38 = vpop.f32.mrf.mxu1  ;;  %v1252_v34 = vadd.f32 %v7277_v12, %v1156_v53  ;;  %v7289_v54 = vmul.f32 0.1, %v8170_v35 }
 0x22f   :  { %v1149_v8 = vmul.f32 0.9, %v5889_v10  ;;  %v1157_v0 = vmul.f32 0.9, %v5913_v24 }
 0x230   :  { %v5891_v48 = vpop.f32.mrf.mxu0  ;;  %v5915_v4 = vpop.f32.mrf.mxu1 }
 0x231   :  { %v1245_v31 = vadd.f32 %v7273_v7, %v1149_v8  ;;  %v1253_v29 = vadd.f32 %v7281_v2, %v1157_v0  ;;  %v5892_v14 = vadd.f32 %v5891_v48, %v5890_v3  ;;  %v5916_v20 = vadd.f32 %v5915_v4, %v5914_v38 }
 0x232   :  { %v5893_v52 = vpop.f32.mrf.mxu0  ;;  %v5917_v36 = vpop.f32.mrf.mxu1  ;;  %v8171_v8 = vmax.f32 %v7042_v22, 0.0  ;;  %v8172_v38 = vmax.f32 %v7082_v45, 0.0  ;;  %v8173_v48 = vmax.f32 %v7090_v50, 0.0 }
 0x233   :  { %v5454_v21 = vpack.c.bf16 %v1245_v31, %v1244_v1  ;;  %v5474_v32 = vpack.c.bf16 %v1253_v29, %v1252_v34  ;;  %v1150_v49 = vmul.f32 0.9, %v5892_v14  ;;  %v1158_v26 = vmul.f32 0.9, %v5916_v20 }
 0x234   :  { %v5894_v10 = vpop.f32.mrf.mxu0  ;;  %v5918_v24 = vpop.f32.mrf.mxu1  ;;  %v7293_v3 = vmul.f32 0.1, %v8171_v8  ;;  %v7297_v0 = vmul.f32 0.1, %v8172_v38  ;;  %v7301_v4 = vmul.f32 0.1, %v8173_v48 }
 0x235   :  { %5778 = vst [vmem:[#allocation2 + $0x8] sm:$0xff] %v5454_v21   ;;  %5782 = vst [vmem:[#allocation2 + $0x28] sm:$0xff] %v5474_v32   ;;  %v5895_v6 = vadd.f32 %v5894_v10, %v5893_v52  ;;  %v5919_v53 = vadd.f32 %v5918_v24, %v5917_v36  ;;  %v1246_v17 = vadd.f32 %v7289_v54, %v1150_v49  ;;  %v8174_v38 = vmax.f32 %v7031_v15, 0.0 }
 0x236   :  { %v5896_v1 = vpop.f32.mrf.mxu0  ;;  %v5920_v34 = vpop.f32.mrf.mxu1  ;;  %v1254_v14 = vadd.f32 %v7297_v0, %v1158_v26 }
 0x237   :  { %v1151_v31 = vmul.f32 0.9, %v5895_v6  ;;  %v1159_v29 = vmul.f32 0.9, %v5919_v53  ;;  %v7309_v48 = vmul.f32 0.1, %v8174_v38 }
 0x238   :  { %v5897_v20 = vpop.f32.mrf.mxu0  ;;  %v5921_v22 = vpop.f32.mrf.mxu1 }
 0x239   :  { %v1247_v52 = vadd.f32 %v7293_v3, %v1151_v31  ;;  %v1255_v45 = vadd.f32 %v7301_v4, %v1159_v29  ;;  %v5898_v36 = vadd.f32 %v5897_v20, %v5896_v1  ;;  %v5922_v21 = vadd.f32 %v5921_v22, %v5920_v34 }
 0x23a   :  { %v5899_v32 = vpop.f32.mrf.mxu0  ;;  %v5923_v10 = vpop.f32.mrf.mxu1  ;;  %v8175_v31 = vmax.f32 %v7037_v18, 0.0  ;;  %v8176_v34 = vmax.f32 %v7079_v43, 0.0 }
 0x23b   :  { %v5459_v24 = vpack.c.bf16 %v1247_v52, %v1246_v17  ;;  %v5479_v50 = vpack.c.bf16 %v1255_v45, %v1254_v14  ;;  %v1152_v35 = vmul.f32 0.9, %v5898_v36  ;;  %v1160_v49 = vmul.f32 0.9, %v5922_v21 }
 0x23c   :  { %v5900_v8 = vpop.f32.mrf.mxu0  ;;  %v5924_v6 = vpop.f32.mrf.mxu1  ;;  %v7313_v1 = vmul.f32 0.1, %v8175_v31  ;;  %v7317_v29 = vmul.f32 0.1, %v8176_v34  ;;  %v8177_v14 = vmax.f32 %v7085_v46, 0.0 }
 0x23d   :  { %5779 = vst [vmem:[#allocation2 + $0x10] sm:$0xff] %v5459_v24   ;;  %5783 = vst [vmem:[#allocation2 + $0x30] sm:$0xff] %v5479_v50   ;;  %v5901_v53 = vadd.f32 %v5900_v8, %v5899_v32  ;;  %v5925_v26 = vadd.f32 %v5924_v6, %v5923_v10  ;;  %v1248_v45 = vadd.f32 %v7309_v48, %v1152_v35 }
 0x23e   :  { %v5926_v17 = vpop.f32.mrf.mxu1  ;;  %v7321_v20 = vmul.f32 0.1, %v8177_v14  ;;  %v1256_v36 = vadd.f32 %v7317_v29, %v1160_v49  ;;  %v8179_v49 = vmax.f32 %v7114_v5, 0.0  ;;  %v8181_v5 = vmax.f32 %v7109_v61, 0.0 }
 0x23f   :  { %v1153_v22 = vmul.f32 0.9, %v5901_v53  ;;  %v1161_v52 = vmul.f32 0.9, %v5925_v26  ;;  %v8178_v53 = vmax.f32 %v7106_v59, 0.0  ;;  %v8184_v61 = vmax.f32 %v7138_v47, 0.0 }
 0x240   :  { %v5927_v15 = vpop.f32.mrf.mxu1  ;;  %v7333_v26 = vmul.f32 0.1, %v8179_v49  ;;  %v8186_v47 = vmax.f32 %v7133_v33, 0.0 }
 0x241   :  { %v1249_v18 = vadd.f32 %v7313_v1, %v1153_v22  ;;  %v1257_v21 = vadd.f32 %v7321_v20, %v1161_v52  ;;  %v5928_v32 = vadd.f32 %v5927_v15, %v5926_v17  ;;  %v7329_v35 = vmul.f32 0.1, %v8178_v53 }
 0x242   :  { %v5929_v43 = vpop.f32.mrf.mxu1 }
 0x243   :  { %v5464_v10 = vpack.c.bf16 %v1249_v18, %v1248_v45  ;;  %v5484_v24 = vpack.c.bf16 %v1257_v21, %v1256_v36  ;;  %v1162_v46 = vmul.f32 0.9, %v5928_v32  ;;  %v8180_v18 = vmax.f32 %v7103_v57, 0.0 }
 0x244   :  { %v5930_v50 = vpop.f32.mrf.mxu1  ;;  %v7343_v32 = vmul.f32 0.1, %v8181_v5 }
 0x245   :  { %5780 = vst [vmem:[#allocation2 + $0x18] sm:$0xff] %v5464_v10   ;;  %5784 = vst [vmem:[#allocation2 + $0x38] sm:$0xff] %v5484_v24   ;;  %v5931_v8 = vadd.f32 %v5930_v50, %v5929_v43  ;;  %v1258_v34 = vadd.f32 %v7329_v35, %v1162_v46  ;;  %v7339_v21 = vmul.f32 0.1, %v8180_v18 }
 0x246   :  { %v5932_v6 = vpop.f32.mrf.mxu1 }
 0x247   :  { %v1163_v38 = vmul.f32 0.9, %v5931_v8 }
 0x248   :  { %v5933_v31 = vpop.f32.mrf.mxu1 }
 0x249   :  { %v1259_v17 = vadd.f32 %v7333_v26, %v1163_v38  ;;  %v5934_v14 = vadd.f32 %v5933_v31, %v5932_v6  ;;  %v8182_v31 = vmax.f32 %v7130_v30, 0.0 }
 0x24a   :  { %v5935_v22 = vpop.f32.mrf.mxu1 }
 0x24b   :  { %v5489_v52 = vpack.c.bf16 %v1259_v17, %v1258_v34  ;;  %v1164_v15 = vmul.f32 0.9, %v5934_v14  ;;  %v7349_v34 = vmul.f32 0.1, %v8182_v31  ;;  %v7353_v17 = vmul.f32 0.1, %v8184_v61 }
 0x24c   :  { %v5936_v45 = vpop.f32.mrf.mxu1 }
 0x24d   :  { %5785 = vst [vmem:[#allocation2 + $0x40] sm:$0xff] %v5489_v52   ;;  %v5937_v36 = vadd.f32 %v5936_v45, %v5935_v22  ;;  %v1260_v24 = vadd.f32 %v7339_v21, %v1164_v15  ;;  %8183 = vst [vmem:[#allocation30_spill] sm:$0xff] %v7349_v34 }
 0x24e   :  { %v5938_v59 = vpop.f32.mrf.mxu1 }
 0x24f   :  { %v1165_v43 = vmul.f32 0.9, %v5937_v36 }
 0x250   :  { %v5939_v10 = vpop.f32.mrf.mxu1 }
 0x251   :  { %v1261_v50 = vadd.f32 %v7343_v32, %v1165_v43  ;;  %v5940_v46 = vadd.f32 %v5939_v10, %v5938_v59  ;;  %v8185_v10 = vmax.f32 %v7127_v27, 0.0 }
 0x252   :  { %v5941_v8 = vpop.f32.mrf.mxu1 }
 0x253   :  { %v5494_v6 = vpack.c.bf16 %v1261_v50, %v1260_v24  ;;  %v1166_v49 = vmul.f32 0.9, %v5940_v46  ;;  %v7359_v24 = vmul.f32 0.1, %v8185_v10  ;;  %v7363_v50 = vmul.f32 0.1, %v8186_v47 }
 0x254   :  { %v5942_v53 = vpop.f32.mrf.mxu1 }
 0x255   :  { %5786 = vst [vmem:[#allocation2 + $0x48] sm:$0xff] %v5494_v6   ;;  %v5943_v38 = vadd.f32 %v5942_v53, %v5941_v8  ;;  %v1262_v52 = vadd.f32 %v7349_v34, %v1166_v49 }
 0x256   :  { %v5944_v57 = vpop.f32.mrf.mxu1 }
 0x257   :  { %v1167_v14 = vmul.f32 0.9, %v5943_v38 }
 0x258   :  { %v5945_v22 = vpop.f32.mrf.mxu1 }
 0x259   :  { %v1263_v45 = vadd.f32 %v7353_v17, %v1167_v14  ;;  %v5946_v15 = vadd.f32 %v5945_v22, %v5944_v57  ;;  %v8187_v14 = vmax.f32 %v7151_v13, 0.0 }
 0x25a   :  { %v5947_v36 = vpop.f32.mrf.mxu1 }
 0x25b   :  { %v5499_v59 = vpack.c.bf16 %v1263_v45, %v1262_v52  ;;  %v1168_v5 = vmul.f32 0.9, %v5946_v15  ;;  %v7369_v27 = vmul.f32 0.1, %v8187_v14 }
 0x25c   :  { %v5948_v18 = vpop.f32.mrf.mxu1 }
 0x25d   :  { %5787 = vst [vmem:[#allocation2 + $0x50] sm:$0xff] %v5499_v59   ;;  %v5949_v43 = vadd.f32 %v5948_v18, %v5947_v36  ;;  %v1264_v6 = vadd.f32 %v7359_v24, %v1168_v5  ;;  %8188 = vst [vmem:[#allocation31_spill] sm:$0xff] %v7369_v27 }
 0x25e   :  { %v5950_v30 = vpop.f32.mrf.mxu1 }
 0x25f   :  { %v1169_v46 = vmul.f32 0.9, %v5949_v43 }
 0x260   :  { %v5951_v8 = vpop.f32.mrf.mxu1 }
 0x261   :  { %v1265_v53 = vadd.f32 %v7363_v50, %v1169_v46  ;;  %v5952_v49 = vadd.f32 %v5951_v8, %v5950_v30 }
 0x262   :  { %v5953_v38 = vpop.f32.mrf.mxu1 }
 0x263   :  { %v5504_v57 = vpack.c.bf16 %v1265_v53, %v1264_v6  ;;  %v1170_v31 = vmul.f32 0.9, %v5952_v49 }
 0x264   :  { %v5954_v61 = vpop.f32.mrf.mxu1 }
 0x265   :  { %5788 = vst [vmem:[#allocation2 + $0x58] sm:$0xff] %v5504_v57   ;;  %v5955_v22 = vadd.f32 %v5954_v61, %v5953_v38  ;;  %v1266_v52 = vadd.f32 %v7369_v27, %v1170_v31 }
 0x266   :  { %v5956_v33 = vpop.f32.mrf.mxu1 }
 0x267   :  { %v1171_v45 = vmul.f32 0.9, %v5955_v22 }
 0x268   :  { %v5957_v15 = vpop.f32.mrf.mxu1 }
 0x269   :  { %v5509_v36 = vpack.c.bf16 %v1171_v45, %v1266_v52  ;;  %v5958_v18 = vadd.f32 %v5957_v15, %v5956_v33 }
 0x26a   :  { %v5959_v59 = vpop.f32.mrf.mxu1 }
 0x26b   :  { %5789 = vst [vmem:[#allocation2 + $0x60] sm:$0xff] %v5509_v36   ;;  %v1172_v10 = vmul.f32 0.9, %v5958_v18 }
 0x26c   :  { %v5960_v5 = vpop.f32.mrf.mxu1 }
 0x26d   :  { %v5961_v43 = vadd.f32 %v5960_v5, %v5959_v59  ;;  %v6569_v5 = vld [vmem:[#allocation2 + $0x38] sm:$0xff]  }
 0x26e   :  { %v5962_v30 = vpop.f32.mrf.mxu1 }
 0x26f   :  { %v1173_v47 = vmul.f32 0.9, %v5961_v43 }
 0x270   :  { %v5963_v46 = vpop.f32.mrf.mxu1 }
 0x271   :  { %v5514_v13 = vpack.c.bf16 %v1173_v47, %v1172_v10  ;;  %v5964_v6 = vadd.f32 %v5963_v46, %v5962_v30  ;;  %v6571_v30 = vld [vmem:[#allocation2 + $0x30] sm:$0xff]   ;;  %v6573_v47 = vld [vmem:[#allocation2 + $0x28] sm:$0xff]  }
 0x272   :  { %v5965_v8 = vpop.f32.mrf.mxu1  ;;  %v6574_v46 = vld [vmem:[#allocation2 + $0x60] sm:$0xff]  }
 0x273   :  { %5790 = vst [vmem:[#allocation2 + $0x68] sm:$0xff] %v5514_v13   ;;  %v1174_v57 = vmul.f32 0.9, %v5964_v6  ;;  %v6575_v13 = vld [vmem:[#allocation2 + $0x20] sm:$0xff]   ;;  %v6577_v6 = vld [vmem:[#allocation2 + $0x18] sm:$0xff]  }
 0x274   :  { %v5966_v53 = vpop.f32.mrf.mxu1 }
 0x275   :  { %v5967_v49 = vadd.f32 %v5966_v53, %v5965_v8  ;;  %v6576_v8 = vld [vmem:[#allocation2 + $0x58] sm:$0xff]   ;;  %v6578_v53 = vld [vmem:[#allocation2 + $0x50] sm:$0xff]  }
 0x276   :  { %v5968_v38 = vpop.f32.mrf.mxu1 }
 0x277   :  { %v1175_v31 = vmul.f32 0.9, %v5967_v49  ;;  %v6579_v49 = vld [vmem:[#allocation2 + $0x10] sm:$0xff]  }
 0x278   :  { %v5969_v61 = vpop.f32.mrf.mxu1 }
 0x279   :  { %v5519_v14 = vpack.c.bf16 %v1175_v31, %v1174_v57  ;;  %v5970_v33 = vadd.f32 %v5969_v61, %v5968_v38  ;;  %v6580_v38 = vld [vmem:[#allocation2 + $0x48] sm:$0xff]   ;;  %v6582_v31 = vld [vmem:[#allocation2 + $0x40] sm:$0xff]  }
 0x27a   :  { %v5971_v22 = vpop.f32.mrf.mxu1  ;;  %v6572_v10 = vld [vmem:[#allocation2 + $0x68] sm:$0xff]   ;;  %v6583_v61 = vld [vmem:[#allocation2] sm:$0xff]  }
 0x27b   :  { %5791 = vst [vmem:[#allocation2 + $0x70] sm:$0xff] %v5519_v14   ;;  %v1176_v15 = vmul.f32 0.9, %v5970_v33  ;;  %v6581_v57 = vld [vmem:[#allocation2 + $0x8] sm:$0xff]  }
 0x27c   :  { %v5972_v52 = vpop.f32.mrf.mxu1  ;;  %v6856_v14 = vld [vmem:[#allocation10 + $0x44] ss:$8 sps:$4 sm:$0xff]  }
 0x27d   :  { %v5973_v45 = vadd.f32 %v5972_v52, %v5971_v22 }
 0x27f   :  { %v1177_v36 = vmul.f32 0.9, %v5973_v45 }
 0x281   :  { %v5524_v59 = vpack.c.bf16 %v1177_v36, %v1176_v15 }
 0x282   :  { %v6570_v43 = vld [vmem:[#allocation2 + $0x70] sm:$0xff]  }
 0x283   :  { %5792 = vst [vmem:[#allocation2 + $0x78] sm:$0xff] %v5524_v59   ;;  %v8202_v59 = vld [vmem:[#allocation28_spill] sm:$0xff] }
 0x28a   :  { %v6568_v18 = vld [vmem:[#allocation2 + $0x78] sm:$0xff]  }
 0x28b   :  { %5974 = vmatprep.subr.bf16.mxu0 %v6568_v18 }
 0x28c   :  { %5975 = vmatpush3.bf16.msra.mxu0 %v6569_v5 }
 0x28d   :  { %5976 = vmatprep.subr.bf16.mxu0 %v6570_v43 }
 0x290   :  { %5977 = vmatpush3.bf16.msra.mxu0 %v6571_v30 }
 0x291   :  { %5978 = vmatprep.subr.bf16.mxu0 %v6572_v10 }
 0x294   :  { %5979 = vmatpush3.bf16.msra.mxu0 %v6573_v47 }
 0x295   :  { %5980 = vmatprep.subr.bf16.mxu0 %v6574_v46 }
 0x298   :  { %5981 = vmatpush3.bf16.msra.mxu0 %v6575_v13 }
 0x299   :  { %5982 = vmatprep.subr.bf16.mxu0 %v6576_v8 }
 0x29c   :  { %5983 = vmatpush3.bf16.msra.mxu0 %v6577_v6 }
 0x29d   :  { %5984 = vmatprep.subr.bf16.mxu0 %v6578_v53 }
 0x2a0   :  { %5985 = vmatpush3.bf16.msra.mxu0 %v6579_v49 }
 0x2a1   :  { %5986 = vmatprep.subr.bf16.mxu0 %v6580_v38 }
 0x2a4   :  { %5987 = vmatpush3.bf16.msra.mxu0 %v6581_v57 }
 0x2a5   :  { %5988 = vmatprep.subr.bf16.mxu0 %v6582_v31 }
 0x2a8   :  { %5989 = vmatpush3.bf16.msra.mxu0 %v6583_v61 }
 0x2ab   :  { %1787 = vmatmul.mubr.bf16.vlgmr.msra.gmra.mxu0 %v7156_v23  ;;  %v8189_v23 = vld [vmem:[#allocation15_spill] sm:$0xff] }
 0x2ac   :  { %1794 = vmatprep.mubr.bf16.mxu0 %v7160_v28  ;;  %v8191_v28 = vld [vmem:[#allocation17_spill] sm:$0xff] }
 0x2b3   :  { %1795 = vmatmul.mubr.bf16.gmra.mxu0 %v7168_v39  ;;  %v8193_v39 = vld [vmem:[#allocation19_spill] sm:$0xff] }
 0x2b4   :  { %1802 = vmatprep.mubr.bf16.mxu0 %v7172_v63  ;;  %v8195_v63 = vld [vmem:[#allocation21_spill] sm:$0xff] }
 0x2bb   :  { %1803 = vmatmul.mubr.bf16.gmra.mxu0 %v7180_v55  ;;  %v8201_v55 = vld [vmem:[#allocation27_spill] sm:$0xff] }
 0x2bc   :  { %1810 = vmatprep.mubr.bf16.mxu0 %v7184_v62 }
 0x2c3   :  { %1811 = vmatmul.mubr.bf16.gmra.mxu0 %v7192_v16 }
 0x2c4   :  { %1818 = vmatprep.mubr.bf16.mxu0 %v6856_v14 }
 0x2cb   :  { %1819 = vmatmul.mubr.bf16.gmra.mxu0 %v7158_v25  ;;  %v8190_v25 = vld [vmem:[#allocation16_spill] sm:$0xff] }
 0x2cc   :  { %1826 = vmatprep.mubr.bf16.mxu0 %v7162_v37  ;;  %v8192_v37 = vld [vmem:[#allocation18_spill] sm:$0xff] }
 0x2d3   :  { %1827 = vmatmul.mubr.bf16.gmra.mxu0 %v7170_v41  ;;  %v8194_v41 = vld [vmem:[#allocation20_spill] sm:$0xff] }
 0x2d4   :  { %1834 = vmatprep.mubr.bf16.mxu0 %v7174_v51  ;;  %v8200_v51 = vld [vmem:[#allocation26_spill] sm:$0xff] }
 0x2db   :  { %1835 = vmatmul.mubr.bf16.gmra.mxu0 %v7182_v58 }
 0x2dc   :  { %1842 = vmatprep.mubr.bf16.mxu0 %v7186_v9 }
 0x2e3   :  { %1843 = vmatmul.mubr.bf16.gmra.mxu0 %v7194_v19  ;;  %v8196_v19 = vld [vmem:[#allocation22_spill] sm:$0xff] }
 0x2e4   :  { %1850 = vmatprep.mubr.bf16.mxu0 %v7196_v44  ;;  %v8197_v44 = vld [vmem:[#allocation23_spill] sm:$0xff] }
 0x2eb   :  { %1851 = vmatmul.mubr.bf16.gmra.mxu0 %v7202_v42  ;;  %v8198_v42 = vld [vmem:[#allocation24_spill] sm:$0xff] }
 0x2ec   :  { %1858 = vmatprep.mubr.bf16.mxu0 %v7204_v56  ;;  %v8199_v56 = vld [vmem:[#allocation25_spill] sm:$0xff] }
 0x2f3   :  { %1859 = vmatmul.mubr.bf16.gmra.mxu0 %v8189_v23 }
 0x2f4   :  { %1866 = vmatprep.mubr.bf16.mxu0 %v8190_v25 }
 0x2fb   :  { %1867 = vmatmul.mubr.bf16.gmra.mxu0 %v8191_v28 }
 0x2fc   :  { %1874 = vmatprep.mubr.bf16.mxu0 %v8192_v37 }
 0x303   :  { %1875 = vmatmul.mubr.bf16.gmra.mxu0 %v8193_v39 }
 0x304   :  { %1882 = vmatprep.mubr.bf16.mxu0 %v8194_v41 }
 0x30b   :  { %1883 = vmatmul.mubr.bf16.gmra.mxu0 %v8195_v63 }
 0x30c   :  { %1890 = vmatprep.mubr.bf16.mxu0 %v8196_v19 }
 0x313   :  { %1891 = vmatmul.mubr.bf16.gmra.mxu0 %v8197_v44 }
 0x314   :  { %1898 = vmatprep.mubr.bf16.mxu0 %v8198_v42 }
 0x31b   :  { %1899 = vmatmul.mubr.bf16.gmra.mxu0 %v8199_v56 }
 0x31c   :  { %1906 = vmatprep.mubr.bf16.mxu0 %v8200_v51 }
 0x323   :  { %1907 = vmatmul.mubr.bf16.gmra.mxu0 %v8201_v55 }
 0x36b   :  { %v5990_v58 = vpop.f32.mrf.mxu0 }
 0x36d   :  { %v5991_v62 = vpop.f32.mrf.mxu0 }
 0x36e   :  { %v5992_v9 = vadd.f32 %v5991_v62, %v5990_v58 }
 0x36f   :  { %v5993_v16 = vpop.f32.mrf.mxu0 }
 0x370   :  { %v1915_v33 = vmul.f32 0.9, %v5992_v9 }
 0x371   :  { %v5994_v22 = vpop.f32.mrf.mxu0 }
 0x372   :  { %v5995_v52 = vadd.f32 %v5994_v22, %v5993_v16  ;;  %v2011_v18 = vadd.f32 %v1915_v33, %v8202_v59 }
 0x373   :  { %v5996_v45 = vpop.f32.mrf.mxu0 }
 0x374   :  { %v1916_v15 = vmul.f32 0.9, %v5995_v52 }
 0x375   :  { %v5997_v36 = vpop.f32.mrf.mxu0 }
 0x376   :  { %v2012_v5 = vadd.f32 %v1916_v15, %v7253_v60  ;;  %v5998_v43 = vadd.f32 %v5997_v36, %v5996_v45 }
 0x377   :  { %v5999_v30 = vpop.f32.mrf.mxu0 }
 0x378   :  { %v5529_v10 = vpack.c.bf16 %v2012_v5, %v2011_v18  ;;  %v1917_v46 = vmul.f32 0.9, %v5998_v43 }
 0x379   :  { %v6000_v47 = vpop.f32.mrf.mxu0 }
 0x37a   :  { %5530 = vst [vmem:[#allocation2] sm:$0xff] %v5529_v10   ;;  %v6001_v13 = vadd.f32 %v6000_v47, %v5999_v30  ;;  %v2013_v49 = vadd.f32 %v1917_v46, %v7269_v11  ;;  %v8203_v10 = vld [vmem:[#allocation29_spill] sm:$0xff] }
 0x37b   :  { %v6002_v8 = vpop.f32.mrf.mxu0 }
 0x37c   :  { %v1918_v6 = vmul.f32 0.9, %v6001_v13 }
 0x37d   :  { %v6003_v53 = vpop.f32.mrf.mxu0 }
 0x37e   :  { %v2014_v38 = vadd.f32 %v1918_v6, %v7273_v7  ;;  %v6004_v57 = vadd.f32 %v6003_v53, %v6002_v8  ;;  %v6602_v8 = vld [vmem:[#allocation10 + $0x4] ss:$8 sps:$4 sm:$0xff]  }
 0x37f   :  { %v6005_v31 = vpop.f32.mrf.mxu0  ;;  %2555 = vmatprep.mubr.bf16.mxu1 %v6602_v8  ;;  %3324 = vmatprep.mubr.bf16.mxu0 %v6602_v8 }
 0x380   :  { %v5534_v61 = vpack.c.bf16 %v2014_v38, %v2013_v49  ;;  %v1919_v23 = vmul.f32 0.9, %v6004_v57 }
 0x381   :  { %v6006_v14 = vpop.f32.mrf.mxu0 }
 0x382   :  { %5793 = vst [vmem:[#allocation2 + $0x8] sm:$0xff] %v5534_v61   ;;  %v6007_v25 = vadd.f32 %v6006_v14, %v6005_v31  ;;  %v2015_v41 = vadd.f32 %v1919_v23, %v7289_v54 }
 0x383   :  { %v6008_v28 = vpop.f32.mrf.mxu0 }
 0x384   :  { %v1920_v37 = vmul.f32 0.9, %v6007_v25 }
 0x385   :  { %v6009_v39 = vpop.f32.mrf.mxu0 }
 0x386   :  { %v2016_v63 = vadd.f32 %v1920_v37, %v7293_v3  ;;  %v6010_v19 = vadd.f32 %v6009_v39, %v6008_v28 }
 0x387   :  { %v6011_v44 = vpop.f32.mrf.mxu0 }
 0x388   :  { %v5539_v42 = vpack.c.bf16 %v2016_v63, %v2015_v41  ;;  %v1921_v51 = vmul.f32 0.9, %v6010_v19 }
 0x389   :  { %v6012_v56 = vpop.f32.mrf.mxu0 }
 0x38a   :  { %5794 = vst [vmem:[#allocation2 + $0x10] sm:$0xff] %v5539_v42   ;;  %v6013_v55 = vadd.f32 %v6012_v56, %v6011_v44  ;;  %v2017_v16 = vadd.f32 %v1921_v51, %v7309_v48 }
 0x38b   :  { %v6014_v58 = vpop.f32.mrf.mxu0 }
 0x38c   :  { %v1922_v62 = vmul.f32 0.9, %v6013_v55 }
 0x38d   :  { %v6015_v9 = vpop.f32.mrf.mxu0 }
 0x38e   :  { %v2018_v22 = vadd.f32 %v1922_v62, %v7313_v1  ;;  %v6016_v33 = vadd.f32 %v6015_v9, %v6014_v58 }
 0x38f   :  { %v6017_v52 = vpop.f32.mrf.mxu0 }
 0x390   :  { %v5544_v45 = vpack.c.bf16 %v2018_v22, %v2017_v16  ;;  %v1923_v36 = vmul.f32 0.9, %v6016_v33 }
 0x391   :  { %v6018_v15 = vpop.f32.mrf.mxu0 }
 0x392   :  { %5795 = vst [vmem:[#allocation2 + $0x18] sm:$0xff] %v5544_v45   ;;  %v6019_v18 = vadd.f32 %v6018_v15, %v6017_v52  ;;  %v2019_v47 = vadd.f32 %v1923_v36, %v8203_v10 }
 0x393   :  { %v6020_v5 = vpop.f32.mrf.mxu0 }
 0x394   :  { %v1924_v43 = vmul.f32 0.9, %v6019_v18 }
 0x395   :  { %v6021_v30 = vpop.f32.mrf.mxu0 }
 0x396   :  { %v2020_v46 = vadd.f32 %v1924_v43, %v7261_v40  ;;  %v6022_v13 = vadd.f32 %v6021_v30, %v6020_v5 }
 0x397   :  { %v6023_v6 = vpop.f32.mrf.mxu0 }
 0x398   :  { %v5549_v53 = vpack.c.bf16 %v2020_v46, %v2019_v47  ;;  %v1925_v38 = vmul.f32 0.9, %v6022_v13 }
 0x399   :  { %v6024_v49 = vpop.f32.mrf.mxu0 }
 0x39a   :  { %5796 = vst [vmem:[#allocation2 + $0x20] sm:$0xff] %v5549_v53   ;;  %v6025_v57 = vadd.f32 %v6024_v49, %v6023_v6  ;;  %v2021_v23 = vadd.f32 %v1925_v38, %v7277_v12 }
 0x39b   :  { %v6026_v31 = vpop.f32.mrf.mxu0 }
 0x39c   :  { %v1926_v61 = vmul.f32 0.9, %v6025_v57 }
 0x39d   :  { %v6027_v14 = vpop.f32.mrf.mxu0 }
 0x39e   :  { %v2022_v25 = vadd.f32 %v1926_v61, %v7281_v2  ;;  %v6028_v28 = vadd.f32 %v6027_v14, %v6026_v31 }
 0x39f   :  { %v6029_v37 = vpop.f32.mrf.mxu0 }
 0x3a0   :  { %v5554_v39 = vpack.c.bf16 %v2022_v25, %v2021_v23  ;;  %v1927_v63 = vmul.f32 0.9, %v6028_v28 }
 0x3a1   :  { %v6030_v41 = vpop.f32.mrf.mxu0 }
 0x3a2   :  { %5797 = vst [vmem:[#allocation2 + $0x28] sm:$0xff] %v5554_v39   ;;  %v6031_v19 = vadd.f32 %v6030_v41, %v6029_v37  ;;  %v2023_v51 = vadd.f32 %v1927_v63, %v7297_v0 }
 0x3a3   :  { %v6032_v44 = vpop.f32.mrf.mxu0 }
 0x3a4   :  { %v1928_v42 = vmul.f32 0.9, %v6031_v19 }
 0x3a5   :  { %v6033_v56 = vpop.f32.mrf.mxu0 }
 0x3a6   :  { %v2024_v55 = vadd.f32 %v1928_v42, %v7301_v4  ;;  %v6034_v58 = vadd.f32 %v6033_v56, %v6032_v44 }
 0x3a7   :  { %v6035_v62 = vpop.f32.mrf.mxu0 }
 0x3a8   :  { %v5559_v9 = vpack.c.bf16 %v2024_v55, %v2023_v51  ;;  %v1929_v22 = vmul.f32 0.9, %v6034_v58 }
 0x3a9   :  { %v6036_v16 = vpop.f32.mrf.mxu0 }
 0x3aa   :  { %5798 = vst [vmem:[#allocation2 + $0x30] sm:$0xff] %v5559_v9   ;;  %v6037_v33 = vadd.f32 %v6036_v16, %v6035_v62  ;;  %v2025_v36 = vadd.f32 %v1929_v22, %v7317_v29 }
 0x3ab   :  { %v6038_v52 = vpop.f32.mrf.mxu0 }
 0x3ac   :  { %v1930_v45 = vmul.f32 0.9, %v6037_v33 }
 0x3ad   :  { %v6039_v15 = vpop.f32.mrf.mxu0 }
 0x3ae   :  { %v2026_v18 = vadd.f32 %v1930_v45, %v7321_v20  ;;  %v6040_v5 = vadd.f32 %v6039_v15, %v6038_v52 }
 0x3af   :  { %v6041_v43 = vpop.f32.mrf.mxu0 }
 0x3b0   :  { %v5564_v30 = vpack.c.bf16 %v2026_v18, %v2025_v36  ;;  %v1931_v46 = vmul.f32 0.9, %v6040_v5 }
 0x3b1   :  { %v6042_v47 = vpop.f32.mrf.mxu0 }
 0x3b2   :  { %5799 = vst [vmem:[#allocation2 + $0x38] sm:$0xff] %v5564_v30   ;;  %v6043_v13 = vadd.f32 %v6042_v47, %v6041_v43  ;;  %v2027_v49 = vadd.f32 %v1931_v46, %v7329_v35 }
 0x3b3   :  { %v6044_v8 = vpop.f32.mrf.mxu0 }
 0x3b4   :  { %v1932_v6 = vmul.f32 0.9, %v6043_v13 }
 0x3b5   :  { %v6045_v53 = vpop.f32.mrf.mxu0 }
 0x3b6   :  { %v2028_v38 = vadd.f32 %v1932_v6, %v7333_v26  ;;  %v6046_v57 = vadd.f32 %v6045_v53, %v6044_v8 }
 0x3b7   :  { %v6047_v31 = vpop.f32.mrf.mxu0 }
 0x3b8   :  { %v5569_v61 = vpack.c.bf16 %v2028_v38, %v2027_v49  ;;  %v1933_v23 = vmul.f32 0.9, %v6046_v57 }
 0x3b9   :  { %v6048_v14 = vpop.f32.mrf.mxu0 }
 0x3ba   :  { %5800 = vst [vmem:[#allocation2 + $0x40] sm:$0xff] %v5569_v61   ;;  %v6049_v25 = vadd.f32 %v6048_v14, %v6047_v31  ;;  %v2029_v41 = vadd.f32 %v1933_v23, %v7339_v21 }
 0x3bb   :  { %v6050_v28 = vpop.f32.mrf.mxu0 }
 0x3bc   :  { %v1934_v37 = vmul.f32 0.9, %v6049_v25 }
 0x3bd   :  { %v6051_v39 = vpop.f32.mrf.mxu0 }
 0x3be   :  { %v2030_v63 = vadd.f32 %v1934_v37, %v7343_v32  ;;  %v6052_v19 = vadd.f32 %v6051_v39, %v6050_v28 }
 0x3bf   :  { %v6053_v44 = vpop.f32.mrf.mxu0 }
 0x3c0   :  { %v5574_v42 = vpack.c.bf16 %v2030_v63, %v2029_v41  ;;  %v1935_v51 = vmul.f32 0.9, %v6052_v19 }
 0x3c1   :  { %v6054_v56 = vpop.f32.mrf.mxu0 }
 0x3c2   :  { %5801 = vst [vmem:[#allocation2 + $0x48] sm:$0xff] %v5574_v42   ;;  %v6055_v55 = vadd.f32 %v6054_v56, %v6053_v44  ;;  %v2031_v16 = vadd.f32 %v1935_v51, %v7349_v34 }
 0x3c3   :  { %v6056_v58 = vpop.f32.mrf.mxu0 }
 0x3c4   :  { %v1936_v62 = vmul.f32 0.9, %v6055_v55 }
 0x3c5   :  { %v6057_v9 = vpop.f32.mrf.mxu0 }
 0x3c6   :  { %v2032_v22 = vadd.f32 %v1936_v62, %v7353_v17  ;;  %v6058_v33 = vadd.f32 %v6057_v9, %v6056_v58 }
 0x3c7   :  { %v6059_v52 = vpop.f32.mrf.mxu0 }
 0x3c8   :  { %v5579_v45 = vpack.c.bf16 %v2032_v22, %v2031_v16  ;;  %v1937_v36 = vmul.f32 0.9, %v6058_v33 }
 0x3c9   :  { %v6060_v15 = vpop.f32.mrf.mxu0 }
 0x3ca   :  { %5802 = vst [vmem:[#allocation2 + $0x50] sm:$0xff] %v5579_v45   ;;  %v6061_v18 = vadd.f32 %v6060_v15, %v6059_v52  ;;  %v2033_v47 = vadd.f32 %v1937_v36, %v7359_v24 }
 0x3cb   :  { %v6062_v5 = vpop.f32.mrf.mxu0 }
 0x3cc   :  { %v1938_v43 = vmul.f32 0.9, %v6061_v18 }
 0x3cd   :  { %v6063_v30 = vpop.f32.mrf.mxu0 }
 0x3ce   :  { %v2034_v46 = vadd.f32 %v1938_v43, %v7363_v50  ;;  %v6064_v13 = vadd.f32 %v6063_v30, %v6062_v5 }
 0x3cf   :  { %v6065_v8 = vpop.f32.mrf.mxu0 }
 0x3d0   :  { %v5584_v6 = vpack.c.bf16 %v2034_v46, %v2033_v47  ;;  %v1939_v53 = vmul.f32 0.9, %v6064_v13  ;;  %v6585_v47 = vld [vmem:[#allocation2 + $0x38] sm:$0xff]   ;;  %v6587_v13 = vld [vmem:[#allocation2 + $0x30] sm:$0xff]  }
 0x3d1   :  { %v6066_v49 = vpop.f32.mrf.mxu0 }
 0x3d2   :  { %5803 = vst [vmem:[#allocation2 + $0x58] sm:$0xff] %v5584_v6   ;;  %v6067_v38 = vadd.f32 %v6066_v49, %v6065_v8  ;;  %v2035_v31 = vadd.f32 %v1939_v53, %v7369_v27  ;;  %v6589_v6 = vld [vmem:[#allocation2 + $0x28] sm:$0xff]   ;;  %v6591_v49 = vld [vmem:[#allocation2 + $0x20] sm:$0xff]  }
 0x3d3   :  { %v6068_v57 = vpop.f32.mrf.mxu0 }
 0x3d4   :  { %v1940_v61 = vmul.f32 0.9, %v6067_v38 }
 0x3d5   :  { %v6069_v14 = vpop.f32.mrf.mxu0 }
 0x3d6   :  { %v5589_v23 = vpack.c.bf16 %v1940_v61, %v2035_v31  ;;  %v6070_v28 = vadd.f32 %v6069_v14, %v6068_v57  ;;  %v6593_v57 = vld [vmem:[#allocation2 + $0x18] sm:$0xff]   ;;  %v6594_v31 = vld [vmem:[#allocation2 + $0x50] sm:$0xff]   ;;  %v6596_v14 = vld [vmem:[#allocation2 + $0x48] sm:$0xff]  }
 0x3d7   :  { %v6071_v25 = vpop.f32.mrf.mxu0  ;;  %v6595_v61 = vld [vmem:[#allocation2 + $0x10] sm:$0xff]  }
 0x3d8   :  { %5804 = vst [vmem:[#allocation2 + $0x60] sm:$0xff] %v5589_v23   ;;  %v1941_v63 = vmul.f32 0.9, %v6070_v28  ;;  %v6597_v23 = vld [vmem:[#allocation2 + $0x8] sm:$0xff]   ;;  %v6599_v28 = vld [vmem:[#allocation2] sm:$0xff]  }
 0x3d9   :  { %v6072_v37 = vpop.f32.mrf.mxu0  ;;  %v6592_v38 = vld [vmem:[#allocation2 + $0x58] sm:$0xff]  }
 0x3da   :  { %v6073_v39 = vadd.f32 %v6072_v37, %v6071_v25  ;;  %v6598_v25 = vld [vmem:[#allocation2 + $0x40] sm:$0xff]  }
 0x3db   :  { %v6074_v41 = vpop.f32.mrf.mxu0  ;;  %v7427_v37 = vld [vmem:[#allocation10] ss:$8 sps:$4 sm:$0xff]  }
 0x3dc   :  { %v1942_v19 = vmul.f32 0.9, %v6073_v39  ;;  %v7429_v39 = vld [vmem:[#allocation10 + $0x14] ss:$8 sps:$4 sm:$0xff]  }
 0x3dd   :  { %v6075_v44 = vpop.f32.mrf.mxu0 }
 0x3de   :  { %v5594_v42 = vpack.c.bf16 %v1942_v19, %v1941_v63  ;;  %v6076_v51 = vadd.f32 %v6075_v44, %v6074_v41  ;;  %v7433_v41 = vld [vmem:[#allocation10 + $0x10] ss:$8 sps:$4 sm:$0xff]   ;;  %v7435_v63 = vld [vmem:[#allocation10 + $0x24] ss:$8 sps:$4 sm:$0xff]   ;;  %v7439_v19 = vld [vmem:[#allocation10 + $0x20] ss:$8 sps:$4 sm:$0xff]  }
 0x3df   :  { %v6077_v56 = vpop.f32.mrf.mxu0  ;;  %v6590_v53 = vld [vmem:[#allocation2 + $0x60] sm:$0xff]   ;;  %v7441_v44 = vld [vmem:[#allocation10 + $0x34] ss:$8 sps:$4 sm:$0xff]  }
 0x3e0   :  { %5805 = vst [vmem:[#allocation2 + $0x68] sm:$0xff] %v5594_v42   ;;  %v1943_v9 = vmul.f32 0.9, %v6076_v51  ;;  %v7445_v42 = vld [vmem:[#allocation10 + $0x30] ss:$8 sps:$4 sm:$0xff]  }
 0x3e1   :  { %v6078_v55 = vpop.f32.mrf.mxu0  ;;  %v7451_v51 = vld [vmem:[#allocation10 + $0x40] ss:$8 sps:$4 sm:$0xff]  }
 0x3e2   :  { %v6079_v58 = vadd.f32 %v6078_v55, %v6077_v56  ;;  %v7447_v56 = vld [vmem:[#allocation10 + $0x44] ss:$8 sps:$4 sm:$0xff]   ;;  %v7453_v55 = vld [vmem:[#allocation10 + $0x54] ss:$8 sps:$4 sm:$0xff]  }
 0x3e3   :  { %v6080_v62 = vpop.f32.mrf.mxu0 }
 0x3e4   :  { %v1944_v16 = vmul.f32 0.9, %v6079_v58  ;;  %v7457_v58 = vld [vmem:[#allocation10 + $0x50] ss:$8 sps:$4 sm:$0xff]  }
 0x3e5   :  { %v6081_v22 = vpop.f32.mrf.mxu0 }
 0x3e6   :  { %v5599_v33 = vpack.c.bf16 %v1944_v16, %v1943_v9  ;;  %v6082_v45 = vadd.f32 %v6081_v22, %v6080_v62  ;;  %v7459_v62 = vld [vmem:[#allocation10 + $0x64] ss:$8 sps:$4 sm:$0xff]   ;;  %v7463_v9 = vld [vmem:[#allocation10 + $0x60] ss:$8 sps:$4 sm:$0xff]   ;;  %v7465_v16 = vld [vmem:[#allocation10 + $0x74] ss:$8 sps:$4 sm:$0xff]  }
 0x3e7   :  { %v6083_v52 = vpop.f32.mrf.mxu0  ;;  %v6588_v8 = vld [vmem:[#allocation2 + $0x68] sm:$0xff]   ;;  %v7469_v22 = vld [vmem:[#allocation10 + $0x70] ss:$8 sps:$4 sm:$0xff]  }
 0x3e8   :  { %5806 = vst [vmem:[#allocation2 + $0x70] sm:$0xff] %v5599_v33   ;;  %v1945_v18 = vmul.f32 0.9, %v6082_v45  ;;  %v7471_v33 = vld [vmem:[#allocation10 + $0x84] ss:$8 sps:$4 sm:$0xff]  }
 0x3e9   :  { %v6084_v15 = vpop.f32.mrf.mxu0  ;;  %v7477_v45 = vld [vmem:[#allocation10 + $0x94] ss:$8 sps:$4 sm:$0xff]  }
 0x3ea   :  { %v6085_v36 = vadd.f32 %v6084_v15, %v6083_v52  ;;  %v7475_v52 = vld [vmem:[#allocation10 + $0x80] ss:$8 sps:$4 sm:$0xff]   ;;  %v7481_v15 = vld [vmem:[#allocation10 + $0x90] ss:$8 sps:$4 sm:$0xff]  }
 0x3ec   :  { %v1946_v5 = vmul.f32 0.9, %v6085_v36  ;;  %v7483_v36 = vld [vmem:[#allocation10 + $0xa4] ss:$8 sps:$4 sm:$0xff]  }
 0x3ed   :  { %8204 = vst [vmem:[#allocation15_spill] sm:$0xff] %v7483_v36 }
 0x3ee   :  { %v5604_v43 = vpack.c.bf16 %v1946_v5, %v1945_v18  ;;  %v7487_v18 = vld [vmem:[#allocation10 + $0xa0] ss:$8 sps:$4 sm:$0xff]   ;;  %v7489_v5 = vld [vmem:[#allocation10 + $0xb4] ss:$8 sps:$4 sm:$0xff]  }
 0x3ef   :  { %v6586_v46 = vld [vmem:[#allocation2 + $0x70] sm:$0xff]   ;;  %8205 = vst [vmem:[#allocation16_spill] sm:$0xff] %v7487_v18  ;;  %8206 = vst [vmem:[#allocation17_spill] sm:$0xff] %v7489_v5 }
 0x3f0   :  { %5807 = vst [vmem:[#allocation2 + $0x78] sm:$0xff] %v5604_v43   ;;  %v7493_v43 = vld [vmem:[#allocation10 + $0xb0] ss:$8 sps:$4 sm:$0xff]  }
 0x3f1   :  { %8207 = vst [vmem:[#allocation18_spill] sm:$0xff] %v7493_v43 }
 0x3f7   :  { %v6584_v30 = vld [vmem:[#allocation2 + $0x78] sm:$0xff]  }
 0x3f8   :  { %6086 = vmatprep.subr.bf16.mxu1 %v6584_v30  ;;  %v7495_v30 = vld [vmem:[#allocation10 + $0xc4] ss:$8 sps:$4 sm:$0xff]  }
 0x3f9   :  { %6087 = vmatpush3.bf16.msra.mxu1 %v6585_v47  ;;  %8208 = vst [vmem:[#allocation19_spill] sm:$0xff] %v7495_v30  ;;  %v7499_v47 = vld [vmem:[#allocation10 + $0xc0] ss:$8 sps:$4 sm:$0xff]  }
 0x3fa   :  { %6088 = vmatprep.subr.bf16.mxu1 %v6586_v46  ;;  %8209 = vst [vmem:[#allocation20_spill] sm:$0xff] %v7499_v47  ;;  %v7501_v46 = vld [vmem:[#allocation10 + $0xd4] ss:$8 sps:$4 sm:$0xff]  }
 0x3fb   :  { %8210 = vst [vmem:[#allocation21_spill] sm:$0xff] %v7501_v46 }
 0x3fd   :  { %6089 = vmatpush3.bf16.msra.mxu1 %v6587_v13  ;;  %v7505_v13 = vld [vmem:[#allocation10 + $0xd0] ss:$8 sps:$4 sm:$0xff]  }
 0x3fe   :  { %6090 = vmatprep.subr.bf16.mxu1 %v6588_v8  ;;  %8211 = vst [vmem:[#allocation22_spill] sm:$0xff] %v7505_v13  ;;  %v7507_v8 = vld [vmem:[#allocation10 + $0xe4] ss:$8 sps:$4 sm:$0xff]  }
 0x3ff   :  { %8212 = vst [vmem:[#allocation23_spill] sm:$0xff] %v7507_v8 }
 0x401   :  { %6091 = vmatpush3.bf16.msra.mxu1 %v6589_v6  ;;  %v7511_v6 = vld [vmem:[#allocation10 + $0xe0] ss:$8 sps:$4 sm:$0xff]  }
 0x402   :  { %6092 = vmatprep.subr.bf16.mxu1 %v6590_v53  ;;  %8213 = vst [vmem:[#allocation24_spill] sm:$0xff] %v7511_v6  ;;  %v7513_v53 = vld [vmem:[#allocation10 + $0xf4] ss:$8 sps:$4 sm:$0xff]  }
 0x403   :  { %8214 = vst [vmem:[#allocation25_spill] sm:$0xff] %v7513_v53 }
 0x405   :  { %6093 = vmatpush3.bf16.msra.mxu1 %v6591_v49  ;;  %v7517_v49 = vld [vmem:[#allocation10 + $0xf0] ss:$8 sps:$4 sm:$0xff]  }
 0x406   :  { %6094 = vmatprep.subr.bf16.mxu1 %v6592_v38  ;;  %8215 = vst [vmem:[#allocation26_spill] sm:$0xff] %v7517_v49 }
 0x409   :  { %6095 = vmatpush3.bf16.msra.mxu1 %v6593_v57 }
 0x40a   :  { %6096 = vmatprep.subr.bf16.mxu1 %v6594_v31 }
 0x40d   :  { %6097 = vmatpush3.bf16.msra.mxu1 %v6595_v61 }
 0x40e   :  { %6098 = vmatprep.subr.bf16.mxu1 %v6596_v14 }
 0x411   :  { %6099 = vmatpush3.bf16.msra.mxu1 %v6597_v23 }
 0x412   :  { %6100 = vmatprep.subr.bf16.mxu1 %v6598_v25 }
 0x415   :  { %6101 = vmatpush3.bf16.msra.mxu1 %v6599_v28 }
 0x418   :  { %2556 = vmatmul.mubr.bf16.vlgmr.msra.gmra.mxu1 %v7427_v37 }
 0x419   :  { %2563 = vmatprep.mubr.bf16.mxu1 %v7429_v39 }
 0x420   :  { %2564 = vmatmul.mubr.bf16.gmra.mxu1 %v7433_v41 }
 0x421   :  { %2571 = vmatprep.mubr.bf16.mxu1 %v7435_v63 }
 0x428   :  { %2572 = vmatmul.mubr.bf16.gmra.mxu1 %v7439_v19 }
 0x429   :  { %2579 = vmatprep.mubr.bf16.mxu1 %v7441_v44 }
 0x430   :  { %2580 = vmatmul.mubr.bf16.gmra.mxu1 %v7445_v42 }
 0x431   :  { %2587 = vmatprep.mubr.bf16.mxu1 %v7447_v56 }
 0x438   :  { %2588 = vmatmul.mubr.bf16.gmra.mxu1 %v7451_v51 }
 0x439   :  { %2595 = vmatprep.mubr.bf16.mxu1 %v7453_v55 }
 0x440   :  { %2596 = vmatmul.mubr.bf16.gmra.mxu1 %v7457_v58 }
 0x441   :  { %2603 = vmatprep.mubr.bf16.mxu1 %v7459_v62 }
 0x448   :  { %2604 = vmatmul.mubr.bf16.gmra.mxu1 %v7463_v9 }
 0x449   :  { %2611 = vmatprep.mubr.bf16.mxu1 %v7465_v16 }
 0x450   :  { %2612 = vmatmul.mubr.bf16.gmra.mxu1 %v7469_v22 }
 0x451   :  { %2619 = vmatprep.mubr.bf16.mxu1 %v7471_v33 }
 0x458   :  { %2620 = vmatmul.mubr.bf16.gmra.mxu1 %v7475_v52 }
 0x459   :  { %2627 = vmatprep.mubr.bf16.mxu1 %v7477_v45 }
 0x460   :  { %2628 = vmatmul.mubr.bf16.gmra.mxu1 %v7481_v15 }
 0x461   :  { %2635 = vmatprep.mubr.bf16.mxu1 %v7483_v36 }
 0x468   :  { %2636 = vmatmul.mubr.bf16.gmra.mxu1 %v7487_v18 }
 0x469   :  { %2643 = vmatprep.mubr.bf16.mxu1 %v7489_v5 }
 0x470   :  { %2644 = vmatmul.mubr.bf16.gmra.mxu1 %v7493_v43 }
 0x471   :  { %2651 = vmatprep.mubr.bf16.mxu1 %v7495_v30 }
 0x478   :  { %2652 = vmatmul.mubr.bf16.gmra.mxu1 %v7499_v47 }
 0x479   :  { %2659 = vmatprep.mubr.bf16.mxu1 %v7501_v46 }
 0x480   :  { %2660 = vmatmul.mubr.bf16.gmra.mxu1 %v7505_v13 }
 0x481   :  { %2667 = vmatprep.mubr.bf16.mxu1 %v7507_v8 }
 0x488   :  { %2668 = vmatmul.mubr.bf16.gmra.mxu1 %v7511_v6 }
 0x489   :  { %2675 = vmatprep.mubr.bf16.mxu1 %v7513_v53 }
 0x490   :  { %2676 = vmatmul.mubr.bf16.gmra.mxu1 %v7517_v49 }
 0x4d8   :  { %v6102_v38 = vpop.f32.mrf.mxu1 }
 0x4da   :  { %v6103_v57 = vpop.f32.mrf.mxu1 }
 0x4db   :  { %v6104_v31 = vadd.f32 %v6103_v57, %v6102_v38 }
 0x4dc   :  { %v6105_v61 = vpop.f32.mrf.mxu1 }
 0x4dd   :  { %v2684_v23 = vmul.f32 0.9, %v6104_v31 }
 0x4de   :  { %v6106_v14 = vpop.f32.mrf.mxu1 }
 0x4df   :  { %v6107_v25 = vadd.f32 %v6106_v14, %v6105_v61  ;;  %v2780_v46 = vadd.f32 %v2684_v23, %v8202_v59 }
 0x4e0   :  { %v6108_v28 = vpop.f32.mrf.mxu1 }
 0x4e1   :  { %v2685_v8 = vmul.f32 0.9, %v6107_v25 }
 0x4e2   :  { %v6109_v13 = vpop.f32.mrf.mxu1 }
 0x4e3   :  { %v2781_v6 = vadd.f32 %v2685_v8, %v7253_v60  ;;  %v6110_v47 = vadd.f32 %v6109_v13, %v6108_v28 }
 0x4e4   :  { %v6111_v53 = vpop.f32.mrf.mxu1 }
 0x4e5   :  { %v5609_v30 = vpack.c.bf16 %v2781_v6, %v2780_v46  ;;  %v2686_v49 = vmul.f32 0.9, %v6110_v47 }
 0x4e6   :  { %v6112_v43 = vpop.f32.mrf.mxu1 }
 0x4e7   :  { %5610 = vst [vmem:[#allocation2] sm:$0xff] %v5609_v30   ;;  %v6113_v5 = vadd.f32 %v6112_v43, %v6111_v53  ;;  %v2782_v31 = vadd.f32 %v2686_v49, %v7269_v11 }
 0x4e8   :  { %v6114_v18 = vpop.f32.mrf.mxu1 }
 0x4e9   :  { %v2687_v38 = vmul.f32 0.9, %v6113_v5 }
 0x4ea   :  { %v6115_v57 = vpop.f32.mrf.mxu1 }
 0x4eb   :  { %v2783_v61 = vadd.f32 %v2687_v38, %v7273_v7  ;;  %v6116_v14 = vadd.f32 %v6115_v57, %v6114_v18 }
 0x4ec   :  { %v6117_v25 = vpop.f32.mrf.mxu1 }
 0x4ed   :  { %v5614_v36 = vpack.c.bf16 %v2783_v61, %v2782_v31  ;;  %v2688_v8 = vmul.f32 0.9, %v6116_v14 }
 0x4ee   :  { %v6118_v23 = vpop.f32.mrf.mxu1 }
 0x4ef   :  { %5808 = vst [vmem:[#allocation2 + $0x8] sm:$0xff] %v5614_v36   ;;  %v6119_v13 = vadd.f32 %v6118_v23, %v6117_v25  ;;  %v2784_v30 = vadd.f32 %v2688_v8, %v7289_v54 }
 0x4f0   :  { %v6120_v28 = vpop.f32.mrf.mxu1 }
 0x4f1   :  { %v2689_v46 = vmul.f32 0.9, %v6119_v13 }
 0x4f2   :  { %v6121_v6 = vpop.f32.mrf.mxu1 }
 0x4f3   :  { %v2785_v43 = vadd.f32 %v2689_v46, %v7293_v3  ;;  %v6122_v5 = vadd.f32 %v6121_v6, %v6120_v28 }
 0x4f4   :  { %v6123_v47 = vpop.f32.mrf.mxu1 }
 0x4f5   :  { %v5619_v53 = vpack.c.bf16 %v2785_v43, %v2784_v30  ;;  %v2690_v38 = vmul.f32 0.9, %v6122_v5 }
 0x4f6   :  { %v6124_v49 = vpop.f32.mrf.mxu1 }
 0x4f7   :  { %5809 = vst [vmem:[#allocation2 + $0x10] sm:$0xff] %v5619_v53   ;;  %v6125_v18 = vadd.f32 %v6124_v49, %v6123_v47  ;;  %v2786_v36 = vadd.f32 %v2690_v38, %v7309_v48 }
 0x4f8   :  { %v6126_v57 = vpop.f32.mrf.mxu1 }
 0x4f9   :  { %v2691_v31 = vmul.f32 0.9, %v6125_v18 }
 0x4fa   :  { %v6127_v61 = vpop.f32.mrf.mxu1 }
 0x4fb   :  { %v2787_v14 = vadd.f32 %v2691_v31, %v7313_v1  ;;  %v6128_v25 = vadd.f32 %v6127_v61, %v6126_v57 }
 0x4fc   :  { %v6129_v23 = vpop.f32.mrf.mxu1 }
 0x4fd   :  { %v5624_v13 = vpack.c.bf16 %v2787_v14, %v2786_v36  ;;  %v2692_v46 = vmul.f32 0.9, %v6128_v25 }
 0x4fe   :  { %v6130_v8 = vpop.f32.mrf.mxu1 }
 0x4ff   :  { %5810 = vst [vmem:[#allocation2 + $0x18] sm:$0xff] %v5624_v13   ;;  %v6131_v28 = vadd.f32 %v6130_v8, %v6129_v23  ;;  %v2788_v5 = vadd.f32 %v2692_v46, %v8203_v10 }
 0x500   :  { %v6132_v6 = vpop.f32.mrf.mxu1 }
 0x501   :  { %v2693_v30 = vmul.f32 0.9, %v6131_v28 }
 0x502   :  { %v6133_v43 = vpop.f32.mrf.mxu1 }
 0x503   :  { %v2789_v47 = vadd.f32 %v2693_v30, %v7261_v40  ;;  %v6134_v53 = vadd.f32 %v6133_v43, %v6132_v6 }
 0x504   :  { %v6135_v49 = vpop.f32.mrf.mxu1 }
 0x505   :  { %v5629_v18 = vpack.c.bf16 %v2789_v47, %v2788_v5  ;;  %v2694_v31 = vmul.f32 0.9, %v6134_v53 }
 0x506   :  { %v6136_v38 = vpop.f32.mrf.mxu1 }
 0x507   :  { %5811 = vst [vmem:[#allocation2 + $0x20] sm:$0xff] %v5629_v18   ;;  %v6137_v57 = vadd.f32 %v6136_v38, %v6135_v49  ;;  %v2790_v25 = vadd.f32 %v2694_v31, %v7277_v12 }
 0x508   :  { %v6138_v61 = vpop.f32.mrf.mxu1 }
 0x509   :  { %v2695_v36 = vmul.f32 0.9, %v6137_v57 }
 0x50a   :  { %v6139_v14 = vpop.f32.mrf.mxu1 }
 0x50b   :  { %v2791_v23 = vadd.f32 %v2695_v36, %v7281_v2  ;;  %v6140_v13 = vadd.f32 %v6139_v14, %v6138_v61 }
 0x50c   :  { %v6141_v8 = vpop.f32.mrf.mxu1 }
 0x50d   :  { %v5634_v28 = vpack.c.bf16 %v2791_v23, %v2790_v25  ;;  %v2696_v30 = vmul.f32 0.9, %v6140_v13 }
 0x50e   :  { %v6142_v46 = vpop.f32.mrf.mxu1 }
 0x50f   :  { %5812 = vst [vmem:[#allocation2 + $0x28] sm:$0xff] %v5634_v28   ;;  %v6143_v6 = vadd.f32 %v6142_v46, %v6141_v8  ;;  %v2792_v53 = vadd.f32 %v2696_v30, %v7297_v0 }
 0x510   :  { %v6144_v43 = vpop.f32.mrf.mxu1 }
 0x511   :  { %v2697_v5 = vmul.f32 0.9, %v6143_v6 }
 0x512   :  { %v6145_v47 = vpop.f32.mrf.mxu1 }
 0x513   :  { %v2793_v49 = vadd.f32 %v2697_v5, %v7301_v4  ;;  %v6146_v18 = vadd.f32 %v6145_v47, %v6144_v43 }
 0x514   :  { %v6147_v38 = vpop.f32.mrf.mxu1 }
 0x515   :  { %v5639_v57 = vpack.c.bf16 %v2793_v49, %v2792_v53  ;;  %v2698_v36 = vmul.f32 0.9, %v6146_v18 }
 0x516   :  { %v6148_v31 = vpop.f32.mrf.mxu1 }
 0x517   :  { %5813 = vst [vmem:[#allocation2 + $0x30] sm:$0xff] %v5639_v57   ;;  %v6149_v61 = vadd.f32 %v6148_v31, %v6147_v38  ;;  %v2794_v13 = vadd.f32 %v2698_v36, %v7317_v29 }
 0x518   :  { %v6150_v14 = vpop.f32.mrf.mxu1 }
 0x519   :  { %v2699_v25 = vmul.f32 0.9, %v6149_v61 }
 0x51a   :  { %v6151_v23 = vpop.f32.mrf.mxu1 }
 0x51b   :  { %v2795_v8 = vadd.f32 %v2699_v25, %v7321_v20  ;;  %v6152_v28 = vadd.f32 %v6151_v23, %v6150_v14 }
 0x51c   :  { %v6153_v46 = vpop.f32.mrf.mxu1 }
 0x51d   :  { %v5644_v6 = vpack.c.bf16 %v2795_v8, %v2794_v13  ;;  %v2700_v5 = vmul.f32 0.9, %v6152_v28 }
 0x51e   :  { %v6154_v30 = vpop.f32.mrf.mxu1 }
 0x51f   :  { %5814 = vst [vmem:[#allocation2 + $0x38] sm:$0xff] %v5644_v6   ;;  %v6155_v43 = vadd.f32 %v6154_v30, %v6153_v46  ;;  %v2796_v18 = vadd.f32 %v2700_v5, %v7329_v35 }
 0x520   :  { %v6156_v47 = vpop.f32.mrf.mxu1 }
 0x521   :  { %v2701_v53 = vmul.f32 0.9, %v6155_v43 }
 0x522   :  { %v6157_v49 = vpop.f32.mrf.mxu1 }
 0x523   :  { %v2797_v38 = vadd.f32 %v2701_v53, %v7333_v26  ;;  %v6158_v57 = vadd.f32 %v6157_v49, %v6156_v47 }
 0x524   :  { %v6159_v31 = vpop.f32.mrf.mxu1 }
 0x525   :  { %v5649_v61 = vpack.c.bf16 %v2797_v38, %v2796_v18  ;;  %v2702_v25 = vmul.f32 0.9, %v6158_v57 }
 0x526   :  { %v6160_v36 = vpop.f32.mrf.mxu1 }
 0x527   :  { %5815 = vst [vmem:[#allocation2 + $0x40] sm:$0xff] %v5649_v61   ;;  %v6161_v14 = vadd.f32 %v6160_v36, %v6159_v31  ;;  %v2798_v28 = vadd.f32 %v2702_v25, %v7339_v21 }
 0x528   :  { %v6162_v23 = vpop.f32.mrf.mxu1 }
 0x529   :  { %v2703_v13 = vmul.f32 0.9, %v6161_v14 }
 0x52a   :  { %v6163_v8 = vpop.f32.mrf.mxu1 }
 0x52b   :  { %v2799_v46 = vadd.f32 %v2703_v13, %v7343_v32  ;;  %v6164_v6 = vadd.f32 %v6163_v8, %v6162_v23 }
 0x52c   :  { %v6165_v30 = vpop.f32.mrf.mxu1 }
 0x52d   :  { %v5654_v43 = vpack.c.bf16 %v2799_v46, %v2798_v28  ;;  %v2704_v53 = vmul.f32 0.9, %v6164_v6 }
 0x52e   :  { %v6166_v5 = vpop.f32.mrf.mxu1 }
 0x52f   :  { %5816 = vst [vmem:[#allocation2 + $0x48] sm:$0xff] %v5654_v43   ;;  %v6167_v47 = vadd.f32 %v6166_v5, %v6165_v30  ;;  %v2800_v57 = vadd.f32 %v2704_v53, %v7349_v34 }
 0x530   :  { %v6168_v49 = vpop.f32.mrf.mxu1 }
 0x531   :  { %v2705_v18 = vmul.f32 0.9, %v6167_v47 }
 0x532   :  { %v6169_v38 = vpop.f32.mrf.mxu1 }
 0x533   :  { %v2801_v31 = vadd.f32 %v2705_v18, %v7353_v17  ;;  %v6170_v61 = vadd.f32 %v6169_v38, %v6168_v49 }
 0x534   :  { %v6171_v36 = vpop.f32.mrf.mxu1 }
 0x535   :  { %v5659_v14 = vpack.c.bf16 %v2801_v31, %v2800_v57  ;;  %v2706_v13 = vmul.f32 0.9, %v6170_v61 }
 0x536   :  { %v6172_v25 = vpop.f32.mrf.mxu1 }
 0x537   :  { %5817 = vst [vmem:[#allocation2 + $0x50] sm:$0xff] %v5659_v14   ;;  %v6173_v23 = vadd.f32 %v6172_v25, %v6171_v36  ;;  %v2802_v6 = vadd.f32 %v2706_v13, %v7359_v24 }
 0x538   :  { %v6174_v8 = vpop.f32.mrf.mxu1 }
 0x539   :  { %v2707_v28 = vmul.f32 0.9, %v6173_v23 }
 0x53a   :  { %v6175_v46 = vpop.f32.mrf.mxu1 }
 0x53b   :  { %v2803_v30 = vadd.f32 %v2707_v28, %v7363_v50  ;;  %v6176_v43 = vadd.f32 %v6175_v46, %v6174_v8 }
 0x53c   :  { %v6177_v5 = vpop.f32.mrf.mxu1 }
 0x53d   :  { %v5664_v47 = vpack.c.bf16 %v2803_v30, %v2802_v6  ;;  %v2708_v53 = vmul.f32 0.9, %v6176_v43 }
 0x53e   :  { %v6178_v34 = vpop.f32.mrf.mxu1 }
 0x53f   :  { %5818 = vst [vmem:[#allocation2 + $0x58] sm:$0xff] %v5664_v47   ;;  %v6179_v49 = vadd.f32 %v6178_v34, %v6177_v5  ;;  %v2804_v38 = vadd.f32 %v2708_v53, %v7369_v27 }
 0x540   :  { %v6180_v18 = vpop.f32.mrf.mxu1 }
 0x541   :  { %v2709_v57 = vmul.f32 0.9, %v6179_v49 }
 0x542   :  { %v6181_v31 = vpop.f32.mrf.mxu1 }
 0x543   :  { %v5669_v61 = vpack.c.bf16 %v2709_v57, %v2804_v38  ;;  %v6182_v14 = vadd.f32 %v6181_v31, %v6180_v18 }
 0x544   :  { %v6183_v36 = vpop.f32.mrf.mxu1 }
 0x545   :  { %5819 = vst [vmem:[#allocation2 + $0x60] sm:$0xff] %v5669_v61   ;;  %v2710_v28 = vmul.f32 0.9, %v6182_v14 }
 0x546   :  { %v6184_v25 = vpop.f32.mrf.mxu1 }
 0x547   :  { %v6185_v13 = vadd.f32 %v6184_v25, %v6183_v36 }
 0x548   :  { %v6186_v23 = vpop.f32.mrf.mxu1 }
 0x549   :  { %v2711_v8 = vmul.f32 0.9, %v6185_v13 }
 0x54a   :  { %v6187_v46 = vpop.f32.mrf.mxu1 }
 0x54b   :  { %v5674_v6 = vpack.c.bf16 %v2711_v8, %v2710_v28  ;;  %v6188_v43 = vadd.f32 %v6187_v46, %v6186_v23  ;;  %v6649_v28 = vld [vmem:[#allocation2 + $0x38] sm:$0xff]   ;;  %v6651_v8 = vld [vmem:[#allocation2 + $0x30] sm:$0xff]  }
 0x54c   :  { %v6189_v30 = vpop.f32.mrf.mxu1 }
 0x54d   :  { %5820 = vst [vmem:[#allocation2 + $0x68] sm:$0xff] %v5674_v6   ;;  %v2712_v53 = vmul.f32 0.9, %v6188_v43  ;;  %v6653_v6 = vld [vmem:[#allocation2 + $0x28] sm:$0xff]   ;;  %v6656_v43 = vld [vmem:[#allocation2 + $0x58] sm:$0xff]  }
 0x54e   :  { %v6190_v34 = vpop.f32.mrf.mxu1 }
 0x54f   :  { %v6191_v5 = vadd.f32 %v6190_v34, %v6189_v30  ;;  %v6654_v30 = vld [vmem:[#allocation2 + $0x60] sm:$0xff]   ;;  %v6657_v34 = vld [vmem:[#allocation2 + $0x18] sm:$0xff]  }
 0x550   :  { %v6192_v47 = vpop.f32.mrf.mxu1 }
 0x551   :  { %v2713_v49 = vmul.f32 0.9, %v6191_v5  ;;  %v6658_v5 = vld [vmem:[#allocation2 + $0x50] sm:$0xff]  }
 0x552   :  { %v6193_v27 = vpop.f32.mrf.mxu1 }
 0x553   :  { %v5679_v38 = vpack.c.bf16 %v2713_v49, %v2712_v53  ;;  %v6194_v18 = vadd.f32 %v6193_v27, %v6192_v47  ;;  %v6655_v27 = vld [vmem:[#allocation2 + $0x20] sm:$0xff]   ;;  %v6659_v47 = vld [vmem:[#allocation2 + $0x10] sm:$0xff]   ;;  %v6660_v53 = vld [vmem:[#allocation2 + $0x48] sm:$0xff]  }
 0x554   :  { %v6195_v57 = vpop.f32.mrf.mxu1  ;;  %v6652_v46 = vld [vmem:[#allocation2 + $0x68] sm:$0xff]  }
 0x555   :  { %5821 = vst [vmem:[#allocation2 + $0x70] sm:$0xff] %v5679_v38   ;;  %v2714_v36 = vmul.f32 0.9, %v6194_v18  ;;  %v6661_v49 = vld [vmem:[#allocation2 + $0x8] sm:$0xff]   ;;  %v6662_v38 = vld [vmem:[#allocation2 + $0x40] sm:$0xff]  }
 0x556   :  { %v6196_v31 = vpop.f32.mrf.mxu1 }
 0x557   :  { %v6197_v61 = vadd.f32 %v6196_v31, %v6195_v57  ;;  %v6663_v57 = vld [vmem:[#allocation2] sm:$0xff]  }
 0x559   :  { %v2715_v14 = vmul.f32 0.9, %v6197_v61 }
 0x55b   :  { %v5684_v25 = vpack.c.bf16 %v2715_v14, %v2714_v36 }
 0x55c   :  { %v6650_v23 = vld [vmem:[#allocation2 + $0x70] sm:$0xff]  }
 0x55d   :  { %5822 = vst [vmem:[#allocation2 + $0x78] sm:$0xff] %v5684_v25  }
 0x564   :  { %v6648_v13 = vld [vmem:[#allocation2 + $0x78] sm:$0xff]  }
 0x565   :  { %6198 = vmatprep.subr.bf16.mxu0 %v6648_v13 }
 0x566   :  { %6199 = vmatpush3.bf16.msra.mxu0 %v6649_v28 }
 0x567   :  { %6200 = vmatprep.subr.bf16.mxu0 %v6650_v23 }
 0x56a   :  { %6201 = vmatpush3.bf16.msra.mxu0 %v6651_v8 }
 0x56b   :  { %6202 = vmatprep.subr.bf16.mxu0 %v6652_v46 }
 0x56e   :  { %6203 = vmatpush3.bf16.msra.mxu0 %v6653_v6 }
 0x56f   :  { %6204 = vmatprep.subr.bf16.mxu0 %v6654_v30 }
 0x572   :  { %6205 = vmatpush3.bf16.msra.mxu0 %v6655_v27 }
 0x573   :  { %6206 = vmatprep.subr.bf16.mxu0 %v6656_v43 }
 0x576   :  { %6207 = vmatpush3.bf16.msra.mxu0 %v6657_v34 }
 0x577   :  { %6208 = vmatprep.subr.bf16.mxu0 %v6658_v5 }
 0x57a   :  { %6209 = vmatpush3.bf16.msra.mxu0 %v6659_v47 }
 0x57b   :  { %6210 = vmatprep.subr.bf16.mxu0 %v6660_v53 }
 0x57e   :  { %6211 = vmatpush3.bf16.msra.mxu0 %v6661_v49 }
 0x57f   :  { %6212 = vmatprep.subr.bf16.mxu0 %v6662_v38 }
 0x582   :  { %6213 = vmatpush3.bf16.msra.mxu0 %v6663_v57 }
 0x585   :  { %3325 = vmatmul.mubr.bf16.vlgmr.msra.gmra.mxu0 %v7427_v37  ;;  %v8216_v37 = vld [vmem:[#allocation15_spill] sm:$0xff] }
 0x586   :  { %3332 = vmatprep.mubr.bf16.mxu0 %v7429_v39  ;;  %v8217_v39 = vld [vmem:[#allocation16_spill] sm:$0xff] }
 0x58d   :  { %3333 = vmatmul.mubr.bf16.gmra.mxu0 %v7433_v41  ;;  %v8218_v41 = vld [vmem:[#allocation17_spill] sm:$0xff] }
 0x58e   :  { %3340 = vmatprep.mubr.bf16.mxu0 %v7435_v63  ;;  %v8219_v63 = vld [vmem:[#allocation18_spill] sm:$0xff] }
 0x595   :  { %3341 = vmatmul.mubr.bf16.gmra.mxu0 %v7439_v19  ;;  %v8220_v19 = vld [vmem:[#allocation19_spill] sm:$0xff] }
 0x596   :  { %3348 = vmatprep.mubr.bf16.mxu0 %v7441_v44  ;;  %v8221_v44 = vld [vmem:[#allocation20_spill] sm:$0xff] }
 0x59d   :  { %3349 = vmatmul.mubr.bf16.gmra.mxu0 %v7445_v42  ;;  %v8222_v42 = vld [vmem:[#allocation21_spill] sm:$0xff] }
 0x59e   :  { %3356 = vmatprep.mubr.bf16.mxu0 %v7447_v56  ;;  %v8223_v56 = vld [vmem:[#allocation22_spill] sm:$0xff] }
 0x5a5   :  { %3357 = vmatmul.mubr.bf16.gmra.mxu0 %v7451_v51  ;;  %v8224_v51 = vld [vmem:[#allocation23_spill] sm:$0xff] }
 0x5a6   :  { %3364 = vmatprep.mubr.bf16.mxu0 %v7453_v55  ;;  %v8225_v55 = vld [vmem:[#allocation24_spill] sm:$0xff] }
 0x5ad   :  { %3365 = vmatmul.mubr.bf16.gmra.mxu0 %v7457_v58  ;;  %v8226_v58 = vld [vmem:[#allocation25_spill] sm:$0xff] }
 0x5ae   :  { %3372 = vmatprep.mubr.bf16.mxu0 %v7459_v62  ;;  %v8227_v62 = vld [vmem:[#allocation26_spill] sm:$0xff] }
 0x5b5   :  { %3373 = vmatmul.mubr.bf16.gmra.mxu0 %v7463_v9 }
 0x5b6   :  { %3380 = vmatprep.mubr.bf16.mxu0 %v7465_v16 }
 0x5bd   :  { %3381 = vmatmul.mubr.bf16.gmra.mxu0 %v7469_v22 }
 0x5be   :  { %3388 = vmatprep.mubr.bf16.mxu0 %v7471_v33 }
 0x5c5   :  { %3389 = vmatmul.mubr.bf16.gmra.mxu0 %v7475_v52 }
 0x5c6   :  { %3396 = vmatprep.mubr.bf16.mxu0 %v7477_v45 }
 0x5cd   :  { %3397 = vmatmul.mubr.bf16.gmra.mxu0 %v7481_v15 }
 0x5ce   :  { %3404 = vmatprep.mubr.bf16.mxu0 %v8216_v37 }
 0x5d5   :  { %3405 = vmatmul.mubr.bf16.gmra.mxu0 %v8217_v39 }
 0x5d6   :  { %3412 = vmatprep.mubr.bf16.mxu0 %v8218_v41 }
 0x5dd   :  { %3413 = vmatmul.mubr.bf16.gmra.mxu0 %v8219_v63 }
 0x5de   :  { %3420 = vmatprep.mubr.bf16.mxu0 %v8220_v19 }
 0x5e5   :  { %3421 = vmatmul.mubr.bf16.gmra.mxu0 %v8221_v44 }
 0x5e6   :  { %3428 = vmatprep.mubr.bf16.mxu0 %v8222_v42 }
 0x5ed   :  { %3429 = vmatmul.mubr.bf16.gmra.mxu0 %v8223_v56 }
 0x5ee   :  { %3436 = vmatprep.mubr.bf16.mxu0 %v8224_v51 }
 0x5f5   :  { %3437 = vmatmul.mubr.bf16.gmra.mxu0 %v8225_v55 }
 0x5f6   :  { %3444 = vmatprep.mubr.bf16.mxu0 %v8226_v58 }
 0x5fd   :  { %3445 = vmatmul.mubr.bf16.gmra.mxu0 %v8227_v62 }
 0x645   :  { %v6214_v9 = vpop.f32.mrf.mxu0 }
 0x647   :  { %v6215_v16 = vpop.f32.mrf.mxu0 }
 0x648   :  { %v6216_v22 = vadd.f32 %v6215_v16, %v6214_v9 }
 0x649   :  { %v6217_v33 = vpop.f32.mrf.mxu0 }
 0x64a   :  { %v3453_v45 = vmul.f32 0.9, %v6216_v22 }
 0x64b   :  { %v6218_v52 = vpop.f32.mrf.mxu0 }
 0x64c   :  { %v6219_v15 = vadd.f32 %v6218_v52, %v6217_v33  ;;  %v3549_v36 = vadd.f32 %v3453_v45, %v8202_v59 }
 0x64d   :  { %v6220_v18 = vpop.f32.mrf.mxu0 }
 0x64e   :  { %v3454_v31 = vmul.f32 0.9, %v6219_v15 }
 0x64f   :  { %v6221_v61 = vpop.f32.mrf.mxu0 }
 0x650   :  { %v3550_v14 = vadd.f32 %v3454_v31, %v7253_v60  ;;  %v6222_v25 = vadd.f32 %v6221_v61, %v6220_v18 }
 0x651   :  { %v6223_v13 = vpop.f32.mrf.mxu0 }
 0x652   :  { %v5689_v28 = vpack.c.bf16 %v3550_v14, %v3549_v36  ;;  %v3455_v8 = vmul.f32 0.9, %v6222_v25 }
 0x653   :  { %v6224_v23 = vpop.f32.mrf.mxu0 }
 0x654   :  { %5690 = vst [vmem:[#allocation2] sm:$0xff] %v5689_v28   ;;  %v6225_v46 = vadd.f32 %v6224_v23, %v6223_v13  ;;  %v3551_v43 = vadd.f32 %v3455_v8, %v7269_v11  ;;  %v6682_v8 = vld [vmem:[#allocation10 + $0x4] ss:$8 sps:$4 sm:$0xff]  }
 0x655   :  { %v6226_v6 = vpop.f32.mrf.mxu0  ;;  %4093 = vmatprep.mubr.bf16.mxu1 %v6682_v8 }
 0x656   :  { %v3456_v30 = vmul.f32 0.9, %v6225_v46 }
 0x657   :  { %v6227_v27 = vpop.f32.mrf.mxu0 }
 0x658   :  { %v3552_v34 = vadd.f32 %v3456_v30, %v7273_v7  ;;  %v6228_v5 = vadd.f32 %v6227_v27, %v6226_v6 }
 0x659   :  { %v6229_v47 = vpop.f32.mrf.mxu0 }
 0x65a   :  { %v5694_v53 = vpack.c.bf16 %v3552_v34, %v3551_v43  ;;  %v3457_v38 = vmul.f32 0.9, %v6228_v5 }
 0x65b   :  { %v6230_v49 = vpop.f32.mrf.mxu0 }
 0x65c   :  { %5823 = vst [vmem:[#allocation2 + $0x8] sm:$0xff] %v5694_v53   ;;  %v6231_v57 = vadd.f32 %v6230_v49, %v6229_v47  ;;  %v3553_v63 = vadd.f32 %v3457_v38, %v7289_v54 }
 0x65d   :  { %v6232_v37 = vpop.f32.mrf.mxu0 }
 0x65e   :  { %v3458_v39 = vmul.f32 0.9, %v6231_v57 }
 0x65f   :  { %v6233_v41 = vpop.f32.mrf.mxu0 }
 0x660   :  { %v3554_v19 = vadd.f32 %v3458_v39, %v7293_v3  ;;  %v6234_v44 = vadd.f32 %v6233_v41, %v6232_v37 }
 0x661   :  { %v6235_v42 = vpop.f32.mrf.mxu0 }
 0x662   :  { %v5699_v56 = vpack.c.bf16 %v3554_v19, %v3553_v63  ;;  %v3459_v55 = vmul.f32 0.9, %v6234_v44 }
 0x663   :  { %v6236_v51 = vpop.f32.mrf.mxu0 }
 0x664   :  { %5824 = vst [vmem:[#allocation2 + $0x10] sm:$0xff] %v5699_v56   ;;  %v6237_v58 = vadd.f32 %v6236_v51, %v6235_v42  ;;  %v3555_v22 = vadd.f32 %v3459_v55, %v7309_v48 }
 0x665   :  { %v6238_v62 = vpop.f32.mrf.mxu0 }
 0x666   :  { %v3460_v9 = vmul.f32 0.9, %v6237_v58 }
 0x667   :  { %v6239_v16 = vpop.f32.mrf.mxu0 }
 0x668   :  { %v3556_v33 = vadd.f32 %v3460_v9, %v7313_v1  ;;  %v6240_v52 = vadd.f32 %v6239_v16, %v6238_v62 }
 0x669   :  { %v6241_v45 = vpop.f32.mrf.mxu0 }
 0x66a   :  { %v5704_v15 = vpack.c.bf16 %v3556_v33, %v3555_v22  ;;  %v3461_v31 = vmul.f32 0.9, %v6240_v52 }
 0x66b   :  { %v6242_v18 = vpop.f32.mrf.mxu0 }
 0x66c   :  { %5825 = vst [vmem:[#allocation2 + $0x18] sm:$0xff] %v5704_v15   ;;  %v6243_v61 = vadd.f32 %v6242_v18, %v6241_v45  ;;  %v3557_v13 = vadd.f32 %v3461_v31, %v8203_v10 }
 0x66d   :  { %v6244_v36 = vpop.f32.mrf.mxu0 }
 0x66e   :  { %v3462_v14 = vmul.f32 0.9, %v6243_v61 }
 0x66f   :  { %v6245_v25 = vpop.f32.mrf.mxu0 }
 0x670   :  { %v3558_v28 = vadd.f32 %v3462_v14, %v7261_v40  ;;  %v6246_v23 = vadd.f32 %v6245_v25, %v6244_v36 }
 0x671   :  { %v6247_v46 = vpop.f32.mrf.mxu0 }
 0x672   :  { %v5709_v6 = vpack.c.bf16 %v3558_v28, %v3557_v13  ;;  %v3463_v27 = vmul.f32 0.9, %v6246_v23 }
 0x673   :  { %v6248_v30 = vpop.f32.mrf.mxu0 }
 0x674   :  { %5826 = vst [vmem:[#allocation2 + $0x20] sm:$0xff] %v5709_v6   ;;  %v6249_v43 = vadd.f32 %v6248_v30, %v6247_v46  ;;  %v3559_v53 = vadd.f32 %v3463_v27, %v7277_v12 }
 0x675   :  { %v6250_v34 = vpop.f32.mrf.mxu0 }
 0x676   :  { %v3464_v5 = vmul.f32 0.9, %v6249_v43 }
 0x677   :  { %v6251_v47 = vpop.f32.mrf.mxu0 }
 0x678   :  { %v3560_v49 = vadd.f32 %v3464_v5, %v7281_v2  ;;  %v6252_v38 = vadd.f32 %v6251_v47, %v6250_v34 }
 0x679   :  { %v6253_v57 = vpop.f32.mrf.mxu0 }
 0x67a   :  { %v5714_v37 = vpack.c.bf16 %v3560_v49, %v3559_v53  ;;  %v3465_v41 = vmul.f32 0.9, %v6252_v38 }
 0x67b   :  { %v6254_v39 = vpop.f32.mrf.mxu0 }
 0x67c   :  { %5827 = vst [vmem:[#allocation2 + $0x28] sm:$0xff] %v5714_v37   ;;  %v6255_v63 = vadd.f32 %v6254_v39, %v6253_v57  ;;  %v3561_v56 = vadd.f32 %v3465_v41, %v7297_v0 }
 0x67d   :  { %v6256_v19 = vpop.f32.mrf.mxu0 }
 0x67e   :  { %v3466_v44 = vmul.f32 0.9, %v6255_v63 }
 0x67f   :  { %v6257_v42 = vpop.f32.mrf.mxu0 }
 0x680   :  { %v3562_v51 = vadd.f32 %v3466_v44, %v7301_v4  ;;  %v6258_v55 = vadd.f32 %v6257_v42, %v6256_v19 }
 0x681   :  { %v6259_v58 = vpop.f32.mrf.mxu0 }
 0x682   :  { %v5719_v62 = vpack.c.bf16 %v3562_v51, %v3561_v56  ;;  %v3467_v16 = vmul.f32 0.9, %v6258_v55 }
 0x683   :  { %v6260_v9 = vpop.f32.mrf.mxu0 }
 0x684   :  { %5828 = vst [vmem:[#allocation2 + $0x30] sm:$0xff] %v5719_v62   ;;  %v6261_v22 = vadd.f32 %v6260_v9, %v6259_v58  ;;  %v3563_v15 = vadd.f32 %v3467_v16, %v7317_v29  ;;  %v8228_v58 = vld [vmem:[#allocation30_spill] sm:$0xff] }
 0x685   :  { %v6262_v33 = vpop.f32.mrf.mxu0 }
 0x686   :  { %v3468_v52 = vmul.f32 0.9, %v6261_v22 }
 0x687   :  { %v6263_v45 = vpop.f32.mrf.mxu0 }
 0x688   :  { %v3564_v18 = vadd.f32 %v3468_v52, %v7321_v20  ;;  %v6264_v31 = vadd.f32 %v6263_v45, %v6262_v33 }
 0x689   :  { %v6265_v61 = vpop.f32.mrf.mxu0 }
 0x68a   :  { %v5724_v36 = vpack.c.bf16 %v3564_v18, %v3563_v15  ;;  %v3469_v25 = vmul.f32 0.9, %v6264_v31 }
 0x68b   :  { %v6266_v14 = vpop.f32.mrf.mxu0 }
 0x68c   :  { %5829 = vst [vmem:[#allocation2 + $0x38] sm:$0xff] %v5724_v36   ;;  %v6267_v13 = vadd.f32 %v6266_v14, %v6265_v61  ;;  %v3565_v46 = vadd.f32 %v3469_v25, %v7329_v35 }
 0x68d   :  { %v6268_v28 = vpop.f32.mrf.mxu0 }
 0x68e   :  { %v3470_v23 = vmul.f32 0.9, %v6267_v13 }
 0x68f   :  { %v6269_v8 = vpop.f32.mrf.mxu0 }
 0x690   :  { %v3566_v6 = vadd.f32 %v3470_v23, %v7333_v26  ;;  %v6270_v30 = vadd.f32 %v6269_v8, %v6268_v28 }
 0x691   :  { %v6271_v27 = vpop.f32.mrf.mxu0 }
 0x692   :  { %v5729_v43 = vpack.c.bf16 %v3566_v6, %v3565_v46  ;;  %v3471_v5 = vmul.f32 0.9, %v6270_v30  ;;  %v8229_v30 = vld [vmem:[#allocation31_spill] sm:$0xff] }
 0x693   :  { %v6272_v34 = vpop.f32.mrf.mxu0 }
 0x694   :  { %5830 = vst [vmem:[#allocation2 + $0x40] sm:$0xff] %v5729_v43   ;;  %v6273_v47 = vadd.f32 %v6272_v34, %v6271_v27  ;;  %v3567_v57 = vadd.f32 %v3471_v5, %v7339_v21 }
 0x695   :  { %v6274_v53 = vpop.f32.mrf.mxu0 }
 0x696   :  { %v3472_v49 = vmul.f32 0.9, %v6273_v47 }
 0x697   :  { %v6275_v38 = vpop.f32.mrf.mxu0 }
 0x698   :  { %v3568_v37 = vadd.f32 %v3472_v49, %v7343_v32  ;;  %v6276_v39 = vadd.f32 %v6275_v38, %v6274_v53 }
 0x699   :  { %v6277_v41 = vpop.f32.mrf.mxu0 }
 0x69a   :  { %v5734_v63 = vpack.c.bf16 %v3568_v37, %v3567_v57  ;;  %v3473_v44 = vmul.f32 0.9, %v6276_v39 }
 0x69b   :  { %v6278_v19 = vpop.f32.mrf.mxu0 }
 0x69c   :  { %5831 = vst [vmem:[#allocation2 + $0x48] sm:$0xff] %v5734_v63   ;;  %v6279_v42 = vadd.f32 %v6278_v19, %v6277_v41  ;;  %v3569_v62 = vadd.f32 %v3473_v44, %v8228_v58 }
 0x69d   :  { %v6280_v56 = vpop.f32.mrf.mxu0 }
 0x69e   :  { %v3474_v51 = vmul.f32 0.9, %v6279_v42 }
 0x69f   :  { %v6281_v55 = vpop.f32.mrf.mxu0 }
 0x6a0   :  { %v3570_v9 = vadd.f32 %v3474_v51, %v7353_v17  ;;  %v6282_v16 = vadd.f32 %v6281_v55, %v6280_v56 }
 0x6a1   :  { %v6283_v22 = vpop.f32.mrf.mxu0 }
 0x6a2   :  { %v5739_v33 = vpack.c.bf16 %v3570_v9, %v3569_v62  ;;  %v3475_v45 = vmul.f32 0.9, %v6282_v16 }
 0x6a3   :  { %v6284_v52 = vpop.f32.mrf.mxu0 }
 0x6a4   :  { %5832 = vst [vmem:[#allocation2 + $0x50] sm:$0xff] %v5739_v33   ;;  %v6285_v15 = vadd.f32 %v6284_v52, %v6283_v22  ;;  %v3571_v36 = vadd.f32 %v3475_v45, %v7359_v24 }
 0x6a5   :  { %v6286_v18 = vpop.f32.mrf.mxu0 }
 0x6a6   :  { %v3476_v31 = vmul.f32 0.9, %v6285_v15 }
 0x6a7   :  { %v6287_v61 = vpop.f32.mrf.mxu0 }
 0x6a8   :  { %v3572_v14 = vadd.f32 %v3476_v31, %v7363_v50  ;;  %v6288_v25 = vadd.f32 %v6287_v61, %v6286_v18 }
 0x6a9   :  { %v6289_v13 = vpop.f32.mrf.mxu0 }
 0x6aa   :  { %v5744_v28 = vpack.c.bf16 %v3572_v14, %v3571_v36  ;;  %v3477_v23 = vmul.f32 0.9, %v6288_v25  ;;  %v6665_v36 = vld [vmem:[#allocation2 + $0x38] sm:$0xff]   ;;  %v6667_v25 = vld [vmem:[#allocation2 + $0x30] sm:$0xff]  }
 0x6ab   :  { %v6290_v8 = vpop.f32.mrf.mxu0 }
 0x6ac   :  { %5833 = vst [vmem:[#allocation2 + $0x58] sm:$0xff] %v5744_v28   ;;  %v6291_v46 = vadd.f32 %v6290_v8, %v6289_v13  ;;  %v3573_v27 = vadd.f32 %v3477_v23, %v8229_v30  ;;  %v6669_v28 = vld [vmem:[#allocation2 + $0x28] sm:$0xff]   ;;  %v6671_v8 = vld [vmem:[#allocation2 + $0x20] sm:$0xff]  }
 0x6ad   :  { %v6292_v6 = vpop.f32.mrf.mxu0 }
 0x6ae   :  { %v3478_v43 = vmul.f32 0.9, %v6291_v46 }
 0x6af   :  { %v6293_v34 = vpop.f32.mrf.mxu0 }
 0x6b0   :  { %v5749_v5 = vpack.c.bf16 %v3478_v43, %v3573_v27  ;;  %v6294_v53 = vadd.f32 %v6293_v34, %v6292_v6  ;;  %v6673_v6 = vld [vmem:[#allocation2 + $0x18] sm:$0xff]   ;;  %v6674_v27 = vld [vmem:[#allocation2 + $0x50] sm:$0xff]   ;;  %v6676_v34 = vld [vmem:[#allocation2 + $0x48] sm:$0xff]  }
 0x6b1   :  { %v6295_v47 = vpop.f32.mrf.mxu0  ;;  %v6675_v43 = vld [vmem:[#allocation2 + $0x10] sm:$0xff]  }
 0x6b2   :  { %5834 = vst [vmem:[#allocation2 + $0x60] sm:$0xff] %v5749_v5   ;;  %v3479_v37 = vmul.f32 0.9, %v6294_v53  ;;  %v6677_v5 = vld [vmem:[#allocation2 + $0x8] sm:$0xff]   ;;  %v6679_v53 = vld [vmem:[#allocation2] sm:$0xff]  }
 0x6b3   :  { %v6296_v49 = vpop.f32.mrf.mxu0  ;;  %v6672_v46 = vld [vmem:[#allocation2 + $0x58] sm:$0xff]  }
 0x6b4   :  { %v6297_v38 = vadd.f32 %v6296_v49, %v6295_v47  ;;  %v6678_v47 = vld [vmem:[#allocation2 + $0x40] sm:$0xff]  }
 0x6b5   :  { %v6298_v57 = vpop.f32.mrf.mxu0  ;;  %v6680_v49 = vld [vmem:[#allocation10] ss:$8 sps:$4 sm:$0xff]  }
 0x6b6   :  { %v3480_v39 = vmul.f32 0.9, %v6297_v38  ;;  %v6685_v38 = vld [vmem:[#allocation10 + $0x14] ss:$8 sps:$4 sm:$0xff]  }
 0x6b7   :  { %v6299_v41 = vpop.f32.mrf.mxu0 }
 0x6b8   :  { %v5754_v63 = vpack.c.bf16 %v3480_v39, %v3479_v37  ;;  %v6300_v44 = vadd.f32 %v6299_v41, %v6298_v57  ;;  %v6683_v57 = vld [vmem:[#allocation10 + $0x10] ss:$8 sps:$4 sm:$0xff]   ;;  %v6688_v37 = vld [vmem:[#allocation10 + $0x24] ss:$8 sps:$4 sm:$0xff]   ;;  %v6686_v39 = vld [vmem:[#allocation10 + $0x20] ss:$8 sps:$4 sm:$0xff]  }
 0x6b9   :  { %v6301_v19 = vpop.f32.mrf.mxu0  ;;  %v6670_v23 = vld [vmem:[#allocation2 + $0x60] sm:$0xff]   ;;  %v6691_v41 = vld [vmem:[#allocation10 + $0x34] ss:$8 sps:$4 sm:$0xff]  }
 0x6ba   :  { %5835 = vst [vmem:[#allocation2 + $0x68] sm:$0xff] %v5754_v63   ;;  %v3481_v55 = vmul.f32 0.9, %v6300_v44  ;;  %v6689_v63 = vld [vmem:[#allocation10 + $0x30] ss:$8 sps:$4 sm:$0xff]  }
 0x6bb   :  { %v6302_v42 = vpop.f32.mrf.mxu0  ;;  %v6692_v44 = vld [vmem:[#allocation10 + $0x40] ss:$8 sps:$4 sm:$0xff]  }
 0x6bc   :  { %v6303_v56 = vadd.f32 %v6302_v42, %v6301_v19  ;;  %v6694_v19 = vld [vmem:[#allocation10 + $0x44] ss:$8 sps:$4 sm:$0xff]   ;;  %v6697_v42 = vld [vmem:[#allocation10 + $0x54] ss:$8 sps:$4 sm:$0xff]  }
 0x6bd   :  { %v6304_v51 = vpop.f32.mrf.mxu0 }
 0x6be   :  { %v3482_v62 = vmul.f32 0.9, %v6303_v56  ;;  %v6695_v56 = vld [vmem:[#allocation10 + $0x50] ss:$8 sps:$4 sm:$0xff]  }
 0x6bf   :  { %v6305_v9 = vpop.f32.mrf.mxu0 }
 0x6c0   :  { %v5759_v16 = vpack.c.bf16 %v3482_v62, %v3481_v55  ;;  %v6306_v33 = vadd.f32 %v6305_v9, %v6304_v51  ;;  %v6700_v51 = vld [vmem:[#allocation10 + $0x64] ss:$8 sps:$4 sm:$0xff]   ;;  %v6698_v55 = vld [vmem:[#allocation10 + $0x60] ss:$8 sps:$4 sm:$0xff]   ;;  %v6703_v62 = vld [vmem:[#allocation10 + $0x74] ss:$8 sps:$4 sm:$0xff]  }
 0x6c1   :  { %v6307_v22 = vpop.f32.mrf.mxu0  ;;  %v6668_v13 = vld [vmem:[#allocation2 + $0x68] sm:$0xff]   ;;  %v6701_v9 = vld [vmem:[#allocation10 + $0x70] ss:$8 sps:$4 sm:$0xff]  }
 0x6c2   :  { %5836 = vst [vmem:[#allocation2 + $0x70] sm:$0xff] %v5759_v16   ;;  %v3483_v15 = vmul.f32 0.9, %v6306_v33  ;;  %v6706_v16 = vld [vmem:[#allocation10 + $0x84] ss:$8 sps:$4 sm:$0xff]  }
 0x6c3   :  { %v6308_v52 = vpop.f32.mrf.mxu0  ;;  %v6709_v33 = vld [vmem:[#allocation10 + $0x94] ss:$8 sps:$4 sm:$0xff]  }
 0x6c4   :  { %v6309_v45 = vadd.f32 %v6308_v52, %v6307_v22  ;;  %v6704_v22 = vld [vmem:[#allocation10 + $0x80] ss:$8 sps:$4 sm:$0xff]   ;;  %v6707_v52 = vld [vmem:[#allocation10 + $0x90] ss:$8 sps:$4 sm:$0xff]  }
 0x6c6   :  { %v3484_v18 = vmul.f32 0.9, %v6309_v45  ;;  %v6712_v45 = vld [vmem:[#allocation10 + $0xa4] ss:$8 sps:$4 sm:$0xff]  }
 0x6c8   :  { %v5764_v31 = vpack.c.bf16 %v3484_v18, %v3483_v15  ;;  %v6710_v15 = vld [vmem:[#allocation10 + $0xa0] ss:$8 sps:$4 sm:$0xff]   ;;  %v6715_v18 = vld [vmem:[#allocation10 + $0xb4] ss:$8 sps:$4 sm:$0xff]  }
 0x6c9   :  { %v6666_v14 = vld [vmem:[#allocation2 + $0x70] sm:$0xff]  }
 0x6ca   :  { %5837 = vst [vmem:[#allocation2 + $0x78] sm:$0xff] %v5764_v31   ;;  %v6713_v31 = vld [vmem:[#allocation10 + $0xb0] ss:$8 sps:$4 sm:$0xff]  }
 0x6d1   :  { %v6664_v61 = vld [vmem:[#allocation2 + $0x78] sm:$0xff]  }
 0x6d2   :  { %6310 = vmatprep.subr.bf16.mxu1 %v6664_v61  ;;  %v6718_v61 = vld [vmem:[#allocation10 + $0xc4] ss:$8 sps:$4 sm:$0xff]  }
 0x6d3   :  { %6311 = vmatpush3.bf16.msra.mxu1 %v6665_v36  ;;  %v6716_v36 = vld [vmem:[#allocation10 + $0xc0] ss:$8 sps:$4 sm:$0xff]  }
 0x6d4   :  { %6312 = vmatprep.subr.bf16.mxu1 %v6666_v14  ;;  %v6721_v14 = vld [vmem:[#allocation10 + $0xd4] ss:$8 sps:$4 sm:$0xff]  }
 0x6d7   :  { %6313 = vmatpush3.bf16.msra.mxu1 %v6667_v25  ;;  %v6719_v25 = vld [vmem:[#allocation10 + $0xd0] ss:$8 sps:$4 sm:$0xff]  }
 0x6d8   :  { %6314 = vmatprep.subr.bf16.mxu1 %v6668_v13  ;;  %v6724_v13 = vld [vmem:[#allocation10 + $0xe4] ss:$8 sps:$4 sm:$0xff]  }
 0x6db   :  { %6315 = vmatpush3.bf16.msra.mxu1 %v6669_v28  ;;  %v6722_v28 = vld [vmem:[#allocation10 + $0xe0] ss:$8 sps:$4 sm:$0xff]  }
 0x6dc   :  { %6316 = vmatprep.subr.bf16.mxu1 %v6670_v23  ;;  %v6727_v23 = vld [vmem:[#allocation10 + $0xf4] ss:$8 sps:$4 sm:$0xff]  }
 0x6df   :  { %6317 = vmatpush3.bf16.msra.mxu1 %v6671_v8  ;;  %v6725_v8 = vld [vmem:[#allocation10 + $0xf0] ss:$8 sps:$4 sm:$0xff]  }
 0x6e0   :  { %6318 = vmatprep.subr.bf16.mxu1 %v6672_v46  ;;  %v4350_v46 = vlaneseq }
 0x6e3   :  { %6319 = vmatpush3.bf16.msra.mxu1 %v6673_v6 }
 0x6e4   :  { %6320 = vmatprep.subr.bf16.mxu1 %v6674_v27 }
 0x6e7   :  { %6321 = vmatpush3.bf16.msra.mxu1 %v6675_v43  ;;  %v7601_v43 = vand.u32 127, %v4350_v46 }
 0x6e8   :  { %6322 = vmatprep.subr.bf16.mxu1 %v6676_v34 }
 0x6e9   :  { %vm4352_vm0 = vcmp.lt.s32.totalorder %v7601_v43, 32 }
 0x6eb   :  { %6323 = vmatpush3.bf16.msra.mxu1 %v6677_v5 }
 0x6ec   :  { %6324 = vmatprep.subr.bf16.mxu1 %v6678_v47 }
 0x6ef   :  { %6325 = vmatpush3.bf16.msra.mxu1 %v6679_v53 }
 0x6f2   :  { %4094 = vmatmul.mubr.bf16.vlgmr.msra.gmra.mxu1 %v6680_v49 }
 0x6f3   :  { %4101 = vmatprep.mubr.bf16.mxu1 %v6685_v38 }
 0x6fa   :  { %4102 = vmatmul.mubr.bf16.gmra.mxu1 %v6683_v57 }
 0x6fb   :  { %4109 = vmatprep.mubr.bf16.mxu1 %v6688_v37 }
 0x702   :  { %4110 = vmatmul.mubr.bf16.gmra.mxu1 %v6686_v39 }
 0x703   :  { %4117 = vmatprep.mubr.bf16.mxu1 %v6691_v41 }
 0x70a   :  { %4118 = vmatmul.mubr.bf16.gmra.mxu1 %v6689_v63 }
 0x70b   :  { %4125 = vmatprep.mubr.bf16.mxu1 %v6694_v19 }
 0x712   :  { %4126 = vmatmul.mubr.bf16.gmra.mxu1 %v6692_v44 }
 0x713   :  { %4133 = vmatprep.mubr.bf16.mxu1 %v6697_v42 }
 0x71a   :  { %4134 = vmatmul.mubr.bf16.gmra.mxu1 %v6695_v56 }
 0x71b   :  { %4141 = vmatprep.mubr.bf16.mxu1 %v6700_v51 }
 0x722   :  { %4142 = vmatmul.mubr.bf16.gmra.mxu1 %v6698_v55 }
 0x723   :  { %4149 = vmatprep.mubr.bf16.mxu1 %v6703_v62 }
 0x72a   :  { %4150 = vmatmul.mubr.bf16.gmra.mxu1 %v6701_v9 }
 0x72b   :  { %4157 = vmatprep.mubr.bf16.mxu1 %v6706_v16 }
 0x732   :  { %4158 = vmatmul.mubr.bf16.gmra.mxu1 %v6704_v22 }
 0x733   :  { %4165 = vmatprep.mubr.bf16.mxu1 %v6709_v33 }
 0x73a   :  { %4166 = vmatmul.mubr.bf16.gmra.mxu1 %v6707_v52 }
 0x73b   :  { %4173 = vmatprep.mubr.bf16.mxu1 %v6712_v45 }
 0x742   :  { %4174 = vmatmul.mubr.bf16.gmra.mxu1 %v6710_v15 }
 0x743   :  { %4181 = vmatprep.mubr.bf16.mxu1 %v6715_v18 }
 0x74a   :  { %4182 = vmatmul.mubr.bf16.gmra.mxu1 %v6713_v31 }
 0x74b   :  { %4189 = vmatprep.mubr.bf16.mxu1 %v6718_v61 }
 0x752   :  { %4190 = vmatmul.mubr.bf16.gmra.mxu1 %v6716_v36 }
 0x753   :  { %4197 = vmatprep.mubr.bf16.mxu1 %v6721_v14 }
 0x75a   :  { %4198 = vmatmul.mubr.bf16.gmra.mxu1 %v6719_v25 }
 0x75b   :  { %4205 = vmatprep.mubr.bf16.mxu1 %v6724_v13 }
 0x762   :  { %4206 = vmatmul.mubr.bf16.gmra.mxu1 %v6722_v28 }
 0x763   :  { %4213 = vmatprep.mubr.bf16.mxu1 %v6727_v23 }
 0x76a   :  { %4214 = vmatmul.mubr.bf16.gmra.mxu1 %v6725_v8 }
 0x7b2   :  { %v6326_v6 = vpop.f32.mrf.mxu1 }
 0x7b4   :  { %v6327_v27 = vpop.f32.mrf.mxu1 }
 0x7b5   :  { %v6328_v34 = vadd.f32 %v6327_v27, %v6326_v6 }
 0x7b6   :  { %v6329_v5 = vpop.f32.mrf.mxu1 }
 0x7b7   :  { %v4222_v47 = vmul.f32 0.9, %v6328_v34 }
 0x7b8   :  { %v6330_v53 = vpop.f32.mrf.mxu1 }
 0x7b9   :  { %v6331_v49 = vadd.f32 %v6330_v53, %v6329_v5  ;;  %v4318_v38 = vadd.f32 %v4222_v47, %v8202_v59 }
 0x7ba   :  { %v6332_v57 = vpop.f32.mrf.mxu1 }
 0x7bb   :  { %v4223_v37 = vmul.f32 0.9, %v6331_v49  ;;  %v7607_v39 = vsel %vm4352_vm0, %v4318_v38, -1e+30 }
 0x7bc   :  { %v6333_v41 = vpop.f32.mrf.mxu1  ;;  %4385 = vmax.xlane.f32.xlu0 %v7607_v39 }
 0x7bd   :  { %v6334_v63 = vadd.f32 %v6333_v41, %v6332_v57  ;;  %v4319_v19 = vadd.f32 %v4223_v37, %v7253_v60 }
 0x7be   :  { %v6335_v44 = vpop.f32.mrf.mxu1 }
 0x7bf   :  { %v4224_v42 = vmul.f32 0.9, %v6334_v63  ;;  %v7613_v56 = vsel %vm4352_vm0, %v4319_v19, -1e+30 }
 0x7c0   :  { %v6336_v51 = vpop.f32.mrf.mxu1  ;;  %4387 = vmax.xlane.f32.xlu0 %v7613_v56 }
 0x7c1   :  { %v6337_v59 = vadd.f32 %v6336_v51, %v6335_v44  ;;  %v4320_v55 = vadd.f32 %v4224_v42, %v7269_v11 }
 0x7c2   :  { %v6338_v62 = vpop.f32.mrf.mxu1 }
 0x7c3   :  { %v4225_v9 = vmul.f32 0.9, %v6337_v59  ;;  %v7619_v16 = vsel %vm4352_vm0, %v4320_v55, -1e+30 }
 0x7c4   :  { %v6339_v22 = vpop.f32.mrf.mxu1  ;;  %4389 = vmax.xlane.f32.xlu1 %v7619_v16 }
 0x7c5   :  { %v6340_v60 = vadd.f32 %v6339_v22, %v6338_v62  ;;  %v4321_v33 = vadd.f32 %v4225_v9, %v7273_v7 }
 0x7c6   :  { %v6341_v52 = vpop.f32.mrf.mxu1 }
 0x7c7   :  { %v4226_v45 = vmul.f32 0.9, %v6340_v60  ;;  %v7625_v15 = vsel %vm4352_vm0, %v4321_v33, -1e+30 }
 0x7c8   :  { %v6342_v18 = vpop.f32.mrf.mxu1  ;;  %4391 = vmax.xlane.f32.xlu1 %v7625_v15 }
 0x7c9   :  { %v6343_v11 = vadd.f32 %v6342_v18, %v6341_v52  ;;  %v4322_v31 = vadd.f32 %v4226_v45, %v7289_v54 }
 0x7ca   :  { %v6344_v61 = vpop.f32.mrf.mxu1 }
 0x7cb   :  { %v4227_v36 = vmul.f32 0.9, %v6343_v11  ;;  %v7631_v14 = vsel %vm4352_vm0, %v4322_v31, -1e+30 }
 0x7cc   :  { %v6345_v25 = vpop.f32.mrf.mxu1  ;;  %4393 = vmax.xlane.f32.xlu0 %v7631_v14 }
 0x7cd   :  { %v6346_v7 = vadd.f32 %v6345_v25, %v6344_v61  ;;  %v4323_v13 = vadd.f32 %v4227_v36, %v7293_v3 }
 0x7ce   :  { %v6347_v28 = vpop.f32.mrf.mxu1 }
 0x7cf   :  { %v4228_v23 = vmul.f32 0.9, %v6346_v7  ;;  %v7637_v8 = vsel %vm4352_vm0, %v4323_v13, -1e+30 }
 0x7d0   :  { %v6348_v46 = vpop.f32.mrf.mxu1  ;;  %4395 = vmax.xlane.f32.xlu1 %v7637_v8 }
 0x7d1   :  { %v6349_v54 = vadd.f32 %v6348_v46, %v6347_v28  ;;  %v4324_v6 = vadd.f32 %v4228_v23, %v7309_v48 }
 0x7d2   :  { %v6350_v27 = vpop.f32.mrf.mxu1 }
 0x7d3   :  { %v4229_v34 = vmul.f32 0.9, %v6349_v54  ;;  %v7643_v5 = vsel %vm4352_vm0, %v4324_v6, -1e+30 }
 0x7d4   :  { %v6351_v47 = vpop.f32.mrf.mxu1  ;;  %4397 = vmax.xlane.f32.xlu0 %v7643_v5 }
 0x7d5   :  { %v6352_v3 = vadd.f32 %v6351_v47, %v6350_v27  ;;  %v4325_v53 = vadd.f32 %v4229_v34, %v7313_v1 }
 0x7d6   :  { %v6353_v49 = vpop.f32.mrf.mxu1 }
 0x7d7   :  { %v4230_v38 = vmul.f32 0.9, %v6352_v3  ;;  %v7649_v57 = vsel %vm4352_vm0, %v4325_v53, -1e+30 }
 0x7d8   :  { %v6354_v37 = vpop.f32.mrf.mxu1  ;;  %4399 = vmax.xlane.f32.xlu1 %v7649_v57 }
 0x7d9   :  { %v6355_v48 = vadd.f32 %v6354_v37, %v6353_v49  ;;  %v4326_v41 = vadd.f32 %v4230_v38, %v8203_v10 }
 0x7da   :  { %v6356_v63 = vpop.f32.mrf.mxu1 }
 0x7db   :  { %v4231_v19 = vmul.f32 0.9, %v6355_v48  ;;  %v7655_v44 = vsel %vm4352_vm0, %v4326_v41, -1e+30 }
 0x7dc   :  { %v6357_v42 = vpop.f32.mrf.mxu1  ;;  %4401 = vmax.xlane.f32.xlu0 %v7655_v44 }
 0x7dd   :  { %v6358_v1 = vadd.f32 %v6357_v42, %v6356_v63  ;;  %v4327_v51 = vadd.f32 %v4231_v19, %v7261_v40 }
 0x7de   :  { %v6359_v59 = vpop.f32.mrf.mxu1 }
 0x7df   :  { %v4232_v55 = vmul.f32 0.9, %v6358_v1  ;;  %v7661_v62 = vsel %vm4352_vm0, %v4327_v51, -1e+30 }
 0x7e0   :  { %v6360_v9 = vpop.f32.mrf.mxu1  ;;  %4403 = vmax.xlane.f32.xlu1 %v7661_v62 }
 0x7e1   :  { %v6361_v10 = vadd.f32 %v6360_v9, %v6359_v59  ;;  %v4328_v22 = vadd.f32 %v4232_v55, %v7277_v12 }
 0x7e2   :  { %v6362_v60 = vpop.f32.mrf.mxu1 }
 0x7e3   :  { %v4233_v33 = vmul.f32 0.9, %v6361_v10  ;;  %v7667_v52 = vsel %vm4352_vm0, %v4328_v22, -1e+30 }
 0x7e4   :  { %v6363_v45 = vpop.f32.mrf.mxu1  ;;  %4405 = vmax.xlane.f32.xlu0 %v7667_v52 }
 0x7e5   :  { %v6364_v40 = vadd.f32 %v6363_v45, %v6362_v60  ;;  %v4329_v18 = vadd.f32 %v4233_v33, %v7281_v2 }
 0x7e6   :  { %v6365_v11 = vpop.f32.mrf.mxu1 }
 0x7e7   :  { %v4234_v31 = vmul.f32 0.9, %v6364_v40  ;;  %v7673_v61 = vsel %vm4352_vm0, %v4329_v18, -1e+30 }
 0x7e8   :  { %v6366_v36 = vpop.f32.mrf.mxu1  ;;  %4407 = vmax.xlane.f32.xlu1 %v7673_v61 }
 0x7e9   :  { %v6367_v12 = vadd.f32 %v6366_v36, %v6365_v11  ;;  %v4330_v25 = vadd.f32 %v4234_v31, %v7297_v0 }
 0x7ea   :  { %v6368_v7 = vpop.f32.mrf.mxu1 }
 0x7eb   :  { %v4235_v13 = vmul.f32 0.9, %v6367_v12  ;;  %v7679_v28 = vsel %vm4352_vm0, %v4330_v25, -1e+30 }
 0x7ec   :  { %v6369_v23 = vpop.f32.mrf.mxu1  ;;  %4409 = vmax.xlane.f32.xlu0 %v7679_v28 }
 0x7ed   :  { %v6370_v2 = vadd.f32 %v6369_v23, %v6368_v7  ;;  %v4331_v46 = vadd.f32 %v4235_v13, %v7301_v4 }
 0x7ee   :  { %v6371_v54 = vpop.f32.mrf.mxu1 }
 0x7ef   :  { %v4236_v6 = vmul.f32 0.9, %v6370_v2  ;;  %v7685_v27 = vsel %vm4352_vm0, %v4331_v46, -1e+30 }
 0x7f0   :  { %v6372_v34 = vpop.f32.mrf.mxu1  ;;  %4411 = vmax.xlane.f32.xlu1 %v7685_v27 }
 0x7f1   :  { %v6373_v0 = vadd.f32 %v6372_v34, %v6371_v54  ;;  %v4332_v47 = vadd.f32 %v4236_v6, %v7317_v29 }
 0x7f2   :  { %v6374_v3 = vpop.f32.mrf.mxu1 }
 0x7f3   :  { %v4237_v53 = vmul.f32 0.9, %v6373_v0  ;;  %v7691_v49 = vsel %vm4352_vm0, %v4332_v47, -1e+30 }
 0x7f4   :  { %v6375_v38 = vpop.f32.mrf.mxu1  ;;  %4413 = vmax.xlane.f32.xlu0 %v7691_v49 }
 0x7f5   :  { %v6376_v4 = vadd.f32 %v6375_v38, %v6374_v3  ;;  %v4333_v37 = vadd.f32 %v4237_v53, %v7321_v20 }
 0x7f6   :  { %v6377_v48 = vpop.f32.mrf.mxu1 }
 0x7f7   :  { %v4238_v41 = vmul.f32 0.9, %v6376_v4  ;;  %v7697_v63 = vsel %vm4352_vm0, %v4333_v37, -1e+30 }
 0x7f8   :  { %v6378_v19 = vpop.f32.mrf.mxu1  ;;  %4415 = vmax.xlane.f32.xlu1 %v7697_v63 }
 0x7f9   :  { %v6379_v29 = vadd.f32 %v6378_v19, %v6377_v48  ;;  %v4334_v42 = vadd.f32 %v4238_v41, %v7329_v35 }
 0x7fa   :  { %v6380_v1 = vpop.f32.mrf.mxu1 }
 0x7fb   :  { %v4239_v51 = vmul.f32 0.9, %v6379_v29  ;;  %v7703_v59 = vsel %vm4352_vm0, %v4334_v42, -1e+30 }
 0x7fc   :  { %v6381_v55 = vpop.f32.mrf.mxu1  ;;  %4417 = vmax.xlane.f32.xlu0 %v7703_v59 }
 0x7fd   :  { %v6382_v20 = vadd.f32 %v6381_v55, %v6380_v1  ;;  %v4335_v9 = vadd.f32 %v4239_v51, %v7333_v26 }
 0x7fe   :  { %v6383_v10 = vpop.f32.mrf.mxu1 }
 0x7ff   :  { %v4240_v22 = vmul.f32 0.9, %v6382_v20  ;;  %v7709_v60 = vsel %vm4352_vm0, %v4335_v9, -1e+30 }
 0x800   :  { %v6384_v33 = vpop.f32.mrf.mxu1  ;;  %4419 = vmax.xlane.f32.xlu1 %v7709_v60 }
 0x801   :  { %v6385_v35 = vadd.f32 %v6384_v33, %v6383_v10  ;;  %v4336_v45 = vadd.f32 %v4240_v22, %v7339_v21 }
 0x802   :  { %v6386_v40 = vpop.f32.mrf.mxu1 }
 0x803   :  { %v4241_v18 = vmul.f32 0.9, %v6385_v35  ;;  %v7715_v11 = vsel %vm4352_vm0, %v4336_v45, -1e+30 }
 0x804   :  { %v6387_v31 = vpop.f32.mrf.mxu1  ;;  %4421 = vmax.xlane.f32.xlu0 %v7715_v11 }
 0x805   :  { %v6388_v26 = vadd.f32 %v6387_v31, %v6386_v40  ;;  %v4337_v36 = vadd.f32 %v4241_v18, %v7343_v32 }
 0x806   :  { %v6389_v12 = vpop.f32.mrf.mxu1 }
 0x807   :  { %v4242_v25 = vmul.f32 0.9, %v6388_v26  ;;  %v7721_v7 = vsel %vm4352_vm0, %v4337_v36, -1e+30 }
 0x808   :  { %v6390_v13 = vpop.f32.mrf.mxu1  ;;  %4423 = vmax.xlane.f32.xlu1 %v7721_v7 }
 0x809   :  { %v6391_v21 = vadd.f32 %v6390_v13, %v6389_v12  ;;  %v4338_v23 = vadd.f32 %v4242_v25, %v8228_v58 }
 0x80a   :  { %v6392_v2 = vpop.f32.mrf.mxu1 }
 0x80b   :  { %v4243_v46 = vmul.f32 0.9, %v6391_v21  ;;  %v7727_v54 = vsel %vm4352_vm0, %v4338_v23, -1e+30 }
 0x80c   :  { %v6393_v6 = vpop.f32.mrf.mxu1  ;;  %4425 = vmax.xlane.f32.xlu0 %v7727_v54 }
 0x80d   :  { %v6394_v32 = vadd.f32 %v6393_v6, %v6392_v2  ;;  %v4339_v34 = vadd.f32 %v4243_v46, %v7353_v17 }
 0x80e   :  { %v6395_v0 = vpop.f32.mrf.mxu1 }
 0x80f   :  { %v4244_v47 = vmul.f32 0.9, %v6394_v32  ;;  %v7733_v3 = vsel %vm4352_vm0, %v4339_v34, -1e+30 }
 0x810   :  { %v6396_v53 = vpop.f32.mrf.mxu1  ;;  %4427 = vmax.xlane.f32.xlu1 %v7733_v3 }
 0x811   :  { %v6397_v58 = vadd.f32 %v6396_v53, %v6395_v0  ;;  %v4340_v38 = vadd.f32 %v4244_v47, %v7359_v24 }
 0x812   :  { %v6398_v4 = vpop.f32.mrf.mxu1 }
 0x813   :  { %v4245_v37 = vmul.f32 0.9, %v6397_v58  ;;  %v7739_v48 = vsel %vm4352_vm0, %v4340_v38, -1e+30 }
 0x814   :  { %v6399_v41 = vpop.f32.mrf.mxu1  ;;  %4429 = vmax.xlane.f32.xlu0 %v7739_v48 }
 0x815   :  { %v6400_v17 = vadd.f32 %v6399_v41, %v6398_v4  ;;  %v4341_v19 = vadd.f32 %v4245_v37, %v7363_v50 }
 0x816   :  { %v6401_v29 = vpop.f32.mrf.mxu1 }
 0x817   :  { %v4246_v42 = vmul.f32 0.9, %v6400_v17  ;;  %v7745_v1 = vsel %vm4352_vm0, %v4341_v19, -1e+30 }
 0x818   :  { %v6402_v51 = vpop.f32.mrf.mxu1  ;;  %4431 = vmax.xlane.f32.xlu1 %v7745_v1 }
 0x819   :  { %v6403_v24 = vadd.f32 %v6402_v51, %v6401_v29  ;;  %v4342_v55 = vadd.f32 %v4246_v42, %v8229_v30 }
 0x81a   :  { %v6404_v20 = vpop.f32.mrf.mxu1 }
 0x81b   :  { %v4247_v9 = vmul.f32 0.9, %v6403_v24  ;;  %v7751_v10 = vsel %vm4352_vm0, %v4342_v55, -1e+30 }
 0x81c   :  { %v6405_v22 = vpop.f32.mrf.mxu1  ;;  %4433 = vmax.xlane.f32.xlu0 %v7751_v10 }
 0x81d   :  { %v6406_v50 = vadd.f32 %v6405_v22, %v6404_v20  ;;  %v7756_v33 = vsel %vm4352_vm0, %v4247_v9, -1e+30 }
 0x81e   :  { %v6407_v35 = vpop.f32.mrf.mxu1  ;;  %4435 = vmax.xlane.f32.xlu1 %v7756_v33 }
 0x81f   :  { %v4248_v45 = vmul.f32 0.9, %v6406_v50 }
 0x820   :  { %v6408_v40 = vpop.f32.mrf.mxu1 }
 0x821   :  { %v6409_v30 = vadd.f32 %v6408_v40, %v6407_v35  ;;  %v7761_v18 = vsel %vm4352_vm0, %v4248_v45, -1e+30 }
 0x822   :  { %v6410_v31 = vpop.f32.mrf.mxu1  ;;  %4437 = vmax.xlane.f32.xlu0 %v7761_v18 }
 0x823   :  { %v4249_v26 = vmul.f32 0.9, %v6409_v30 }
 0x824   :  { %v6411_v36 = vpop.f32.mrf.mxu1 }
 0x825   :  { %v6412_v12 = vadd.f32 %v6411_v36, %v6410_v31  ;;  %v7766_v25 = vsel %vm4352_vm0, %v4249_v26, -1e+30 }
 0x826   :  { %v6413_v13 = vpop.f32.mrf.mxu1  ;;  %4439 = vmax.xlane.f32.xlu1 %v7766_v25 }
 0x827   :  { %v4250_v21 = vmul.f32 0.9, %v6412_v12 }
 0x828   :  { %v6414_v23 = vpop.f32.mrf.mxu1 }
 0x829   :  { %v6415_v2 = vadd.f32 %v6414_v23, %v6413_v13  ;;  %v7771_v46 = vsel %vm4352_vm0, %v4250_v21, -1e+30 }
 0x82a   :  { %v6416_v6 = vpop.f32.mrf.mxu1  ;;  %4441 = vmax.xlane.f32.xlu0 %v7771_v46 }
 0x82b   :  { %v4251_v32 = vmul.f32 0.9, %v6415_v2 }
 0x82c   :  { %v6417_v34 = vpop.f32.mrf.mxu1 }
 0x82d   :  { %v6418_v0 = vadd.f32 %v6417_v34, %v6416_v6  ;;  %v7776_v47 = vsel %vm4352_vm0, %v4251_v32, -1e+30 }
 0x82e   :  { %v6419_v53 = vpop.f32.mrf.mxu1  ;;  %4443 = vmax.xlane.f32.xlu1 %v7776_v47 }
 0x82f   :  { %v4252_v58 = vmul.f32 0.9, %v6418_v0 }
 0x830   :  { %v6420_v38 = vpop.f32.mrf.mxu1 }
 0x831   :  { %v6421_v4 = vadd.f32 %v6420_v38, %v6419_v53  ;;  %v7781_v37 = vsel %vm4352_vm0, %v4252_v58, -1e+30 }
 0x832   :  { %4445 = vmax.xlane.f32.xlu0 %v7781_v37 }
 0x833   :  { %v4253_v41 = vmul.f32 0.9, %v6421_v4 }
 0x835   :  { %v7786_v17 = vsel %vm4352_vm0, %v4253_v41, -1e+30 }
 0x836   :  { %4447 = vmax.xlane.f32.xlu1 %v7786_v17 }
 0x845   :  { %v4386_v19 = vpop.xlane.xlu0 %4385 }
 0x846   :  { %v7790_v29 = vsub.f32 %v7607_v39, %v4386_v19 }
 0x848   :  { %v4481_v42 = vmul.f32 1.442695, %v7790_v29 }
 0x849   :  { %v4388_v51 = vpop.xlane.xlu0 %4387 }
 0x84a   :  { %6728 = vpow2.f32 %v4481_v42  ;;  %v7794_v24 = vsub.f32 %v7613_v56, %v4388_v51 }
 0x84c   :  { %v4483_v55 = vmul.f32 1.442695, %v7794_v24 }
 0x84d   :  { %v4390_v20 = vpop.xlane.xlu1 %4389 }
 0x84e   :  { %6730 = vpow2.f32 %v4483_v55  ;;  %v7798_v9 = vsub.f32 %v7619_v16, %v4390_v20 }
 0x850   :  { %v4485_v22 = vmul.f32 1.442695, %v7798_v9 }
 0x851   :  { %v4392_v50 = vpop.xlane.xlu1 %4391 }
 0x852   :  { %6732 = vpow2.f32 %v4485_v22  ;;  %v7802_v39 = vsub.f32 %v7625_v15, %v4392_v50 }
 0x854   :  { %v4487_v35 = vmul.f32 1.442695, %v7802_v39 }
 0x855   :  { %v4394_v45 = vpop.xlane.xlu0 %4393 }
 0x856   :  { %6734 = vpow2.f32 %v4487_v35  ;;  %v7806_v56 = vsub.f32 %v7631_v14, %v4394_v45 }
 0x857   :  { %v6729_v40 = vpop.eup %6728 }
 0x858   :  { %v4489_v30 = vmul.f32 1.442695, %v7806_v56  ;;  %v4545_v16 = vsel %vm4352_vm0, %v6729_v40, 0.0 }
 0x859   :  { %v4396_v31 = vpop.xlane.xlu1 %4395  ;;  %4577 = vadd.xlane.f32.xlu0 %v4545_v16 }
 0x85a   :  { %6736 = vpow2.f32 %v4489_v30  ;;  %v7812_v26 = vsub.f32 %v7637_v8, %v4396_v31 }
 0x85b   :  { %v6731_v15 = vpop.eup %6730 }
 0x85c   :  { %v4491_v36 = vmul.f32 1.442695, %v7812_v26  ;;  %v4546_v12 = vsel %vm4352_vm0, %v6731_v15, 0.0 }
 0x85d   :  { %4579 = vadd.xlane.f32.xlu1 %v4546_v12  ;;  %v4398_v14 = vpop.xlane.xlu0 %4397 }
 0x85e   :  { %6738 = vpow2.f32 %v4491_v36  ;;  %v7818_v13 = vsub.f32 %v7643_v5, %v4398_v14 }
 0x85f   :  { %v6733_v21 = vpop.eup %6732 }
 0x860   :  { %v4493_v23 = vmul.f32 1.442695, %v7818_v13  ;;  %v4547_v2 = vsel %vm4352_vm0, %v6733_v21, 0.0 }
 0x861   :  { %v4400_v8 = vpop.xlane.xlu1 %4399  ;;  %4581 = vadd.xlane.f32.xlu0 %v4547_v2 }
 0x862   :  { %6740 = vpow2.f32 %v4493_v23  ;;  %v7824_v6 = vsub.f32 %v7649_v57, %v4400_v8 }
 0x863   :  { %v6735_v32 = vpop.eup %6734 }
 0x864   :  { %v4495_v34 = vmul.f32 1.442695, %v7824_v6  ;;  %v4548_v0 = vsel %vm4352_vm0, %v6735_v32, 0.0 }
 0x865   :  { %4583 = vadd.xlane.f32.xlu1 %v4548_v0  ;;  %v4402_v5 = vpop.xlane.xlu0 %4401 }
 0x866   :  { %6742 = vpow2.f32 %v4495_v34  ;;  %v7830_v53 = vsub.f32 %v7655_v44, %v4402_v5 }
 0x867   :  { %v6737_v58 = vpop.eup %6736 }
 0x868   :  { %v4497_v38 = vmul.f32 1.442695, %v7830_v53  ;;  %v4549_v4 = vsel %vm4352_vm0, %v6737_v58, 0.0 }
 0x869   :  { %v4404_v57 = vpop.xlane.xlu1 %4403  ;;  %4585 = vadd.xlane.f32.xlu0 %v4549_v4 }
 0x86a   :  { %6744 = vpow2.f32 %v4497_v38  ;;  %v7836_v41 = vsub.f32 %v7661_v62, %v4404_v57 }
 0x86b   :  { %v6739_v19 = vpop.eup %6738 }
 0x86c   :  { %v4499_v42 = vmul.f32 1.442695, %v7836_v41  ;;  %v4550_v51 = vsel %vm4352_vm0, %v6739_v19, 0.0 }
 0x86d   :  { %4587 = vadd.xlane.f32.xlu1 %v4550_v51  ;;  %v4406_v44 = vpop.xlane.xlu0 %4405 }
 0x86e   :  { %6746 = vpow2.f32 %v4499_v42  ;;  %v7842_v55 = vsub.f32 %v7667_v52, %v4406_v44 }
 0x86f   :  { %v6741_v20 = vpop.eup %6740 }
 0x870   :  { %v4501_v22 = vmul.f32 1.442695, %v7842_v55  ;;  %v4551_v50 = vsel %vm4352_vm0, %v6741_v20, 0.0 }
 0x871   :  { %v4408_v62 = vpop.xlane.xlu1 %4407  ;;  %4589 = vadd.xlane.f32.xlu0 %v4551_v50 }
 0x872   :  { %6748 = vpow2.f32 %v4501_v22  ;;  %v7848_v35 = vsub.f32 %v7673_v61, %v4408_v62 }
 0x873   :  { %v6743_v45 = vpop.eup %6742 }
 0x874   :  { %v4503_v40 = vmul.f32 1.442695, %v7848_v35  ;;  %v4552_v30 = vsel %vm4352_vm0, %v6743_v45, 0.0 }
 0x875   :  { %4591 = vadd.xlane.f32.xlu1 %v4552_v30  ;;  %v4410_v52 = vpop.xlane.xlu0 %4409 }
 0x876   :  { %6750 = vpow2.f32 %v4503_v40  ;;  %v7854_v16 = vsub.f32 %v7679_v28, %v4410_v52 }
 0x877   :  { %v6745_v31 = vpop.eup %6744 }
 0x878   :  { %v4505_v15 = vmul.f32 1.442695, %v7854_v16  ;;  %v4553_v36 = vsel %vm4352_vm0, %v6745_v31, 0.0 }
 0x879   :  { %v4412_v61 = vpop.xlane.xlu1 %4411  ;;  %4593 = vadd.xlane.f32.xlu0 %v4553_v36 }
 0x87a   :  { %6752 = vpow2.f32 %v4505_v15  ;;  %v7860_v12 = vsub.f32 %v7685_v27, %v4412_v61 }
 0x87b   :  { %v6747_v14 = vpop.eup %6746 }
 0x87c   :  { %v4507_v21 = vmul.f32 1.442695, %v7860_v12  ;;  %v4554_v23 = vsel %vm4352_vm0, %v6747_v14, 0.0 }
 0x87d   :  { %4595 = vadd.xlane.f32.xlu1 %v4554_v23  ;;  %v4414_v28 = vpop.xlane.xlu0 %4413 }
 0x87e   :  { %6754 = vpow2.f32 %v4507_v21  ;;  %v7866_v2 = vsub.f32 %v7691_v49, %v4414_v28 }
 0x87f   :  { %v6749_v8 = vpop.eup %6748 }
 0x880   :  { %v4509_v32 = vmul.f32 1.442695, %v7866_v2  ;;  %v4555_v34 = vsel %vm4352_vm0, %v6749_v8, 0.0 }
 0x881   :  { %v4416_v27 = vpop.xlane.xlu1 %4415  ;;  %4597 = vadd.xlane.f32.xlu0 %v4555_v34 }
 0x882   :  { %6756 = vpow2.f32 %v4509_v32  ;;  %v7872_v0 = vsub.f32 %v7697_v63, %v4416_v27 }
 0x883   :  { %v6751_v5 = vpop.eup %6750 }
 0x884   :  { %v4511_v58 = vmul.f32 1.442695, %v7872_v0  ;;  %v4556_v38 = vsel %vm4352_vm0, %v6751_v5, 0.0 }
 0x885   :  { %4599 = vadd.xlane.f32.xlu1 %v4556_v38  ;;  %v4418_v49 = vpop.xlane.xlu0 %4417 }
 0x886   :  { %6758 = vpow2.f32 %v4511_v58  ;;  %v7878_v4 = vsub.f32 %v7703_v59, %v4418_v49 }
 0x887   :  { %v6753_v57 = vpop.eup %6752 }
 0x888   :  { %v4513_v19 = vmul.f32 1.442695, %v7878_v4  ;;  %v4557_v42 = vsel %vm4352_vm0, %v6753_v57, 0.0 }
 0x889   :  { %v4420_v63 = vpop.xlane.xlu1 %4419  ;;  %4601 = vadd.xlane.f32.xlu0 %v4557_v42 }
 0x88a   :  { %6760 = vpow2.f32 %v4513_v19  ;;  %v7884_v51 = vsub.f32 %v7709_v60, %v4420_v63 }
 0x88b   :  { %v6755_v44 = vpop.eup %6754 }
 0x88c   :  { %v4515_v20 = vmul.f32 1.442695, %v7884_v51  ;;  %v4558_v22 = vsel %vm4352_vm0, %v6755_v44, 0.0 }
 0x88d   :  { %4603 = vadd.xlane.f32.xlu1 %v4558_v22  ;;  %v4422_v59 = vpop.xlane.xlu0 %4421 }
 0x88e   :  { %6762 = vpow2.f32 %v4515_v20  ;;  %v7890_v50 = vsub.f32 %v7715_v11, %v4422_v59 }
 0x88f   :  { %v6757_v62 = vpop.eup %6756 }
 0x890   :  { %v4517_v45 = vmul.f32 1.442695, %v7890_v50  ;;  %v4559_v40 = vsel %vm4352_vm0, %v6757_v62, 0.0 }
 0x891   :  { %v4424_v60 = vpop.xlane.xlu1 %4423  ;;  %4605 = vadd.xlane.f32.xlu0 %v4559_v40 }
 0x892   :  { %6764 = vpow2.f32 %v4517_v45  ;;  %v7896_v30 = vsub.f32 %v7721_v7, %v4424_v60 }
 0x893   :  { %v6759_v52 = vpop.eup %6758 }
 0x894   :  { %v4519_v31 = vmul.f32 1.442695, %v7896_v30  ;;  %v4560_v15 = vsel %vm4352_vm0, %v6759_v52, 0.0 }
 0x895   :  { %4607 = vadd.xlane.f32.xlu1 %v4560_v15  ;;  %v4426_v11 = vpop.xlane.xlu0 %4425 }
 0x896   :  { %6766 = vpow2.f32 %v4519_v31  ;;  %v7902_v36 = vsub.f32 %v7727_v54, %v4426_v11 }
 0x897   :  { %v6761_v61 = vpop.eup %6760 }
 0x898   :  { %v4521_v14 = vmul.f32 1.442695, %v7902_v36  ;;  %v4561_v21 = vsel %vm4352_vm0, %v6761_v61, 0.0 }
 0x899   :  { %v4428_v7 = vpop.xlane.xlu1 %4427  ;;  %4609 = vadd.xlane.f32.xlu0 %v4561_v21 }
 0x89a   :  { %6768 = vpow2.f32 %v4521_v14  ;;  %v7908_v23 = vsub.f32 %v7733_v3, %v4428_v7 }
 0x89b   :  { %v6763_v28 = vpop.eup %6762 }
 0x89c   :  { %v4523_v8 = vmul.f32 1.442695, %v7908_v23  ;;  %v4562_v32 = vsel %vm4352_vm0, %v6763_v28, 0.0 }
 0x89d   :  { %4611 = vadd.xlane.f32.xlu1 %v4562_v32  ;;  %v4430_v54 = vpop.xlane.xlu0 %4429 }
 0x89e   :  { %6770 = vpow2.f32 %v4523_v8  ;;  %v7914_v34 = vsub.f32 %v7739_v48, %v4430_v54 }
 0x89f   :  { %v6765_v27 = vpop.eup %6764 }
 0x8a0   :  { %v4525_v5 = vmul.f32 1.442695, %v7914_v34  ;;  %v4563_v58 = vsel %vm4352_vm0, %v6765_v27, 0.0 }
 0x8a1   :  { %v4432_v3 = vpop.xlane.xlu1 %4431  ;;  %4613 = vadd.xlane.f32.xlu0 %v4563_v58 }
 0x8a2   :  { %6772 = vpow2.f32 %v4525_v5  ;;  %v7920_v38 = vsub.f32 %v7745_v1, %v4432_v3 }
 0x8a3   :  { %v6767_v49 = vpop.eup %6766 }
 0x8a4   :  { %v4527_v57 = vmul.f32 1.442695, %v7920_v38  ;;  %v4564_v19 = vsel %vm4352_vm0, %v6767_v49, 0.0 }
 0x8a5   :  { %4615 = vadd.xlane.f32.xlu1 %v4564_v19  ;;  %v4434_v48 = vpop.xlane.xlu0 %4433 }
 0x8a6   :  { %6774 = vpow2.f32 %v4527_v57  ;;  %v7926_v42 = vsub.f32 %v7751_v10, %v4434_v48 }
 0x8a7   :  { %v6769_v63 = vpop.eup %6768  ;;  %v4436_v44 = vpop.xlane.xlu1 %4435 }
 0x8a8   :  { %v4529_v20 = vmul.f32 1.442695, %v7926_v42  ;;  %v7930_v22 = vsub.f32 %v7756_v33, %v4436_v44  ;;  %v4565_v1 = vsel %vm4352_vm0, %v6769_v63, 0.0 }
 0x8a9   :  { %4617 = vadd.xlane.f32.xlu0 %v4565_v1 }
 0x8aa   :  { %6776 = vpow2.f32 %v4529_v20  ;;  %v4531_v59 = vmul.f32 1.442695, %v7930_v22 }
 0x8ab   :  { %v6771_v62 = vpop.eup %6770  ;;  %v4438_v45 = vpop.xlane.xlu0 %4437 }
 0x8ac   :  { %6778 = vpow2.f32 %v4531_v59  ;;  %v7936_v10 = vsub.f32 %v7761_v18, %v4438_v45  ;;  %v4566_v40 = vsel %vm4352_vm0, %v6771_v62, 0.0 }
 0x8ad   :  { %4619 = vadd.xlane.f32.xlu1 %v4566_v40 }
 0x8ae   :  { %v4533_v33 = vmul.f32 1.442695, %v7936_v10 }
 0x8af   :  { %v6773_v60 = vpop.eup %6772  ;;  %v4440_v52 = vpop.xlane.xlu1 %4439 }
 0x8b0   :  { %6780 = vpow2.f32 %v4533_v33  ;;  %v7942_v31 = vsub.f32 %v7766_v25, %v4440_v52  ;;  %v4567_v15 = vsel %vm4352_vm0, %v6773_v60, 0.0 }
 0x8b1   :  { %4621 = vadd.xlane.f32.xlu0 %v4567_v15 }
 0x8b2   :  { %v4535_v11 = vmul.f32 1.442695, %v7942_v31 }
 0x8b3   :  { %v6775_v18 = vpop.eup %6774  ;;  %v4442_v61 = vpop.xlane.xlu0 %4441 }
 0x8b4   :  { %6782 = vpow2.f32 %v4535_v11  ;;  %v7948_v14 = vsub.f32 %v7771_v46, %v4442_v61  ;;  %v4568_v21 = vsel %vm4352_vm0, %v6775_v18, 0.0 }
 0x8b5   :  { %4623 = vadd.xlane.f32.xlu1 %v4568_v21 }
 0x8b6   :  { %v4537_v7 = vmul.f32 1.442695, %v7948_v14 }
 0x8b7   :  { %v6777_v25 = vpop.eup %6776  ;;  %v4444_v28 = vpop.xlane.xlu1 %4443 }
 0x8b8   :  { %6784 = vpow2.f32 %v4537_v7  ;;  %v7954_v8 = vsub.f32 %v7776_v47, %v4444_v28  ;;  %v4569_v32 = vsel %vm4352_vm0, %v6777_v25, 0.0 }
 0x8b9   :  { %v6779_v54 = vpop.eup %6778  ;;  %4625 = vadd.xlane.f32.xlu0 %v4569_v32 }
 0x8ba   :  { %v4539_v46 = vmul.f32 1.442695, %v7954_v8  ;;  %v4570_v27 = vsel %vm4352_vm0, %v6779_v54, 0.0 }
 0x8bb   :  { %4627 = vadd.xlane.f32.xlu1 %v4570_v27  ;;  %v4446_v5 = vpop.xlane.xlu0 %4445 }
 0x8bc   :  { %6786 = vpow2.f32 %v4539_v46  ;;  %v7962_v58 = vsub.f32 %v7781_v37, %v4446_v5 }
 0x8bd   :  { %v6781_v3 = vpop.eup %6780 }
 0x8be   :  { %v4541_v47 = vmul.f32 1.442695, %v7962_v58  ;;  %v4571_v49 = vsel %vm4352_vm0, %v6781_v3, 0.0 }
 0x8bf   :  { %v4448_v57 = vpop.xlane.xlu1 %4447  ;;  %4629 = vadd.xlane.f32.xlu0 %v4571_v49 }
 0x8c0   :  { %6788 = vpow2.f32 %v4541_v47  ;;  %v7968_v19 = vsub.f32 %v7786_v17, %v4448_v57 }
 0x8c1   :  { %v6783_v48 = vpop.eup %6782 }
 0x8c2   :  { %v4543_v63 = vmul.f32 1.442695, %v7968_v19  ;;  %v4572_v44 = vsel %vm4352_vm0, %v6783_v48, 0.0 }
 0x8c3   :  { %4631 = vadd.xlane.f32.xlu1 %v4572_v44 }
 0x8c4   :  { %6790 = vpow2.f32 %v4543_v63 }
 0x8c5   :  { %v6785_v37 = vpop.eup %6784 }
 0x8c6   :  { %v4573_v20 = vsel %vm4352_vm0, %v6785_v37, 0.0 }
 0x8c7   :  { %4633 = vadd.xlane.f32.xlu0 %v4573_v20 }
 0x8c9   :  { %v6787_v1 = vpop.eup %6786 }
 0x8ca   :  { %v4574_v59 = vsel %vm4352_vm0, %v6787_v1, 0.0 }
 0x8cb   :  { %4635 = vadd.xlane.f32.xlu1 %v4574_v59 }
 0x8cd   :  { %v6789_v17 = vpop.eup %6788 }
 0x8ce   :  { %v4575_v62 = vsel %vm4352_vm0, %v6789_v17, 0.0 }
 0x8cf   :  { %4637 = vadd.xlane.f32.xlu0 %v4575_v62 }
 0x8d1   :  { %v6791_v45 = vpop.eup %6790 }
 0x8d2   :  { %v4576_v40 = vsel %vm4352_vm0, %v6791_v45, 0.0 }
 0x8d3   :  { %4639 = vadd.xlane.f32.xlu1 %v4576_v40 }
 0x8e2   :  { %v4578_v33 = vpop.xlane.xlu0 %4577 }
 0x8e3   :  { %6792 = vlog2.f32 %v4578_v33 }
 0x8e6   :  { %v4580_v60 = vpop.xlane.xlu1 %4579 }
 0x8e7   :  { %6794 = vlog2.f32 %v4580_v60 }
 0x8ea   :  { %v4582_v52 = vpop.xlane.xlu0 %4581 }
 0x8eb   :  { %6796 = vlog2.f32 %v4582_v52 }
 0x8ee   :  { %v4584_v15 = vpop.xlane.xlu1 %4583 }
 0x8ef   :  { %6798 = vlog2.f32 %v4584_v15 }
 0x8f0   :  { %v6793_v11 = vpop.eup %6792 }
 0x8f1   :  { %v4642_v18 = vmul.f32 0.6931472, %v6793_v11 }
 0x8f2   :  { %v4586_v61 = vpop.xlane.xlu0 %4585 }
 0x8f3   :  { %v4705_v21 = vsub.f32 %v7790_v29, %v4642_v18  ;;  %6800 = vlog2.f32 %v4586_v61 }
 0x8f4   :  { %v6795_v7 = vpop.eup %6794 }
 0x8f5   :  { %v4737_v25 = vsel %vm4352_vm0, %v4705_v21, 0.0  ;;  %v4644_v28 = vmul.f32 0.6931472, %v6795_v7 }
 0x8f6   :  { %4769 = vst [vmem:[#allocation11] sm:$0xff] %v4737_v25  ;;  %v4588_v32 = vpop.xlane.xlu1 %4587 }
 0x8f7   :  { %v4706_v54 = vsub.f32 %v7794_v24, %v4644_v28  ;;  %6802 = vlog2.f32 %v4588_v32 }
 0x8f8   :  { %v6797_v46 = vpop.eup %6796 }
 0x8f9   :  { %v4738_v27 = vsel %vm4352_vm0, %v4706_v54, 0.0  ;;  %v4646_v5 = vmul.f32 0.6931472, %v6797_v46 }
 0x8fa   :  { %4770 = vst [vmem:[#allocation11 + $0x8] sm:$0xff] %v4738_v27  ;;  %v4590_v3 = vpop.xlane.xlu0 %4589 }
 0x8fb   :  { %v4707_v29 = vsub.f32 %v7798_v9, %v4646_v5  ;;  %6804 = vlog2.f32 %v4590_v3 }
 0x8fc   :  { %v6799_v47 = vpop.eup %6798 }
 0x8fd   :  { %v4739_v49 = vsel %vm4352_vm0, %v4707_v29, 0.0  ;;  %v4648_v57 = vmul.f32 0.6931472, %v6799_v47 }
 0x8fe   :  { %4771 = vst [vmem:[#allocation11 + $0x10] sm:$0xff] %v4739_v49  ;;  %v4592_v48 = vpop.xlane.xlu1 %4591 }
 0x8ff   :  { %v4708_v24 = vsub.f32 %v7802_v39, %v4648_v57  ;;  %6806 = vlog2.f32 %v4592_v48 }
 0x900   :  { %v6801_v63 = vpop.eup %6800 }
 0x901   :  { %v4740_v44 = vsel %vm4352_vm0, %v4708_v24, 0.0  ;;  %v4650_v37 = vmul.f32 0.6931472, %v6801_v63 }
 0x902   :  { %4772 = vst [vmem:[#allocation11 + $0x18] sm:$0xff] %v4740_v44  ;;  %v4594_v20 = vpop.xlane.xlu0 %4593 }
 0x903   :  { %v4709_v9 = vsub.f32 %v7806_v56, %v4650_v37  ;;  %6808 = vlog2.f32 %v4594_v20 }
 0x904   :  { %v6803_v1 = vpop.eup %6802 }
 0x905   :  { %v4741_v59 = vsel %vm4352_vm0, %v4709_v9, 0.0  ;;  %v4652_v17 = vmul.f32 0.6931472, %v6803_v1 }
 0x906   :  { %4773 = vst [vmem:[#allocation11 + $0x20] sm:$0xff] %v4741_v59  ;;  %v4596_v62 = vpop.xlane.xlu1 %4595 }
 0x907   :  { %v4710_v39 = vsub.f32 %v7812_v26, %v4652_v17  ;;  %6810 = vlog2.f32 %v4596_v62 }
 0x908   :  { %v6805_v45 = vpop.eup %6804 }
 0x909   :  { %v4742_v40 = vsel %vm4352_vm0, %v4710_v39, 0.0  ;;  %v4654_v33 = vmul.f32 0.6931472, %v6805_v45 }
 0x90a   :  { %4774 = vst [vmem:[#allocation11 + $0x28] sm:$0xff] %v4742_v40  ;;  %v4598_v60 = vpop.xlane.xlu0 %4597 }
 0x90b   :  { %v4711_v56 = vsub.f32 %v7818_v13, %v4654_v33  ;;  %6812 = vlog2.f32 %v4598_v60 }
 0x90c   :  { %v6807_v52 = vpop.eup %6806 }
 0x90d   :  { %v4743_v15 = vsel %vm4352_vm0, %v4711_v56, 0.0  ;;  %v4656_v11 = vmul.f32 0.6931472, %v6807_v52 }
 0x90e   :  { %4775 = vst [vmem:[#allocation11 + $0x30] sm:$0xff] %v4743_v15  ;;  %v4600_v18 = vpop.xlane.xlu1 %4599 }
 0x90f   :  { %v4712_v26 = vsub.f32 %v7824_v6, %v4656_v11  ;;  %6814 = vlog2.f32 %v4600_v18 }
 0x910   :  { %v6809_v61 = vpop.eup %6808 }
 0x911   :  { %v4744_v21 = vsel %vm4352_vm0, %v4712_v26, 0.0  ;;  %v4658_v7 = vmul.f32 0.6931472, %v6809_v61 }
 0x912   :  { %4776 = vst [vmem:[#allocation11 + $0x38] sm:$0xff] %v4744_v21  ;;  %v4602_v25 = vpop.xlane.xlu0 %4601 }
 0x913   :  { %v4713_v13 = vsub.f32 %v7830_v53, %v4658_v7  ;;  %6816 = vlog2.f32 %v4602_v25 }
 0x914   :  { %v6811_v28 = vpop.eup %6810 }
 0x915   :  { %v4745_v32 = vsel %vm4352_vm0, %v4713_v13, 0.0  ;;  %v4660_v54 = vmul.f32 0.6931472, %v6811_v28 }
 0x916   :  { %4777 = vst [vmem:[#allocation11 + $0x40] sm:$0xff] %v4745_v32  ;;  %v4604_v46 = vpop.xlane.xlu1 %4603 }
 0x917   :  { %v4714_v6 = vsub.f32 %v7836_v41, %v4660_v54  ;;  %6818 = vlog2.f32 %v4604_v46 }
 0x918   :  { %v6813_v27 = vpop.eup %6812 }
 0x919   :  { %v4746_v5 = vsel %vm4352_vm0, %v4714_v6, 0.0  ;;  %v4662_v3 = vmul.f32 0.6931472, %v6813_v27 }
 0x91a   :  { %4778 = vst [vmem:[#allocation11 + $0x48] sm:$0xff] %v4746_v5  ;;  %v4606_v29 = vpop.xlane.xlu0 %4605 }
 0x91b   :  { %v4715_v53 = vsub.f32 %v7842_v55, %v4662_v3  ;;  %6820 = vlog2.f32 %v4606_v29 }
 0x91c   :  { %v6815_v47 = vpop.eup %6814 }
 0x91d   :  { %v4747_v49 = vsel %vm4352_vm0, %v4715_v53, 0.0  ;;  %v4664_v57 = vmul.f32 0.6931472, %v6815_v47 }
 0x91e   :  { %4779 = vst [vmem:[#allocation11 + $0x50] sm:$0xff] %v4747_v49  ;;  %v4608_v48 = vpop.xlane.xlu1 %4607 }
 0x91f   :  { %v4716_v41 = vsub.f32 %v7848_v35, %v4664_v57  ;;  %6822 = vlog2.f32 %v4608_v48 }
 0x920   :  { %v6817_v24 = vpop.eup %6816 }
 0x921   :  { %v4748_v63 = vsel %vm4352_vm0, %v4716_v41, 0.0  ;;  %v4666_v44 = vmul.f32 0.6931472, %v6817_v24 }
 0x922   :  { %4780 = vst [vmem:[#allocation11 + $0x58] sm:$0xff] %v4748_v63  ;;  %v4610_v37 = vpop.xlane.xlu0 %4609 }
 0x923   :  { %v4717_v55 = vsub.f32 %v7854_v16, %v4666_v44  ;;  %6824 = vlog2.f32 %v4610_v37 }
 0x924   :  { %v6819_v20 = vpop.eup %6818 }
 0x925   :  { %v4749_v9 = vsel %vm4352_vm0, %v4717_v55, 0.0  ;;  %v4668_v1 = vmul.f32 0.6931472, %v6819_v20 }
 0x926   :  { %4781 = vst [vmem:[#allocation11 + $0x60] sm:$0xff] %v4749_v9  ;;  %v4612_v59 = vpop.xlane.xlu1 %4611 }
 0x927   :  { %v4718_v35 = vsub.f32 %v7860_v12, %v4668_v1  ;;  %6826 = vlog2.f32 %v4612_v59 }
 0x928   :  { %v6821_v17 = vpop.eup %6820 }
 0x929   :  { %v4750_v62 = vsel %vm4352_vm0, %v4718_v35, 0.0  ;;  %v4670_v39 = vmul.f32 0.6931472, %v6821_v17 }
 0x92a   :  { %4782 = vst [vmem:[#allocation11 + $0x68] sm:$0xff] %v4750_v62  ;;  %v4614_v45 = vpop.xlane.xlu0 %4613 }
 0x92b   :  { %v4719_v16 = vsub.f32 %v7866_v2, %v4670_v39  ;;  %6828 = vlog2.f32 %v4614_v45 }
 0x92c   :  { %v6823_v40 = vpop.eup %6822 }
 0x92d   :  { %v4751_v33 = vsel %vm4352_vm0, %v4719_v16, 0.0  ;;  %v4672_v60 = vmul.f32 0.6931472, %v6823_v40 }
 0x92e   :  { %4783 = vst [vmem:[#allocation11 + $0x70] sm:$0xff] %v4751_v33  ;;  %v4616_v56 = vpop.xlane.xlu1 %4615 }
 0x92f   :  { %v4720_v12 = vsub.f32 %v7872_v0, %v4672_v60  ;;  %6830 = vlog2.f32 %v4616_v56 }
 0x930   :  { %v6825_v52 = vpop.eup %6824 }
 0x931   :  { %v4752_v15 = vsel %vm4352_vm0, %v4720_v12, 0.0  ;;  %v4674_v11 = vmul.f32 0.6931472, %v6825_v52 }
 0x932   :  { %4784 = vst [vmem:[#allocation11 + $0x78] sm:$0xff] %v4752_v15  ;;  %v4618_v18 = vpop.xlane.xlu0 %4617 }
 0x933   :  { %v4721_v2 = vsub.f32 %v7878_v4, %v4674_v11  ;;  %6832 = vlog2.f32 %v4618_v18 }
 0x934   :  { %v6827_v26 = vpop.eup %6826 }
 0x935   :  { %v4753_v61 = vsel %vm4352_vm0, %v4721_v2, 0.0  ;;  %v4676_v21 = vmul.f32 0.6931472, %v6827_v26 }
 0x936   :  { %4785 = vst [vmem:[#allocation11 + $0x80] sm:$0xff] %v4753_v61  ;;  %v4620_v7 = vpop.xlane.xlu1 %4619 }
 0x937   :  { %v4722_v0 = vsub.f32 %v7884_v51, %v4676_v21  ;;  %6834 = vlog2.f32 %v4620_v7 }
 0x938   :  { %v6829_v25 = vpop.eup %6828 }
 0x939   :  { %v4754_v13 = vsel %vm4352_vm0, %v4722_v0, 0.0  ;;  %v4678_v28 = vmul.f32 0.6931472, %v6829_v25 }
 0x93a   :  { %4786 = vst [vmem:[#allocation11 + $0x88] sm:$0xff] %v4754_v13  ;;  %v4622_v32 = vpop.xlane.xlu0 %4621 }
 0x93b   :  { %v4723_v4 = vsub.f32 %v7890_v50, %v4678_v28  ;;  %6836 = vlog2.f32 %v4622_v32 }
 0x93c   :  { %v6831_v54 = vpop.eup %6830 }
 0x93d   :  { %v4755_v46 = vsel %vm4352_vm0, %v4723_v4, 0.0  ;;  %v4680_v6 = vmul.f32 0.6931472, %v6831_v54 }
 0x93e   :  { %4787 = vst [vmem:[#allocation11 + $0x90] sm:$0xff] %v4755_v46  ;;  %v4624_v27 = vpop.xlane.xlu1 %4623 }
 0x93f   :  { %v4724_v51 = vsub.f32 %v7896_v30, %v4680_v6  ;;  %6838 = vlog2.f32 %v4624_v27 }
 0x940   :  { %v6833_v5 = vpop.eup %6832 }
 0x941   :  { %v4756_v3 = vsel %vm4352_vm0, %v4724_v51, 0.0  ;;  %v4682_v29 = vmul.f32 0.6931472, %v6833_v5 }
 0x942   :  { %4788 = vst [vmem:[#allocation11 + $0x98] sm:$0xff] %v4756_v3  ;;  %v4626_v53 = vpop.xlane.xlu0 %4625 }
 0x943   :  { %v4725_v50 = vsub.f32 %v7902_v36, %v4682_v29  ;;  %6840 = vlog2.f32 %v4626_v53 }
 0x944   :  { %v6835_v47 = vpop.eup %6834  ;;  %v4628_v49 = vpop.xlane.xlu1 %4627 }
 0x945   :  { %v4757_v57 = vsel %vm4352_vm0, %v4725_v50, 0.0  ;;  %v4684_v48 = vmul.f32 0.6931472, %v6835_v47  ;;  %6842 = vlog2.f32 %v4628_v49 }
 0x946   :  { %4789 = vst [vmem:[#allocation11 + $0xa0] sm:$0xff] %v4757_v57 }
 0x947   :  { %v4726_v30 = vsub.f32 %v7908_v23, %v4684_v48 }
 0x948   :  { %v6837_v41 = vpop.eup %6836  ;;  %v4630_v24 = vpop.xlane.xlu0 %4629 }
 0x949   :  { %v4758_v63 = vsel %vm4352_vm0, %v4726_v30, 0.0  ;;  %v4686_v44 = vmul.f32 0.6931472, %v6837_v41  ;;  %6844 = vlog2.f32 %v4630_v24 }
 0x94a   :  { %4790 = vst [vmem:[#allocation11 + $0xa8] sm:$0xff] %v4758_v63 }
 0x94b   :  { %v4727_v36 = vsub.f32 %v7914_v34, %v4686_v44 }
 0x94c   :  { %v6839_v37 = vpop.eup %6838  ;;  %v4632_v55 = vpop.xlane.xlu1 %4631 }
 0x94d   :  { %v4759_v20 = vsel %vm4352_vm0, %v4727_v36, 0.0  ;;  %v4688_v9 = vmul.f32 0.6931472, %v6839_v37  ;;  %6846 = vlog2.f32 %v4632_v55 }
 0x94e   :  { %4791 = vst [vmem:[#allocation11 + $0xb0] sm:$0xff] %v4759_v20 }
 0x94f   :  { %v4728_v23 = vsub.f32 %v7920_v38, %v4688_v9 }
 0x950   :  { %v6841_v1 = vpop.eup %6840  ;;  %v4634_v59 = vpop.xlane.xlu0 %4633 }
 0x951   :  { %v4760_v35 = vsel %vm4352_vm0, %v4728_v23, 0.0  ;;  %v4690_v17 = vmul.f32 0.6931472, %v6841_v1  ;;  %6848 = vlog2.f32 %v4634_v59 }
 0x952   :  { %v6843_v62 = vpop.eup %6842  ;;  %4792 = vst [vmem:[#allocation11 + $0xb8] sm:$0xff] %v4760_v35 }
 0x953   :  { %v4729_v34 = vsub.f32 %v7926_v42, %v4690_v17  ;;  %v4692_v39 = vmul.f32 0.6931472, %v6843_v62 }
 0x954   :  { %v4636_v45 = vpop.xlane.xlu1 %4635 }
 0x955   :  { %v4761_v16 = vsel %vm4352_vm0, %v4729_v34, 0.0  ;;  %v4730_v40 = vsub.f32 %v7930_v22, %v4692_v39  ;;  %6850 = vlog2.f32 %v4636_v45 }
 0x956   :  { %v6845_v38 = vpop.eup %6844  ;;  %4793 = vst [vmem:[#allocation11 + $0xc0] sm:$0xff] %v4761_v16 }
 0x957   :  { %v4762_v33 = vsel %vm4352_vm0, %v4730_v40, 0.0  ;;  %v4694_v60 = vmul.f32 0.6931472, %v6845_v38 }
 0x958   :  { %4794 = vst [vmem:[#allocation11 + $0xc8] sm:$0xff] %v4762_v33  ;;  %v4638_v56 = vpop.xlane.xlu0 %4637 }
 0x959   :  { %v4731_v12 = vsub.f32 %v7936_v10, %v4694_v60  ;;  %6852 = vlog2.f32 %v4638_v56 }
 0x95a   :  { %v6847_v42 = vpop.eup %6846 }
 0x95b   :  { %v4763_v52 = vsel %vm4352_vm0, %v4731_v12, 0.0  ;;  %v4696_v15 = vmul.f32 0.6931472, %v6847_v42 }
 0x95c   :  { %4795 = vst [vmem:[#allocation11 + $0xd0] sm:$0xff] %v4763_v52  ;;  %v4640_v11 = vpop.xlane.xlu1 %4639 }
 0x95d   :  { %v4732_v22 = vsub.f32 %v7942_v31, %v4696_v15  ;;  %6854 = vlog2.f32 %v4640_v11 }
 0x95e   :  { %v6849_v18 = vpop.eup %6848 }
 0x95f   :  { %v4764_v2 = vsel %vm4352_vm0, %v4732_v22, 0.0  ;;  %v4698_v26 = vmul.f32 0.6931472, %v6849_v18 }
 0x960   :  { %4796 = vst [vmem:[#allocation11 + $0xd8] sm:$0xff] %v4764_v2 }
 0x961   :  { %v4733_v61 = vsub.f32 %v7948_v14, %v4698_v26 }
 0x962   :  { %v6851_v10 = vpop.eup %6850 }
 0x963   :  { %v4765_v21 = vsel %vm4352_vm0, %v4733_v61, 0.0  ;;  %v4700_v7 = vmul.f32 0.6931472, %v6851_v10 }
 0x964   :  { %4797 = vst [vmem:[#allocation11 + $0xe0] sm:$0xff] %v4765_v21 }
 0x965   :  { %v4734_v0 = vsub.f32 %v7954_v8, %v4700_v7 }
 0x966   :  { %v6853_v25 = vpop.eup %6852 }
 0x967   :  { %v4766_v31 = vsel %vm4352_vm0, %v4734_v0, 0.0  ;;  %v4702_v13 = vmul.f32 0.6931472, %v6853_v25 }
 0x968   :  { %4798 = vst [vmem:[#allocation11 + $0xe8] sm:$0xff] %v4766_v31 }
 0x969   :  { %v4735_v28 = vsub.f32 %v7962_v58, %v4702_v13 }
 0x96a   :  { %v6855_v32 = vpop.eup %6854 }
 0x96b   :  { %v4767_v14 = vsel %vm4352_vm0, %v4735_v28, 0.0  ;;  %v4704_v4 = vmul.f32 0.6931472, %v6855_v32 }
 0x96c   :  { %4799 = vst [vmem:[#allocation11 + $0xf0] sm:$0xff] %v4767_v14 }
 0x96d   :  { %v4736_v54 = vsub.f32 %v7968_v19, %v4704_v4 }
 0x96f   :  { %v4768_v8 = vsel %vm4352_vm0, %v4736_v54, 0.0 }
 0x970   :  { %4800 = vst [vmem:[#allocation11 + $0xf8] sm:$0xff] %v4768_v8 }
 0x971   :  { %6928 = shalt.err (!%p6925_p5)
}
 0x972   :  { %4812 = dma.vmem_to_hbm [thread:$0]  %s4807_s10, 4096, %s8088_s5, [#allocation7], %s6947_s27, %s6947_s27, %s6948_s28  }
 0x973   :  { %6941 = dma.done.wait [#allocation7], 4096  }
 0x974   :  { %6942 = vsyncadd [#allocation7], 4294963200 }
 0x975   :  { %4816 = vsyncpa [#allocation6], 1 }
 0x976   :  { %4817 = vsyncpa [#allocation9], 1 }
 0x977   :  { %4818 = vsyncpa [#allocation7], 1 }

</bundles_post_ra>
